<compile_context>
chip_gen: v6e
topology: v6e:2x2x1
jax: 0.10.0
libtpu: 0.0.40
codegen_flags: <defaults>
</compile_context>

<pallas_src>
import math
import functools

import jax
import jax.numpy as jnp
from jax.experimental import pallas as pl
from jax.experimental.pallas import tpu as pltpu


NEG_INF = -1e30   # finite stand-in for masked_fill(-inf)

_ENC_NAMES = ('wqkv', 'bqkv', 'wfc', 'bfc', 'ag', 'ab',
              'w1', 'b1', 'w2t', 'b2', 'fg', 'fb')
_DEC_NAMES = ('s_wqkv', 's_bqkv', 's_wfc', 's_bfc', 's_ag', 's_ab',
              'c_wqkv', 'c_bqkv', 'c_wfc', 'c_bfc', 'c_ag', 'c_ab',
              'w1', 'b1', 'w2t', 'b2', 'fg', 'fb')


# --------------------------------------------------------------------------
# In-kernel building blocks (operate on jnp values already loaded from VMEM)
# --------------------------------------------------------------------------

def _layer_norm(y, g, b):
    # PyTorch nn.LayerNorm over the last dim, eps = 1e-5.
    mu = jnp.mean(y, axis=-1, keepdims=True)
    d = y - mu
    var = jnp.mean(d * d, axis=-1, keepdims=True)
    return d * jax.lax.rsqrt(var + 1e-5) * g + b


def _mha(x_q, x_kv, wqkv, bqkv, wfc, bfc, g, b, kmask_add, n_head, d_k):
    """MultiHeadAttention + fc + residual + LayerNorm (one batch element).

    x_q: (Lq, D)   x_kv: (Lk, D)
    wqkv: (D, 3*H*d_k)  fused [Q|K|V] projection; Q columns pre-scaled by
                        1/sqrt(d_k).   bqkv: (1, 3*H*d_k)
    wfc : (H*d_v, D)    output projection.  bfc: (1, D)
    kmask_add: (1, Lk)  additive key-padding mask (0 or NEG_INF)
    """
    qkv_q = jnp.dot(x_q, wqkv, preferred_element_type=jnp.float32) + bqkv
    if x_kv is x_q:                       # self-attention: reuse projection
        qkv_kv = qkv_q
    else:                                 # cross-attention
        qkv_kv = jnp.dot(x_kv, wqkv, preferred_element_type=jnp.float32) + bqkv

    hd = n_head * d_k
    heads = []
    for h in range(n_head):
        qh = qkv_q[:, h * d_k:(h + 1) * d_k]                       # (Lq, d_k)
        kh = qkv_kv[:, hd + h * d_k: hd + (h + 1) * d_k]           # (Lk, d_k)
        vh = qkv_kv[:, 2 * hd + h * d_k: 2 * hd + (h + 1) * d_k]   # (Lk, d_v)

        s = jax.lax.dot_general(qh, kh, (((1,), (1,)), ((), ())),
                                preferred_element_type=jnp.float32)  # (Lq, Lk)
        s = s + kmask_add
        m = jnp.max(s, axis=-1, keepdims=True)
        e = jnp.exp(s - m)
        p = e * pl.reciprocal(jnp.sum(e, axis=-1, keepdims=True), approx=True)
        heads.append(jnp.dot(p, vh, preferred_element_type=jnp.float32))

    o = jnp.concatenate(heads, axis=-1)                              # (Lq, H*d_v)
    y = jnp.dot(o, wfc, preferred_element_type=jnp.float32) + bfc    # (Lq, D)
    # dropout = identity (eval); residual is the attention query input
    return _layer_norm(y + x_q, g, b)


def _ffn(x, w1, b1, w2t, b2, g, b):
    """PositionwiseFeedForward (Conv1d k=1 == linear) + residual + LayerNorm.

    w2t is stored transposed, shape (D, d_inner), so its lane dim is d_inner.
    """
    h = jnp.maximum(jnp.dot(x, w1, preferred_element_type=jnp.float32) + b1, 0.0)
    f = jax.lax.dot_general(h, w2t, (((1,), (1,)), ((), ())),
                            preferred_element_type=jnp.float32) + b2
    return _layer_norm(f + x, g, b)


# --------------------------------------------------------------------------
# Fused whole-model kernel (one batch element per grid step)
# --------------------------------------------------------------------------

def _ranker_kernel(enc_emb_ref, dec_emb_ref, s_km_ref, p_km_ref,
                   s_np_ref, p_np_ref, *refs, n_layers, n_head, d_k):
    n_enc, n_dec = len(_ENC_NAMES), len(_DEC_NAMES)
    enc = dict(zip(_ENC_NAMES, refs[:n_enc]))
    dec = dict(zip(_DEC_NAMES, refs[n_enc:n_enc + n_dec]))
    wprj_ref = refs[n_enc + n_dec]
    bprj_ref = refs[n_enc + n_dec + 1]
    out_ref = refs[n_enc + n_dec + 2]

    s_km = s_km_ref[...]          # (1, Ls) additive key-pad mask (sent)
    p_km = p_km_ref[...]          # (1, Lp) additive key-pad mask (prog)
    s_np = s_np_ref[...]          # (Ls, 1) non-pad mask (sent)
    p_np = p_np_ref[...]          # (Lp, 1) non-pad mask (prog)

    # ---------------- encoder over sent ----------------
    x = enc_emb_ref[...]          # (Ls, D)
    for l in range(n_layers):
        a = _mha(x, x, enc['wqkv'][l], enc['bqkv'][l], enc['wfc'][l],
                 enc['bfc'][l], enc['ag'][l], enc['ab'][l],
                 s_km, n_head, d_k) * s_np
        x = _ffn(a, enc['w1'][l], enc['b1'][l], enc['w2t'][l], enc['b2'][l],
                 enc['fg'][l], enc['fb'][l]) * s_np
    enc_out = x

    # ---------------- decoder over prog ----------------
    y = dec_emb_ref[...]          # (Lp, D)
    for l in range(n_layers):
        a = _mha(y, y, dec['s_wqkv'][l], dec['s_bqkv'][l], dec['s_wfc'][l],
                 dec['s_bfc'][l], dec['s_ag'][l], dec['s_ab'][l],
                 p_km, n_head, d_k) * p_np
        c = _mha(a, enc_out, dec['c_wqkv'][l], dec['c_bqkv'][l],
                 dec['c_wfc'][l], dec['c_bfc'][l], dec['c_ag'][l],
                 dec['c_ab'][l], s_km, n_head, d_k) * p_np
        y = _ffn(c, dec['w1'][l], dec['b1'][l], dec['w2t'][l], dec['b2'][l],
                 dec['fg'][l], dec['fb'][l]) * p_np

    # ---------------- classifier on decoder position 0 ----------------
    out_ref[...] = (jnp.dot(y[0:1, :], wprj_ref[...],
                            preferred_element_type=jnp.float32)
                    + bprj_ref[...])                       # (1, 128) lane-padded


# --------------------------------------------------------------------------
# pallas_call wrapper
# --------------------------------------------------------------------------

def _batch_spec(shape):
    """Per-batch-element block; leading (batch) dim squeezed."""
    nd = len(shape)
    return pl.BlockSpec((None,) + tuple(shape[1:]),
                        lambda b: (b,) + (0,) * (nd - 1))


def _full_spec(shape):
    """Whole array, same block for every grid step (weights)."""
    nd = len(shape)
    return pl.BlockSpec(tuple(shape), lambda b: (0,) * nd)


def ranker_forward(params, prog, sent, *, n_head, d_k):
    emb = params['word_emb']
    pe = params['pe']
    B, Lp = prog.shape
    _, Ls = sent.shape

    # embedding gather + positional embedding (cheap gather glue in plain JAX)
    enc_in = emb[sent] + pe[:Ls][None, :, :]               # (B, Ls, D)
    dec_in = emb[prog] + pe[:Lp][None, :, :]               # (B, Lp, D)

    # O(B*L) mask vectors only (no pre-broadcast (B, Lq, Lk) masks)
    s_km = jnp.where(sent == 0, NEG_INF, 0.0).astype(jnp.float32)[:, None, :]
    p_km = jnp.where(prog == 0, NEG_INF, 0.0).astype(jnp.float32)[:, None, :]
    s_np = (sent != 0).astype(jnp.float32)[:, :, None]      # (B, Ls, 1)
    p_np = (prog != 0).astype(jnp.float32)[:, :, None]      # (B, Lp, 1)

    enc_w = params['enc_packed']
    dec_w = params['dec_packed']
    n_layers = enc_w['wqkv'].shape[0]

    weight_arrays = ([enc_w[n] for n in _ENC_NAMES]
                     + [dec_w[n] for n in _DEC_NAMES]
                     + [params['w_prj_pad'], params['b_prj_pad']])
    batched_inputs = [enc_in, dec_in, s_km, p_km, s_np, p_np]

    in_specs = ([_batch_spec(a.shape) for a in batched_inputs]
                + [_full_spec(a.shape) for a in weight_arrays])

    kern = functools.partial(_ranker_kernel, n_layers=n_layers,
                             n_head=n_head, d_k=d_k)

    logits_pad = pl.pallas_call(
        kern,
        out_shape=jax.ShapeDtypeStruct((B, 1, 128), jnp.float32),
        grid=(B,),
        in_specs=in_specs,
        out_specs=_batch_spec((B, 1, 128)),
        compiler_params=pltpu.CompilerParams(
            dimension_semantics=("parallel",)),
    )(*batched_inputs, *weight_arrays)

    return logits_pad[:, 0, :2]                             # (B, 2)


# --------------------------------------------------------------------------
# Parameter construction (synthetic init) directly in kernel-packed layout
# --------------------------------------------------------------------------

def _init_mha_pack(key, d_model, n_head, d_k, d_v, scale=0.05):
    inv_temp = 1.0 / math.sqrt(d_k)
    kq, kk, kv, kf = jax.random.split(key, 4)
    wq = scale * jax.random.normal(kq, (d_model, n_head * d_k), jnp.float32)
    wk = scale * jax.random.normal(kk, (d_model, n_head * d_k), jnp.float32)
    wv = scale * jax.random.normal(kv, (d_model, n_head * d_v), jnp.float32)
    wfc = scale * jax.random.normal(kf, (n_head * d_v, d_model), jnp.float32)
    bq = jnp.zeros((n_head * d_k,), jnp.float32)
    bk = jnp.zeros((n_head * d_k,), jnp.float32)
    bv = jnp.zeros((n_head * d_v,), jnp.float32)
    return dict(
        # 1/sqrt(d_k) folded into the Q projection at pack time
        wqkv=jnp.concatenate([wq * inv_temp, wk, wv], axis=1),   # (D, 3*H*d_k)
        bqkv=jnp.concatenate([bq * inv_temp, bk, bv])[None, :],  # (1, 3*H*d_k)
        wfc=wfc,                                                 # (H*d_v, D)
        bfc=jnp.zeros((1, d_model), jnp.float32),
        ag=jnp.ones((1, d_model), jnp.float32),
        ab=jnp.zeros((1, d_model), jnp.float32),
    )


def _init_ffn_pack(key, d_model, d_inner, scale=0.05):
    k1, k2 = jax.random.split(key)
    return dict(
        w1=scale * jax.random.normal(k1, (d_model, d_inner), jnp.float32),
        b1=jnp.zeros((1, d_inner), jnp.float32),
        # w2 stored transposed -> lane dim = d_inner (lane-dense)
        w2t=scale * jax.random.normal(k2, (d_model, d_inner), jnp.float32),
        b2=jnp.zeros((1, d_model), jnp.float32),
        fg=jnp.ones((1, d_model), jnp.float32),
        fb=jnp.zeros((1, d_model), jnp.float32),
    )


def _stack_layers(dicts):
    return {k: jnp.stack([d[k] for d in dicts], axis=0) for k in dicts[0]}


def build_pe_table(d_model, max_len=512):
    position = jnp.arange(max_len, dtype=jnp.float32)[:, None]
    div_term = jnp.exp(jnp.arange(0, d_model, 2, dtype=jnp.float32)
                       * (-math.log(10000.0) / d_model))
    pe = jnp.zeros((max_len, d_model), jnp.float32)
    pe = pe.at[:, 0::2].set(jnp.sin(position * div_term))
    pe = pe.at[:, 1::2].set(jnp.cos(position * div_term))
    return pe


def init_ranker_params(key, vocab_size, d_model, n_layers, n_head):
    d_k = d_model // n_head
    d_v = d_model // n_head
    d_inner = d_model * 4
    keys = jax.random.split(key, 2 + 5 * n_layers)

    word_emb = 0.1 * jax.random.normal(keys[0], (vocab_size, d_model), jnp.float32)
    word_emb = word_emb.at[0].set(0.0)                    # padding_idx = 0

    enc_layers, dec_layers = [], []
    ki = 2
    for _ in range(n_layers):
        d = {}
        d.update(_init_mha_pack(keys[ki], d_model, n_head, d_k, d_v))
        d.update(_init_ffn_pack(keys[ki + 1], d_model, d_inner))
        enc_layers.append(d)
        ki += 2
    for _ in range(n_layers):
        ka, kb = jax.random.split(keys[ki])
        d = {}
        d.update({'s_' + k: v for k, v in
                  _init_mha_pack(ka, d_model, n_head, d_k, d_v).items()})
        d.update({'c_' + k: v for k, v in
                  _init_mha_pack(kb, d_model, n_head, d_k, d_v).items()})
        d.update(_init_ffn_pack(keys[ki + 1], d_model, d_inner))
        dec_layers.append(d)
        ki += 2

    # classifier, lane-padded to 128 output lanes (real logits in lanes 0..1)
    w_prj = 0.05 * jax.random.normal(keys[1], (d_model, 2), jnp.float32)
    w_prj_pad = jnp.zeros((d_model, 128), jnp.float32).at[:, :2].set(w_prj)
    b_prj_pad = jnp.zeros((1, 128), jnp.float32)

    return dict(
        word_emb=word_emb,
        pe=build_pe_table(d_model),
        enc_packed=_stack_layers(enc_layers),
        dec_packed=_stack_layers(dec_layers),
        w_prj_pad=w_prj_pad,
        b_prj_pad=b_prj_pad,
    )


# --------------------------------------------------------------------------
# Demo
# --------------------------------------------------------------------------

if __name__ == "__main__":
    vocab_size = 50
    d_model = 32          # d_word_vec == d_model
    n_layers = 2
    n_head = 4
    d_k = d_model // n_head

    B, L_prog, L_sent = 2, 8, 10

    root = jax.random.PRNGKey(0)
    k_params, k_prog, k_sent = jax.random.split(root, 3)
    params = init_ranker_params(k_params, vocab_size, d_model, n_layers, n_head)

    prog = jax.random.randint(k_prog, (B, L_prog), 1, vocab_size, dtype=jnp.int32)
    sent = jax.random.randint(k_sent, (B, L_sent), 1, vocab_size, dtype=jnp.int32)
    # introduce some padding (token id 0) at the tail, keeping >=1 real token
    prog = prog.at[0, -1].set(0)
    sent = sent.at[0, -2:].set(0)
    sent = sent.at[1, -1].set(0)

    fwd = jax.jit(functools.partial(ranker_forward, n_head=n_head, d_k=d_k))
    logits = fwd(params, prog, sent)
    jax.block_until_ready(logits)

    assert logits.shape == (B, 2) and logits.dtype == jnp.float32
    assert bool(jnp.all(jnp.isfinite(logits)))
    print("KERNEL_OK")
</pallas_src>

<mosaic_0001>
module attributes {stable_mosaic.version = 11 : i64} {
  func.func @_ranker_kernel(%arg0: i32, %arg1: memref<1x10x32xf32, #tpu.memory_space<vmem>>, %arg2: memref<1x8x32xf32, #tpu.memory_space<vmem>>, %arg3: memref<1x1x10xf32, #tpu.memory_space<vmem>>, %arg4: memref<1x1x8xf32, #tpu.memory_space<vmem>>, %arg5: memref<1x10x1xf32, #tpu.memory_space<vmem>>, %arg6: memref<1x8x1xf32, #tpu.memory_space<vmem>>, %arg7: memref<2x32x96xf32, #tpu.memory_space<vmem>>, %arg8: memref<2x1x96xf32, #tpu.memory_space<vmem>>, %arg9: memref<2x32x32xf32, #tpu.memory_space<vmem>>, %arg10: memref<2x1x32xf32, #tpu.memory_space<vmem>>, %arg11: memref<2x1x32xf32, #tpu.memory_space<vmem>>, %arg12: memref<2x1x32xf32, #tpu.memory_space<vmem>>, %arg13: memref<2x32x128xf32, #tpu.memory_space<vmem>>, %arg14: memref<2x1x128xf32, #tpu.memory_space<vmem>>, %arg15: memref<2x32x128xf32, #tpu.memory_space<vmem>>, %arg16: memref<2x1x32xf32, #tpu.memory_space<vmem>>, %arg17: memref<2x1x32xf32, #tpu.memory_space<vmem>>, %arg18: memref<2x1x32xf32, #tpu.memory_space<vmem>>, %arg19: memref<2x32x96xf32, #tpu.memory_space<vmem>>, %arg20: memref<2x1x96xf32, #tpu.memory_space<vmem>>, %arg21: memref<2x32x32xf32, #tpu.memory_space<vmem>>, %arg22: memref<2x1x32xf32, #tpu.memory_space<vmem>>, %arg23: memref<2x1x32xf32, #tpu.memory_space<vmem>>, %arg24: memref<2x1x32xf32, #tpu.memory_space<vmem>>, %arg25: memref<2x32x96xf32, #tpu.memory_space<vmem>>, %arg26: memref<2x1x96xf32, #tpu.memory_space<vmem>>, %arg27: memref<2x32x32xf32, #tpu.memory_space<vmem>>, %arg28: memref<2x1x32xf32, #tpu.memory_space<vmem>>, %arg29: memref<2x1x32xf32, #tpu.memory_space<vmem>>, %arg30: memref<2x1x32xf32, #tpu.memory_space<vmem>>, %arg31: memref<2x32x128xf32, #tpu.memory_space<vmem>>, %arg32: memref<2x1x128xf32, #tpu.memory_space<vmem>>, %arg33: memref<2x32x128xf32, #tpu.memory_space<vmem>>, %arg34: memref<2x1x32xf32, #tpu.memory_space<vmem>>, %arg35: memref<2x1x32xf32, #tpu.memory_space<vmem>>, %arg36: memref<2x1x32xf32, #tpu.memory_space<vmem>>, %arg37: memref<32x128xf32, #tpu.memory_space<vmem>>, %arg38: memref<1x128xf32, #tpu.memory_space<vmem>>, %arg39: memref<1x1x128xf32, #tpu.memory_space<vmem>>) attributes {dimension_semantics = [#tpu.dimension_semantics<parallel>], iteration_bounds = array<i64: 2>, scalar_prefetch = 0 : i64, scratch_operands = 0 : i64, tpu.core_type = #tpu.core_type<tc>, window_params = [{transform_indices = @transform_0, window_bounds = array<i64: 1, 10, 32>}, {transform_indices = @transform_1, window_bounds = array<i64: 1, 8, 32>}, {transform_indices = @transform_2, window_bounds = array<i64: 1, 1, 10>}, {transform_indices = @transform_3, window_bounds = array<i64: 1, 1, 8>}, {transform_indices = @transform_4, window_bounds = array<i64: 1, 10, 1>}, {transform_indices = @transform_5, window_bounds = array<i64: 1, 8, 1>}, {pipeline_mode = #tpu.pipeline_mode<synchronous>, transform_indices = @transform_6, window_bounds = array<i64: 2, 32, 96>}, {pipeline_mode = #tpu.pipeline_mode<synchronous>, transform_indices = @transform_7, window_bounds = array<i64: 2, 1, 96>}, {pipeline_mode = #tpu.pipeline_mode<synchronous>, transform_indices = @transform_8, window_bounds = array<i64: 2, 32, 32>}, {pipeline_mode = #tpu.pipeline_mode<synchronous>, transform_indices = @transform_9, window_bounds = array<i64: 2, 1, 32>}, {pipeline_mode = #tpu.pipeline_mode<synchronous>, transform_indices = @transform_10, window_bounds = array<i64: 2, 1, 32>}, {pipeline_mode = #tpu.pipeline_mode<synchronous>, transform_indices = @transform_11, window_bounds = array<i64: 2, 1, 32>}, {pipeline_mode = #tpu.pipeline_mode<synchronous>, transform_indices = @transform_12, window_bounds = array<i64: 2, 32, 128>}, {pipeline_mode = #tpu.pipeline_mode<synchronous>, transform_indices = @transform_13, window_bounds = array<i64: 2, 1, 128>}, {pipeline_mode = #tpu.pipeline_mode<synchronous>, transform_indices = @transform_14, window_bounds = array<i64: 2, 32, 128>}, {pipeline_mode = #tpu.pipeline_mode<synchronous>, transform_indices = @transform_15, window_bounds = array<i64: 2, 1, 32>}, {pipeline_mode = #tpu.pipeline_mode<synchronous>, transform_indices = @transform_16, window_bounds = array<i64: 2, 1, 32>}, {pipeline_mode = #tpu.pipeline_mode<synchronous>, transform_indices = @transform_17, window_bounds = array<i64: 2, 1, 32>}, {pipeline_mode = #tpu.pipeline_mode<synchronous>, transform_indices = @transform_18, window_bounds = array<i64: 2, 32, 96>}, {pipeline_mode = #tpu.pipeline_mode<synchronous>, transform_indices = @transform_19, window_bounds = array<i64: 2, 1, 96>}, {pipeline_mode = #tpu.pipeline_mode<synchronous>, transform_indices = @transform_20, window_bounds = array<i64: 2, 32, 32>}, {pipeline_mode = #tpu.pipeline_mode<synchronous>, transform_indices = @transform_21, window_bounds = array<i64: 2, 1, 32>}, {pipeline_mode = #tpu.pipeline_mode<synchronous>, transform_indices = @transform_22, window_bounds = array<i64: 2, 1, 32>}, {pipeline_mode = #tpu.pipeline_mode<synchronous>, transform_indices = @transform_23, window_bounds = array<i64: 2, 1, 32>}, {pipeline_mode = #tpu.pipeline_mode<synchronous>, transform_indices = @transform_24, window_bounds = array<i64: 2, 32, 96>}, {pipeline_mode = #tpu.pipeline_mode<synchronous>, transform_indices = @transform_25, window_bounds = array<i64: 2, 1, 96>}, {pipeline_mode = #tpu.pipeline_mode<synchronous>, transform_indices = @transform_26, window_bounds = array<i64: 2, 32, 32>}, {pipeline_mode = #tpu.pipeline_mode<synchronous>, transform_indices = @transform_27, window_bounds = array<i64: 2, 1, 32>}, {pipeline_mode = #tpu.pipeline_mode<synchronous>, transform_indices = @transform_28, window_bounds = array<i64: 2, 1, 32>}, {pipeline_mode = #tpu.pipeline_mode<synchronous>, transform_indices = @transform_29, window_bounds = array<i64: 2, 1, 32>}, {pipeline_mode = #tpu.pipeline_mode<synchronous>, transform_indices = @transform_30, window_bounds = array<i64: 2, 32, 128>}, {pipeline_mode = #tpu.pipeline_mode<synchronous>, transform_indices = @transform_31, window_bounds = array<i64: 2, 1, 128>}, {pipeline_mode = #tpu.pipeline_mode<synchronous>, transform_indices = @transform_32, window_bounds = array<i64: 2, 32, 128>}, {pipeline_mode = #tpu.pipeline_mode<synchronous>, transform_indices = @transform_33, window_bounds = array<i64: 2, 1, 32>}, {pipeline_mode = #tpu.pipeline_mode<synchronous>, transform_indices = @transform_34, window_bounds = array<i64: 2, 1, 32>}, {pipeline_mode = #tpu.pipeline_mode<synchronous>, transform_indices = @transform_35, window_bounds = array<i64: 2, 1, 32>}, {pipeline_mode = #tpu.pipeline_mode<synchronous>, transform_indices = @transform_36, window_bounds = array<i64: 32, 128>}, {pipeline_mode = #tpu.pipeline_mode<synchronous>, transform_indices = @transform_37, window_bounds = array<i64: 1, 128>}, {transform_indices = @transform_38, window_bounds = array<i64: 1, 1, 128>}]} {
    %c0 = arith.constant 0 : index
    %c0_0 = arith.constant 0 : index
    %c0_1 = arith.constant 0 : index
    %0 = vector.load %arg3[%c0, %c0_0, %c0_1] : memref<1x1x10xf32, #tpu.memory_space<vmem>>, vector<1x1x10xf32>
    %1 = vector.shape_cast %0 : vector<1x1x10xf32> to vector<1x10xf32>
    %c0_2 = arith.constant 0 : index
    %c0_3 = arith.constant 0 : index
    %c0_4 = arith.constant 0 : index
    %2 = vector.load %arg4[%c0_2, %c0_3, %c0_4] : memref<1x1x8xf32, #tpu.memory_space<vmem>>, vector<1x1x8xf32>
    %3 = vector.shape_cast %2 : vector<1x1x8xf32> to vector<1x8xf32>
    %c0_5 = arith.constant 0 : index
    %c0_6 = arith.constant 0 : index
    %c0_7 = arith.constant 0 : index
    %4 = vector.load %arg5[%c0_5, %c0_6, %c0_7] : memref<1x10x1xf32, #tpu.memory_space<vmem>>, vector<1x10x1xf32>
    %5 = vector.shape_cast %4 : vector<1x10x1xf32> to vector<10x1xf32>
    %c0_8 = arith.constant 0 : index
    %c0_9 = arith.constant 0 : index
    %c0_10 = arith.constant 0 : index
    %6 = vector.load %arg6[%c0_8, %c0_9, %c0_10] : memref<1x8x1xf32, #tpu.memory_space<vmem>>, vector<1x8x1xf32>
    %7 = vector.shape_cast %6 : vector<1x8x1xf32> to vector<8x1xf32>
    %c0_11 = arith.constant 0 : index
    %c0_12 = arith.constant 0 : index
    %c0_13 = arith.constant 0 : index
    %8 = vector.load %arg1[%c0_11, %c0_12, %c0_13] : memref<1x10x32xf32, #tpu.memory_space<vmem>>, vector<1x10x32xf32>
    %9 = vector.shape_cast %8 : vector<1x10x32xf32> to vector<10x32xf32>
    %c0_14 = arith.constant 0 : index
    %c0_15 = arith.constant 0 : index
    %c0_16 = arith.constant 0 : index
    %10 = vector.load %arg7[%c0_14, %c0_15, %c0_16] : memref<2x32x96xf32, #tpu.memory_space<vmem>>, vector<1x32x96xf32>
    %11 = vector.shape_cast %10 : vector<1x32x96xf32> to vector<32x96xf32>
    %c0_17 = arith.constant 0 : index
    %c0_18 = arith.constant 0 : index
    %c0_19 = arith.constant 0 : index
    %12 = vector.load %arg8[%c0_17, %c0_18, %c0_19] : memref<2x1x96xf32, #tpu.memory_space<vmem>>, vector<1x1x96xf32>
    %13 = vector.shape_cast %12 : vector<1x1x96xf32> to vector<1x96xf32>
    %c0_20 = arith.constant 0 : index
    %c0_21 = arith.constant 0 : index
    %c0_22 = arith.constant 0 : index
    %14 = vector.load %arg9[%c0_20, %c0_21, %c0_22] : memref<2x32x32xf32, #tpu.memory_space<vmem>>, vector<1x32x32xf32>
    %15 = vector.shape_cast %14 : vector<1x32x32xf32> to vector<32x32xf32>
    %c0_23 = arith.constant 0 : index
    %c0_24 = arith.constant 0 : index
    %c0_25 = arith.constant 0 : index
    %16 = vector.load %arg10[%c0_23, %c0_24, %c0_25] : memref<2x1x32xf32, #tpu.memory_space<vmem>>, vector<1x1x32xf32>
    %17 = vector.shape_cast %16 : vector<1x1x32xf32> to vector<1x32xf32>
    %c0_26 = arith.constant 0 : index
    %c0_27 = arith.constant 0 : index
    %c0_28 = arith.constant 0 : index
    %18 = vector.load %arg11[%c0_26, %c0_27, %c0_28] : memref<2x1x32xf32, #tpu.memory_space<vmem>>, vector<1x1x32xf32>
    %19 = vector.shape_cast %18 : vector<1x1x32xf32> to vector<1x32xf32>
    %c0_29 = arith.constant 0 : index
    %c0_30 = arith.constant 0 : index
    %c0_31 = arith.constant 0 : index
    %20 = vector.load %arg12[%c0_29, %c0_30, %c0_31] : memref<2x1x32xf32, #tpu.memory_space<vmem>>, vector<1x1x32xf32>
    %21 = vector.shape_cast %20 : vector<1x1x32xf32> to vector<1x32xf32>
    %cst = arith.constant dense<0.000000e+00> : vector<10x96xf32>
    %22 = tpu.matmul %9, %11, %cst {dimension_numbers = #tpu.dot_dimension_numbers<[1], [0], [0], [1], [0, 0, 1, 1], [], []>} : vector<10x32xf32>, vector<32x96xf32>, vector<10x96xf32> -> vector<10x96xf32>
    %23 = vector.broadcast %13 : vector<1x96xf32> to vector<10x96xf32>
    %24 = arith.addf %22, %23 : vector<10x96xf32>
    %25 = vector.extract_strided_slice %24 {offsets = [0, 0], sizes = [10, 8], strides = [1, 1]} : vector<10x96xf32> to vector<10x8xf32>
    %26 = vector.extract_strided_slice %24 {offsets = [0, 32], sizes = [10, 8], strides = [1, 1]} : vector<10x96xf32> to vector<10x8xf32>
    %27 = vector.extract_strided_slice %24 {offsets = [0, 64], sizes = [10, 8], strides = [1, 1]} : vector<10x96xf32> to vector<10x8xf32>
    %cst_32 = arith.constant dense<0.000000e+00> : vector<10x10xf32>
    %28 = tpu.matmul %25, %26, %cst_32 {dimension_numbers = #tpu.dot_dimension_numbers<[1], [1], [0], [0], [0, 0, 1, 0], [], []>} : vector<10x8xf32>, vector<10x8xf32>, vector<10x10xf32> -> vector<10x10xf32>
    %29 = vector.broadcast %1 : vector<1x10xf32> to vector<10x10xf32>
    %30 = arith.addf %28, %29 : vector<10x10xf32>
    %cst_33 = arith.constant dense<0xFF800000> : vector<10xf32>
    %31 = vector.multi_reduction <maximumf>, %30, %cst_33 [1] : vector<10x10xf32> to vector<10xf32>
    %32 = vector.shape_cast %31 : vector<10xf32> to vector<10x1xf32>
    %33 = vector.broadcast %32 : vector<10x1xf32> to vector<10x10xf32>
    %34 = arith.subf %30, %33 : vector<10x10xf32>
    %35 = math.exp %34 : vector<10x10xf32>
    %cst_34 = arith.constant dense<0.000000e+00> : vector<10xf32>
    %36 = vector.multi_reduction <add>, %35, %cst_34 [1] : vector<10x10xf32> to vector<10xf32>
    %37 = vector.shape_cast %36 : vector<10xf32> to vector<10x1xf32>
    %38 = tpu.reciprocal %37 {approx = true} : vector<10x1xf32> -> vector<10x1xf32>
    %39 = vector.broadcast %38 : vector<10x1xf32> to vector<10x10xf32>
    %40 = arith.mulf %35, %39 : vector<10x10xf32>
    %cst_35 = arith.constant dense<0.000000e+00> : vector<10x8xf32>
    %41 = tpu.matmul %40, %27, %cst_35 {dimension_numbers = #tpu.dot_dimension_numbers<[1], [0], [0], [1], [0, 0, 1, 1], [], []>} : vector<10x10xf32>, vector<10x8xf32>, vector<10x8xf32> -> vector<10x8xf32>
    %42 = vector.extract_strided_slice %24 {offsets = [0, 8], sizes = [10, 8], strides = [1, 1]} : vector<10x96xf32> to vector<10x8xf32>
    %43 = vector.extract_strided_slice %24 {offsets = [0, 40], sizes = [10, 8], strides = [1, 1]} : vector<10x96xf32> to vector<10x8xf32>
    %44 = vector.extract_strided_slice %24 {offsets = [0, 72], sizes = [10, 8], strides = [1, 1]} : vector<10x96xf32> to vector<10x8xf32>
    %cst_36 = arith.constant dense<0.000000e+00> : vector<10x10xf32>
    %45 = tpu.matmul %42, %43, %cst_36 {dimension_numbers = #tpu.dot_dimension_numbers<[1], [1], [0], [0], [0, 0, 1, 0], [], []>} : vector<10x8xf32>, vector<10x8xf32>, vector<10x10xf32> -> vector<10x10xf32>
    %46 = vector.broadcast %1 : vector<1x10xf32> to vector<10x10xf32>
    %47 = arith.addf %45, %46 : vector<10x10xf32>
    %cst_37 = arith.constant dense<0xFF800000> : vector<10xf32>
    %48 = vector.multi_reduction <maximumf>, %47, %cst_37 [1] : vector<10x10xf32> to vector<10xf32>
    %49 = vector.shape_cast %48 : vector<10xf32> to vector<10x1xf32>
    %50 = vector.broadcast %49 : vector<10x1xf32> to vector<10x10xf32>
    %51 = arith.subf %47, %50 : vector<10x10xf32>
    %52 = math.exp %51 : vector<10x10xf32>
    %cst_38 = arith.constant dense<0.000000e+00> : vector<10xf32>
    %53 = vector.multi_reduction <add>, %52, %cst_38 [1] : vector<10x10xf32> to vector<10xf32>
    %54 = vector.shape_cast %53 : vector<10xf32> to vector<10x1xf32>
    %55 = tpu.reciprocal %54 {approx = true} : vector<10x1xf32> -> vector<10x1xf32>
    %56 = vector.broadcast %55 : vector<10x1xf32> to vector<10x10xf32>
    %57 = arith.mulf %52, %56 : vector<10x10xf32>
    %cst_39 = arith.constant dense<0.000000e+00> : vector<10x8xf32>
    %58 = tpu.matmul %57, %44, %cst_39 {dimension_numbers = #tpu.dot_dimension_numbers<[1], [0], [0], [1], [0, 0, 1, 1], [], []>} : vector<10x10xf32>, vector<10x8xf32>, vector<10x8xf32> -> vector<10x8xf32>
    %59 = vector.extract_strided_slice %24 {offsets = [0, 16], sizes = [10, 8], strides = [1, 1]} : vector<10x96xf32> to vector<10x8xf32>
    %60 = vector.extract_strided_slice %24 {offsets = [0, 48], sizes = [10, 8], strides = [1, 1]} : vector<10x96xf32> to vector<10x8xf32>
    %61 = vector.extract_strided_slice %24 {offsets = [0, 80], sizes = [10, 8], strides = [1, 1]} : vector<10x96xf32> to vector<10x8xf32>
    %cst_40 = arith.constant dense<0.000000e+00> : vector<10x10xf32>
    %62 = tpu.matmul %59, %60, %cst_40 {dimension_numbers = #tpu.dot_dimension_numbers<[1], [1], [0], [0], [0, 0, 1, 0], [], []>} : vector<10x8xf32>, vector<10x8xf32>, vector<10x10xf32> -> vector<10x10xf32>
    %63 = vector.broadcast %1 : vector<1x10xf32> to vector<10x10xf32>
    %64 = arith.addf %62, %63 : vector<10x10xf32>
    %cst_41 = arith.constant dense<0xFF800000> : vector<10xf32>
    %65 = vector.multi_reduction <maximumf>, %64, %cst_41 [1] : vector<10x10xf32> to vector<10xf32>
    %66 = vector.shape_cast %65 : vector<10xf32> to vector<10x1xf32>
    %67 = vector.broadcast %66 : vector<10x1xf32> to vector<10x10xf32>
    %68 = arith.subf %64, %67 : vector<10x10xf32>
    %69 = math.exp %68 : vector<10x10xf32>
    %cst_42 = arith.constant dense<0.000000e+00> : vector<10xf32>
    %70 = vector.multi_reduction <add>, %69, %cst_42 [1] : vector<10x10xf32> to vector<10xf32>
    %71 = vector.shape_cast %70 : vector<10xf32> to vector<10x1xf32>
    %72 = tpu.reciprocal %71 {approx = true} : vector<10x1xf32> -> vector<10x1xf32>
    %73 = vector.broadcast %72 : vector<10x1xf32> to vector<10x10xf32>
    %74 = arith.mulf %69, %73 : vector<10x10xf32>
    %cst_43 = arith.constant dense<0.000000e+00> : vector<10x8xf32>
    %75 = tpu.matmul %74, %61, %cst_43 {dimension_numbers = #tpu.dot_dimension_numbers<[1], [0], [0], [1], [0, 0, 1, 1], [], []>} : vector<10x10xf32>, vector<10x8xf32>, vector<10x8xf32> -> vector<10x8xf32>
    %76 = vector.extract_strided_slice %24 {offsets = [0, 24], sizes = [10, 8], strides = [1, 1]} : vector<10x96xf32> to vector<10x8xf32>
    %77 = vector.extract_strided_slice %24 {offsets = [0, 56], sizes = [10, 8], strides = [1, 1]} : vector<10x96xf32> to vector<10x8xf32>
    %78 = vector.extract_strided_slice %24 {offsets = [0, 88], sizes = [10, 8], strides = [1, 1]} : vector<10x96xf32> to vector<10x8xf32>
    %cst_44 = arith.constant dense<0.000000e+00> : vector<10x10xf32>
    %79 = tpu.matmul %76, %77, %cst_44 {dimension_numbers = #tpu.dot_dimension_numbers<[1], [1], [0], [0], [0, 0, 1, 0], [], []>} : vector<10x8xf32>, vector<10x8xf32>, vector<10x10xf32> -> vector<10x10xf32>
    %80 = vector.broadcast %1 : vector<1x10xf32> to vector<10x10xf32>
    %81 = arith.addf %79, %80 : vector<10x10xf32>
    %cst_45 = arith.constant dense<0xFF800000> : vector<10xf32>
    %82 = vector.multi_reduction <maximumf>, %81, %cst_45 [1] : vector<10x10xf32> to vector<10xf32>
    %83 = vector.shape_cast %82 : vector<10xf32> to vector<10x1xf32>
    %84 = vector.broadcast %83 : vector<10x1xf32> to vector<10x10xf32>
    %85 = arith.subf %81, %84 : vector<10x10xf32>
    %86 = math.exp %85 : vector<10x10xf32>
    %cst_46 = arith.constant dense<0.000000e+00> : vector<10xf32>
    %87 = vector.multi_reduction <add>, %86, %cst_46 [1] : vector<10x10xf32> to vector<10xf32>
    %88 = vector.shape_cast %87 : vector<10xf32> to vector<10x1xf32>
    %89 = tpu.reciprocal %88 {approx = true} : vector<10x1xf32> -> vector<10x1xf32>
    %90 = vector.broadcast %89 : vector<10x1xf32> to vector<10x10xf32>
    %91 = arith.mulf %86, %90 : vector<10x10xf32>
    %cst_47 = arith.constant dense<0.000000e+00> : vector<10x8xf32>
    %92 = tpu.matmul %91, %78, %cst_47 {dimension_numbers = #tpu.dot_dimension_numbers<[1], [0], [0], [1], [0, 0, 1, 1], [], []>} : vector<10x10xf32>, vector<10x8xf32>, vector<10x8xf32> -> vector<10x8xf32>
    %93 = tpu.concatenate %41, %58, %75, %92 in 1 : vector<10x8xf32>, vector<10x8xf32>, vector<10x8xf32>, vector<10x8xf32> -> vector<10x32xf32>
    %cst_48 = arith.constant dense<0.000000e+00> : vector<10x32xf32>
    %94 = tpu.matmul %93, %15, %cst_48 {dimension_numbers = #tpu.dot_dimension_numbers<[1], [0], [0], [1], [0, 0, 1, 1], [], []>} : vector<10x32xf32>, vector<32x32xf32>, vector<10x32xf32> -> vector<10x32xf32>
    %95 = vector.broadcast %17 : vector<1x32xf32> to vector<10x32xf32>
    %96 = arith.addf %94, %95 : vector<10x32xf32>
    %97 = arith.addf %96, %9 : vector<10x32xf32>
    %cst_49 = arith.constant dense<0.000000e+00> : vector<10xf32>
    %98 = vector.multi_reduction <add>, %97, %cst_49 [1] : vector<10x32xf32> to vector<10xf32>
    %99 = vector.shape_cast %98 : vector<10xf32> to vector<10x1xf32>
    %cst_50 = arith.constant 3.200000e+01 : f32
    %100 = vector.broadcast %cst_50 : f32 to vector<10x1xf32>
    %101 = arith.divf %99, %100 : vector<10x1xf32>
    %102 = vector.broadcast %101 : vector<10x1xf32> to vector<10x32xf32>
    %103 = arith.subf %97, %102 : vector<10x32xf32>
    %104 = arith.mulf %103, %103 : vector<10x32xf32>
    %cst_51 = arith.constant dense<0.000000e+00> : vector<10xf32>
    %105 = vector.multi_reduction <add>, %104, %cst_51 [1] : vector<10x32xf32> to vector<10xf32>
    %106 = vector.shape_cast %105 : vector<10xf32> to vector<10x1xf32>
    %cst_52 = arith.constant 3.200000e+01 : f32
    %107 = vector.broadcast %cst_52 : f32 to vector<10x1xf32>
    %108 = arith.divf %106, %107 : vector<10x1xf32>
    %cst_53 = arith.constant 9.99999974E-6 : f32
    %109 = vector.broadcast %cst_53 : f32 to vector<10x1xf32>
    %110 = arith.addf %108, %109 : vector<10x1xf32>
    %111 = math.rsqrt %110 : vector<10x1xf32>
    %112 = vector.broadcast %111 : vector<10x1xf32> to vector<10x32xf32>
    %113 = arith.mulf %103, %112 : vector<10x32xf32>
    %114 = vector.broadcast %19 : vector<1x32xf32> to vector<10x32xf32>
    %115 = arith.mulf %113, %114 : vector<10x32xf32>
    %116 = vector.broadcast %21 : vector<1x32xf32> to vector<10x32xf32>
    %117 = arith.addf %115, %116 : vector<10x32xf32>
    %118 = vector.broadcast %5 : vector<10x1xf32> to vector<10x32xf32>
    %119 = arith.mulf %117, %118 : vector<10x32xf32>
    %c0_54 = arith.constant 0 : index
    %c0_55 = arith.constant 0 : index
    %c0_56 = arith.constant 0 : index
    %120 = vector.load %arg13[%c0_54, %c0_55, %c0_56] : memref<2x32x128xf32, #tpu.memory_space<vmem>>, vector<1x32x128xf32>
    %121 = vector.shape_cast %120 : vector<1x32x128xf32> to vector<32x128xf32>
    %c0_57 = arith.constant 0 : index
    %c0_58 = arith.constant 0 : index
    %c0_59 = arith.constant 0 : index
    %122 = vector.load %arg14[%c0_57, %c0_58, %c0_59] : memref<2x1x128xf32, #tpu.memory_space<vmem>>, vector<1x1x128xf32>
    %123 = vector.shape_cast %122 : vector<1x1x128xf32> to vector<1x128xf32>
    %c0_60 = arith.constant 0 : index
    %c0_61 = arith.constant 0 : index
    %c0_62 = arith.constant 0 : index
    %124 = vector.load %arg15[%c0_60, %c0_61, %c0_62] : memref<2x32x128xf32, #tpu.memory_space<vmem>>, vector<1x32x128xf32>
    %125 = vector.shape_cast %124 : vector<1x32x128xf32> to vector<32x128xf32>
    %c0_63 = arith.constant 0 : index
    %c0_64 = arith.constant 0 : index
    %c0_65 = arith.constant 0 : index
    %126 = vector.load %arg16[%c0_63, %c0_64, %c0_65] : memref<2x1x32xf32, #tpu.memory_space<vmem>>, vector<1x1x32xf32>
    %127 = vector.shape_cast %126 : vector<1x1x32xf32> to vector<1x32xf32>
    %c0_66 = arith.constant 0 : index
    %c0_67 = arith.constant 0 : index
    %c0_68 = arith.constant 0 : index
    %128 = vector.load %arg17[%c0_66, %c0_67, %c0_68] : memref<2x1x32xf32, #tpu.memory_space<vmem>>, vector<1x1x32xf32>
    %129 = vector.shape_cast %128 : vector<1x1x32xf32> to vector<1x32xf32>
    %c0_69 = arith.constant 0 : index
    %c0_70 = arith.constant 0 : index
    %c0_71 = arith.constant 0 : index
    %130 = vector.load %arg18[%c0_69, %c0_70, %c0_71] : memref<2x1x32xf32, #tpu.memory_space<vmem>>, vector<1x1x32xf32>
    %131 = vector.shape_cast %130 : vector<1x1x32xf32> to vector<1x32xf32>
    %cst_72 = arith.constant dense<0.000000e+00> : vector<10x128xf32>
    %132 = tpu.matmul %119, %121, %cst_72 {dimension_numbers = #tpu.dot_dimension_numbers<[1], [0], [0], [1], [0, 0, 1, 1], [], []>} : vector<10x32xf32>, vector<32x128xf32>, vector<10x128xf32> -> vector<10x128xf32>
    %133 = vector.broadcast %123 : vector<1x128xf32> to vector<10x128xf32>
    %134 = arith.addf %132, %133 : vector<10x128xf32>
    %cst_73 = arith.constant 0.000000e+00 : f32
    %135 = vector.broadcast %cst_73 : f32 to vector<10x128xf32>
    %136 = arith.maximumf %134, %135 : vector<10x128xf32>
    %cst_74 = arith.constant dense<0.000000e+00> : vector<10x32xf32>
    %137 = tpu.matmul %136, %125, %cst_74 {dimension_numbers = #tpu.dot_dimension_numbers<[1], [1], [0], [0], [0, 0, 1, 0], [], []>} : vector<10x128xf32>, vector<32x128xf32>, vector<10x32xf32> -> vector<10x32xf32>
    %138 = vector.broadcast %127 : vector<1x32xf32> to vector<10x32xf32>
    %139 = arith.addf %137, %138 : vector<10x32xf32>
    %140 = arith.addf %139, %119 : vector<10x32xf32>
    %cst_75 = arith.constant dense<0.000000e+00> : vector<10xf32>
    %141 = vector.multi_reduction <add>, %140, %cst_75 [1] : vector<10x32xf32> to vector<10xf32>
    %142 = vector.shape_cast %141 : vector<10xf32> to vector<10x1xf32>
    %cst_76 = arith.constant 3.200000e+01 : f32
    %143 = vector.broadcast %cst_76 : f32 to vector<10x1xf32>
    %144 = arith.divf %142, %143 : vector<10x1xf32>
    %145 = vector.broadcast %144 : vector<10x1xf32> to vector<10x32xf32>
    %146 = arith.subf %140, %145 : vector<10x32xf32>
    %147 = arith.mulf %146, %146 : vector<10x32xf32>
    %cst_77 = arith.constant dense<0.000000e+00> : vector<10xf32>
    %148 = vector.multi_reduction <add>, %147, %cst_77 [1] : vector<10x32xf32> to vector<10xf32>
    %149 = vector.shape_cast %148 : vector<10xf32> to vector<10x1xf32>
    %cst_78 = arith.constant 3.200000e+01 : f32
    %150 = vector.broadcast %cst_78 : f32 to vector<10x1xf32>
    %151 = arith.divf %149, %150 : vector<10x1xf32>
    %cst_79 = arith.constant 9.99999974E-6 : f32
    %152 = vector.broadcast %cst_79 : f32 to vector<10x1xf32>
    %153 = arith.addf %151, %152 : vector<10x1xf32>
    %154 = math.rsqrt %153 : vector<10x1xf32>
    %155 = vector.broadcast %154 : vector<10x1xf32> to vector<10x32xf32>
    %156 = arith.mulf %146, %155 : vector<10x32xf32>
    %157 = vector.broadcast %129 : vector<1x32xf32> to vector<10x32xf32>
    %158 = arith.mulf %156, %157 : vector<10x32xf32>
    %159 = vector.broadcast %131 : vector<1x32xf32> to vector<10x32xf32>
    %160 = arith.addf %158, %159 : vector<10x32xf32>
    %161 = vector.broadcast %5 : vector<10x1xf32> to vector<10x32xf32>
    %162 = arith.mulf %160, %161 : vector<10x32xf32>
    %c1 = arith.constant 1 : index
    %c0_80 = arith.constant 0 : index
    %c0_81 = arith.constant 0 : index
    %163 = vector.load %arg7[%c1, %c0_80, %c0_81] : memref<2x32x96xf32, #tpu.memory_space<vmem>>, vector<1x32x96xf32>
    %164 = vector.shape_cast %163 : vector<1x32x96xf32> to vector<32x96xf32>
    %c1_82 = arith.constant 1 : index
    %c0_83 = arith.constant 0 : index
    %c0_84 = arith.constant 0 : index
    %165 = vector.load %arg8[%c1_82, %c0_83, %c0_84] : memref<2x1x96xf32, #tpu.memory_space<vmem>>, vector<1x1x96xf32>
    %166 = vector.shape_cast %165 : vector<1x1x96xf32> to vector<1x96xf32>
    %c1_85 = arith.constant 1 : index
    %c0_86 = arith.constant 0 : index
    %c0_87 = arith.constant 0 : index
    %167 = vector.load %arg9[%c1_85, %c0_86, %c0_87] : memref<2x32x32xf32, #tpu.memory_space<vmem>>, vector<1x32x32xf32>
    %168 = vector.shape_cast %167 : vector<1x32x32xf32> to vector<32x32xf32>
    %c1_88 = arith.constant 1 : index
    %c0_89 = arith.constant 0 : index
    %c0_90 = arith.constant 0 : index
    %169 = vector.load %arg10[%c1_88, %c0_89, %c0_90] : memref<2x1x32xf32, #tpu.memory_space<vmem>>, vector<1x1x32xf32>
    %170 = vector.shape_cast %169 : vector<1x1x32xf32> to vector<1x32xf32>
    %c1_91 = arith.constant 1 : index
    %c0_92 = arith.constant 0 : index
    %c0_93 = arith.constant 0 : index
    %171 = vector.load %arg11[%c1_91, %c0_92, %c0_93] : memref<2x1x32xf32, #tpu.memory_space<vmem>>, vector<1x1x32xf32>
    %172 = vector.shape_cast %171 : vector<1x1x32xf32> to vector<1x32xf32>
    %c1_94 = arith.constant 1 : index
    %c0_95 = arith.constant 0 : index
    %c0_96 = arith.constant 0 : index
    %173 = vector.load %arg12[%c1_94, %c0_95, %c0_96] : memref<2x1x32xf32, #tpu.memory_space<vmem>>, vector<1x1x32xf32>
    %174 = vector.shape_cast %173 : vector<1x1x32xf32> to vector<1x32xf32>
    %cst_97 = arith.constant dense<0.000000e+00> : vector<10x96xf32>
    %175 = tpu.matmul %162, %164, %cst_97 {dimension_numbers = #tpu.dot_dimension_numbers<[1], [0], [0], [1], [0, 0, 1, 1], [], []>} : vector<10x32xf32>, vector<32x96xf32>, vector<10x96xf32> -> vector<10x96xf32>
    %176 = vector.broadcast %166 : vector<1x96xf32> to vector<10x96xf32>
    %177 = arith.addf %175, %176 : vector<10x96xf32>
    %178 = vector.extract_strided_slice %177 {offsets = [0, 0], sizes = [10, 8], strides = [1, 1]} : vector<10x96xf32> to vector<10x8xf32>
    %179 = vector.extract_strided_slice %177 {offsets = [0, 32], sizes = [10, 8], strides = [1, 1]} : vector<10x96xf32> to vector<10x8xf32>
    %180 = vector.extract_strided_slice %177 {offsets = [0, 64], sizes = [10, 8], strides = [1, 1]} : vector<10x96xf32> to vector<10x8xf32>
    %cst_98 = arith.constant dense<0.000000e+00> : vector<10x10xf32>
    %181 = tpu.matmul %178, %179, %cst_98 {dimension_numbers = #tpu.dot_dimension_numbers<[1], [1], [0], [0], [0, 0, 1, 0], [], []>} : vector<10x8xf32>, vector<10x8xf32>, vector<10x10xf32> -> vector<10x10xf32>
    %182 = vector.broadcast %1 : vector<1x10xf32> to vector<10x10xf32>
    %183 = arith.addf %181, %182 : vector<10x10xf32>
    %cst_99 = arith.constant dense<0xFF800000> : vector<10xf32>
    %184 = vector.multi_reduction <maximumf>, %183, %cst_99 [1] : vector<10x10xf32> to vector<10xf32>
    %185 = vector.shape_cast %184 : vector<10xf32> to vector<10x1xf32>
    %186 = vector.broadcast %185 : vector<10x1xf32> to vector<10x10xf32>
    %187 = arith.subf %183, %186 : vector<10x10xf32>
    %188 = math.exp %187 : vector<10x10xf32>
    %cst_100 = arith.constant dense<0.000000e+00> : vector<10xf32>
    %189 = vector.multi_reduction <add>, %188, %cst_100 [1] : vector<10x10xf32> to vector<10xf32>
    %190 = vector.shape_cast %189 : vector<10xf32> to vector<10x1xf32>
    %191 = tpu.reciprocal %190 {approx = true} : vector<10x1xf32> -> vector<10x1xf32>
    %192 = vector.broadcast %191 : vector<10x1xf32> to vector<10x10xf32>
    %193 = arith.mulf %188, %192 : vector<10x10xf32>
    %cst_101 = arith.constant dense<0.000000e+00> : vector<10x8xf32>
    %194 = tpu.matmul %193, %180, %cst_101 {dimension_numbers = #tpu.dot_dimension_numbers<[1], [0], [0], [1], [0, 0, 1, 1], [], []>} : vector<10x10xf32>, vector<10x8xf32>, vector<10x8xf32> -> vector<10x8xf32>
    %195 = vector.extract_strided_slice %177 {offsets = [0, 8], sizes = [10, 8], strides = [1, 1]} : vector<10x96xf32> to vector<10x8xf32>
    %196 = vector.extract_strided_slice %177 {offsets = [0, 40], sizes = [10, 8], strides = [1, 1]} : vector<10x96xf32> to vector<10x8xf32>
    %197 = vector.extract_strided_slice %177 {offsets = [0, 72], sizes = [10, 8], strides = [1, 1]} : vector<10x96xf32> to vector<10x8xf32>
    %cst_102 = arith.constant dense<0.000000e+00> : vector<10x10xf32>
    %198 = tpu.matmul %195, %196, %cst_102 {dimension_numbers = #tpu.dot_dimension_numbers<[1], [1], [0], [0], [0, 0, 1, 0], [], []>} : vector<10x8xf32>, vector<10x8xf32>, vector<10x10xf32> -> vector<10x10xf32>
    %199 = vector.broadcast %1 : vector<1x10xf32> to vector<10x10xf32>
    %200 = arith.addf %198, %199 : vector<10x10xf32>
    %cst_103 = arith.constant dense<0xFF800000> : vector<10xf32>
    %201 = vector.multi_reduction <maximumf>, %200, %cst_103 [1] : vector<10x10xf32> to vector<10xf32>
    %202 = vector.shape_cast %201 : vector<10xf32> to vector<10x1xf32>
    %203 = vector.broadcast %202 : vector<10x1xf32> to vector<10x10xf32>
    %204 = arith.subf %200, %203 : vector<10x10xf32>
    %205 = math.exp %204 : vector<10x10xf32>
    %cst_104 = arith.constant dense<0.000000e+00> : vector<10xf32>
    %206 = vector.multi_reduction <add>, %205, %cst_104 [1] : vector<10x10xf32> to vector<10xf32>
    %207 = vector.shape_cast %206 : vector<10xf32> to vector<10x1xf32>
    %208 = tpu.reciprocal %207 {approx = true} : vector<10x1xf32> -> vector<10x1xf32>
    %209 = vector.broadcast %208 : vector<10x1xf32> to vector<10x10xf32>
    %210 = arith.mulf %205, %209 : vector<10x10xf32>
    %cst_105 = arith.constant dense<0.000000e+00> : vector<10x8xf32>
    %211 = tpu.matmul %210, %197, %cst_105 {dimension_numbers = #tpu.dot_dimension_numbers<[1], [0], [0], [1], [0, 0, 1, 1], [], []>} : vector<10x10xf32>, vector<10x8xf32>, vector<10x8xf32> -> vector<10x8xf32>
    %212 = vector.extract_strided_slice %177 {offsets = [0, 16], sizes = [10, 8], strides = [1, 1]} : vector<10x96xf32> to vector<10x8xf32>
    %213 = vector.extract_strided_slice %177 {offsets = [0, 48], sizes = [10, 8], strides = [1, 1]} : vector<10x96xf32> to vector<10x8xf32>
    %214 = vector.extract_strided_slice %177 {offsets = [0, 80], sizes = [10, 8], strides = [1, 1]} : vector<10x96xf32> to vector<10x8xf32>
    %cst_106 = arith.constant dense<0.000000e+00> : vector<10x10xf32>
    %215 = tpu.matmul %212, %213, %cst_106 {dimension_numbers = #tpu.dot_dimension_numbers<[1], [1], [0], [0], [0, 0, 1, 0], [], []>} : vector<10x8xf32>, vector<10x8xf32>, vector<10x10xf32> -> vector<10x10xf32>
    %216 = vector.broadcast %1 : vector<1x10xf32> to vector<10x10xf32>
    %217 = arith.addf %215, %216 : vector<10x10xf32>
    %cst_107 = arith.constant dense<0xFF800000> : vector<10xf32>
    %218 = vector.multi_reduction <maximumf>, %217, %cst_107 [1] : vector<10x10xf32> to vector<10xf32>
    %219 = vector.shape_cast %218 : vector<10xf32> to vector<10x1xf32>
    %220 = vector.broadcast %219 : vector<10x1xf32> to vector<10x10xf32>
    %221 = arith.subf %217, %220 : vector<10x10xf32>
    %222 = math.exp %221 : vector<10x10xf32>
    %cst_108 = arith.constant dense<0.000000e+00> : vector<10xf32>
    %223 = vector.multi_reduction <add>, %222, %cst_108 [1] : vector<10x10xf32> to vector<10xf32>
    %224 = vector.shape_cast %223 : vector<10xf32> to vector<10x1xf32>
    %225 = tpu.reciprocal %224 {approx = true} : vector<10x1xf32> -> vector<10x1xf32>
    %226 = vector.broadcast %225 : vector<10x1xf32> to vector<10x10xf32>
    %227 = arith.mulf %222, %226 : vector<10x10xf32>
    %cst_109 = arith.constant dense<0.000000e+00> : vector<10x8xf32>
    %228 = tpu.matmul %227, %214, %cst_109 {dimension_numbers = #tpu.dot_dimension_numbers<[1], [0], [0], [1], [0, 0, 1, 1], [], []>} : vector<10x10xf32>, vector<10x8xf32>, vector<10x8xf32> -> vector<10x8xf32>
    %229 = vector.extract_strided_slice %177 {offsets = [0, 24], sizes = [10, 8], strides = [1, 1]} : vector<10x96xf32> to vector<10x8xf32>
    %230 = vector.extract_strided_slice %177 {offsets = [0, 56], sizes = [10, 8], strides = [1, 1]} : vector<10x96xf32> to vector<10x8xf32>
    %231 = vector.extract_strided_slice %177 {offsets = [0, 88], sizes = [10, 8], strides = [1, 1]} : vector<10x96xf32> to vector<10x8xf32>
    %cst_110 = arith.constant dense<0.000000e+00> : vector<10x10xf32>
    %232 = tpu.matmul %229, %230, %cst_110 {dimension_numbers = #tpu.dot_dimension_numbers<[1], [1], [0], [0], [0, 0, 1, 0], [], []>} : vector<10x8xf32>, vector<10x8xf32>, vector<10x10xf32> -> vector<10x10xf32>
    %233 = vector.broadcast %1 : vector<1x10xf32> to vector<10x10xf32>
    %234 = arith.addf %232, %233 : vector<10x10xf32>
    %cst_111 = arith.constant dense<0xFF800000> : vector<10xf32>
    %235 = vector.multi_reduction <maximumf>, %234, %cst_111 [1] : vector<10x10xf32> to vector<10xf32>
    %236 = vector.shape_cast %235 : vector<10xf32> to vector<10x1xf32>
    %237 = vector.broadcast %236 : vector<10x1xf32> to vector<10x10xf32>
    %238 = arith.subf %234, %237 : vector<10x10xf32>
    %239 = math.exp %238 : vector<10x10xf32>
    %cst_112 = arith.constant dense<0.000000e+00> : vector<10xf32>
    %240 = vector.multi_reduction <add>, %239, %cst_112 [1] : vector<10x10xf32> to vector<10xf32>
    %241 = vector.shape_cast %240 : vector<10xf32> to vector<10x1xf32>
    %242 = tpu.reciprocal %241 {approx = true} : vector<10x1xf32> -> vector<10x1xf32>
    %243 = vector.broadcast %242 : vector<10x1xf32> to vector<10x10xf32>
    %244 = arith.mulf %239, %243 : vector<10x10xf32>
    %cst_113 = arith.constant dense<0.000000e+00> : vector<10x8xf32>
    %245 = tpu.matmul %244, %231, %cst_113 {dimension_numbers = #tpu.dot_dimension_numbers<[1], [0], [0], [1], [0, 0, 1, 1], [], []>} : vector<10x10xf32>, vector<10x8xf32>, vector<10x8xf32> -> vector<10x8xf32>
    %246 = tpu.concatenate %194, %211, %228, %245 in 1 : vector<10x8xf32>, vector<10x8xf32>, vector<10x8xf32>, vector<10x8xf32> -> vector<10x32xf32>
    %cst_114 = arith.constant dense<0.000000e+00> : vector<10x32xf32>
    %247 = tpu.matmul %246, %168, %cst_114 {dimension_numbers = #tpu.dot_dimension_numbers<[1], [0], [0], [1], [0, 0, 1, 1], [], []>} : vector<10x32xf32>, vector<32x32xf32>, vector<10x32xf32> -> vector<10x32xf32>
    %248 = vector.broadcast %170 : vector<1x32xf32> to vector<10x32xf32>
    %249 = arith.addf %247, %248 : vector<10x32xf32>
    %250 = arith.addf %249, %162 : vector<10x32xf32>
    %cst_115 = arith.constant dense<0.000000e+00> : vector<10xf32>
    %251 = vector.multi_reduction <add>, %250, %cst_115 [1] : vector<10x32xf32> to vector<10xf32>
    %252 = vector.shape_cast %251 : vector<10xf32> to vector<10x1xf32>
    %cst_116 = arith.constant 3.200000e+01 : f32
    %253 = vector.broadcast %cst_116 : f32 to vector<10x1xf32>
    %254 = arith.divf %252, %253 : vector<10x1xf32>
    %255 = vector.broadcast %254 : vector<10x1xf32> to vector<10x32xf32>
    %256 = arith.subf %250, %255 : vector<10x32xf32>
    %257 = arith.mulf %256, %256 : vector<10x32xf32>
    %cst_117 = arith.constant dense<0.000000e+00> : vector<10xf32>
    %258 = vector.multi_reduction <add>, %257, %cst_117 [1] : vector<10x32xf32> to vector<10xf32>
    %259 = vector.shape_cast %258 : vector<10xf32> to vector<10x1xf32>
    %cst_118 = arith.constant 3.200000e+01 : f32
    %260 = vector.broadcast %cst_118 : f32 to vector<10x1xf32>
    %261 = arith.divf %259, %260 : vector<10x1xf32>
    %cst_119 = arith.constant 9.99999974E-6 : f32
    %262 = vector.broadcast %cst_119 : f32 to vector<10x1xf32>
    %263 = arith.addf %261, %262 : vector<10x1xf32>
    %264 = math.rsqrt %263 : vector<10x1xf32>
    %265 = vector.broadcast %264 : vector<10x1xf32> to vector<10x32xf32>
    %266 = arith.mulf %256, %265 : vector<10x32xf32>
    %267 = vector.broadcast %172 : vector<1x32xf32> to vector<10x32xf32>
    %268 = arith.mulf %266, %267 : vector<10x32xf32>
    %269 = vector.broadcast %174 : vector<1x32xf32> to vector<10x32xf32>
    %270 = arith.addf %268, %269 : vector<10x32xf32>
    %271 = vector.broadcast %5 : vector<10x1xf32> to vector<10x32xf32>
    %272 = arith.mulf %270, %271 : vector<10x32xf32>
    %c1_120 = arith.constant 1 : index
    %c0_121 = arith.constant 0 : index
    %c0_122 = arith.constant 0 : index
    %273 = vector.load %arg13[%c1_120, %c0_121, %c0_122] : memref<2x32x128xf32, #tpu.memory_space<vmem>>, vector<1x32x128xf32>
    %274 = vector.shape_cast %273 : vector<1x32x128xf32> to vector<32x128xf32>
    %c1_123 = arith.constant 1 : index
    %c0_124 = arith.constant 0 : index
    %c0_125 = arith.constant 0 : index
    %275 = vector.load %arg14[%c1_123, %c0_124, %c0_125] : memref<2x1x128xf32, #tpu.memory_space<vmem>>, vector<1x1x128xf32>
    %276 = vector.shape_cast %275 : vector<1x1x128xf32> to vector<1x128xf32>
    %c1_126 = arith.constant 1 : index
    %c0_127 = arith.constant 0 : index
    %c0_128 = arith.constant 0 : index
    %277 = vector.load %arg15[%c1_126, %c0_127, %c0_128] : memref<2x32x128xf32, #tpu.memory_space<vmem>>, vector<1x32x128xf32>
    %278 = vector.shape_cast %277 : vector<1x32x128xf32> to vector<32x128xf32>
    %c1_129 = arith.constant 1 : index
    %c0_130 = arith.constant 0 : index
    %c0_131 = arith.constant 0 : index
    %279 = vector.load %arg16[%c1_129, %c0_130, %c0_131] : memref<2x1x32xf32, #tpu.memory_space<vmem>>, vector<1x1x32xf32>
    %280 = vector.shape_cast %279 : vector<1x1x32xf32> to vector<1x32xf32>
    %c1_132 = arith.constant 1 : index
    %c0_133 = arith.constant 0 : index
    %c0_134 = arith.constant 0 : index
    %281 = vector.load %arg17[%c1_132, %c0_133, %c0_134] : memref<2x1x32xf32, #tpu.memory_space<vmem>>, vector<1x1x32xf32>
    %282 = vector.shape_cast %281 : vector<1x1x32xf32> to vector<1x32xf32>
    %c1_135 = arith.constant 1 : index
    %c0_136 = arith.constant 0 : index
    %c0_137 = arith.constant 0 : index
    %283 = vector.load %arg18[%c1_135, %c0_136, %c0_137] : memref<2x1x32xf32, #tpu.memory_space<vmem>>, vector<1x1x32xf32>
    %284 = vector.shape_cast %283 : vector<1x1x32xf32> to vector<1x32xf32>
    %cst_138 = arith.constant dense<0.000000e+00> : vector<10x128xf32>
    %285 = tpu.matmul %272, %274, %cst_138 {dimension_numbers = #tpu.dot_dimension_numbers<[1], [0], [0], [1], [0, 0, 1, 1], [], []>} : vector<10x32xf32>, vector<32x128xf32>, vector<10x128xf32> -> vector<10x128xf32>
    %286 = vector.broadcast %276 : vector<1x128xf32> to vector<10x128xf32>
    %287 = arith.addf %285, %286 : vector<10x128xf32>
    %cst_139 = arith.constant 0.000000e+00 : f32
    %288 = vector.broadcast %cst_139 : f32 to vector<10x128xf32>
    %289 = arith.maximumf %287, %288 : vector<10x128xf32>
    %cst_140 = arith.constant dense<0.000000e+00> : vector<10x32xf32>
    %290 = tpu.matmul %289, %278, %cst_140 {dimension_numbers = #tpu.dot_dimension_numbers<[1], [1], [0], [0], [0, 0, 1, 0], [], []>} : vector<10x128xf32>, vector<32x128xf32>, vector<10x32xf32> -> vector<10x32xf32>
    %291 = vector.broadcast %280 : vector<1x32xf32> to vector<10x32xf32>
    %292 = arith.addf %290, %291 : vector<10x32xf32>
    %293 = arith.addf %292, %272 : vector<10x32xf32>
    %cst_141 = arith.constant dense<0.000000e+00> : vector<10xf32>
    %294 = vector.multi_reduction <add>, %293, %cst_141 [1] : vector<10x32xf32> to vector<10xf32>
    %295 = vector.shape_cast %294 : vector<10xf32> to vector<10x1xf32>
    %cst_142 = arith.constant 3.200000e+01 : f32
    %296 = vector.broadcast %cst_142 : f32 to vector<10x1xf32>
    %297 = arith.divf %295, %296 : vector<10x1xf32>
    %298 = vector.broadcast %297 : vector<10x1xf32> to vector<10x32xf32>
    %299 = arith.subf %293, %298 : vector<10x32xf32>
    %300 = arith.mulf %299, %299 : vector<10x32xf32>
    %cst_143 = arith.constant dense<0.000000e+00> : vector<10xf32>
    %301 = vector.multi_reduction <add>, %300, %cst_143 [1] : vector<10x32xf32> to vector<10xf32>
    %302 = vector.shape_cast %301 : vector<10xf32> to vector<10x1xf32>
    %cst_144 = arith.constant 3.200000e+01 : f32
    %303 = vector.broadcast %cst_144 : f32 to vector<10x1xf32>
    %304 = arith.divf %302, %303 : vector<10x1xf32>
    %cst_145 = arith.constant 9.99999974E-6 : f32
    %305 = vector.broadcast %cst_145 : f32 to vector<10x1xf32>
    %306 = arith.addf %304, %305 : vector<10x1xf32>
    %307 = math.rsqrt %306 : vector<10x1xf32>
    %308 = vector.broadcast %307 : vector<10x1xf32> to vector<10x32xf32>
    %309 = arith.mulf %299, %308 : vector<10x32xf32>
    %310 = vector.broadcast %282 : vector<1x32xf32> to vector<10x32xf32>
    %311 = arith.mulf %309, %310 : vector<10x32xf32>
    %312 = vector.broadcast %284 : vector<1x32xf32> to vector<10x32xf32>
    %313 = arith.addf %311, %312 : vector<10x32xf32>
    %314 = vector.broadcast %5 : vector<10x1xf32> to vector<10x32xf32>
    %315 = arith.mulf %313, %314 : vector<10x32xf32>
    %c0_146 = arith.constant 0 : index
    %c0_147 = arith.constant 0 : index
    %c0_148 = arith.constant 0 : index
    %316 = vector.load %arg2[%c0_146, %c0_147, %c0_148] : memref<1x8x32xf32, #tpu.memory_space<vmem>>, vector<1x8x32xf32>
    %317 = vector.shape_cast %316 : vector<1x8x32xf32> to vector<8x32xf32>
    %c0_149 = arith.constant 0 : index
    %c0_150 = arith.constant 0 : index
    %c0_151 = arith.constant 0 : index
    %318 = vector.load %arg19[%c0_149, %c0_150, %c0_151] : memref<2x32x96xf32, #tpu.memory_space<vmem>>, vector<1x32x96xf32>
    %319 = vector.shape_cast %318 : vector<1x32x96xf32> to vector<32x96xf32>
    %c0_152 = arith.constant 0 : index
    %c0_153 = arith.constant 0 : index
    %c0_154 = arith.constant 0 : index
    %320 = vector.load %arg20[%c0_152, %c0_153, %c0_154] : memref<2x1x96xf32, #tpu.memory_space<vmem>>, vector<1x1x96xf32>
    %321 = vector.shape_cast %320 : vector<1x1x96xf32> to vector<1x96xf32>
    %c0_155 = arith.constant 0 : index
    %c0_156 = arith.constant 0 : index
    %c0_157 = arith.constant 0 : index
    %322 = vector.load %arg21[%c0_155, %c0_156, %c0_157] : memref<2x32x32xf32, #tpu.memory_space<vmem>>, vector<1x32x32xf32>
    %323 = vector.shape_cast %322 : vector<1x32x32xf32> to vector<32x32xf32>
    %c0_158 = arith.constant 0 : index
    %c0_159 = arith.constant 0 : index
    %c0_160 = arith.constant 0 : index
    %324 = vector.load %arg22[%c0_158, %c0_159, %c0_160] : memref<2x1x32xf32, #tpu.memory_space<vmem>>, vector<1x1x32xf32>
    %325 = vector.shape_cast %324 : vector<1x1x32xf32> to vector<1x32xf32>
    %c0_161 = arith.constant 0 : index
    %c0_162 = arith.constant 0 : index
    %c0_163 = arith.constant 0 : index
    %326 = vector.load %arg23[%c0_161, %c0_162, %c0_163] : memref<2x1x32xf32, #tpu.memory_space<vmem>>, vector<1x1x32xf32>
    %327 = vector.shape_cast %326 : vector<1x1x32xf32> to vector<1x32xf32>
    %c0_164 = arith.constant 0 : index
    %c0_165 = arith.constant 0 : index
    %c0_166 = arith.constant 0 : index
    %328 = vector.load %arg24[%c0_164, %c0_165, %c0_166] : memref<2x1x32xf32, #tpu.memory_space<vmem>>, vector<1x1x32xf32>
    %329 = vector.shape_cast %328 : vector<1x1x32xf32> to vector<1x32xf32>
    %cst_167 = arith.constant dense<0.000000e+00> : vector<8x96xf32>
    %330 = tpu.matmul %317, %319, %cst_167 {dimension_numbers = #tpu.dot_dimension_numbers<[1], [0], [0], [1], [0, 0, 1, 1], [], []>} : vector<8x32xf32>, vector<32x96xf32>, vector<8x96xf32> -> vector<8x96xf32>
    %331 = vector.broadcast %321 : vector<1x96xf32> to vector<8x96xf32>
    %332 = arith.addf %330, %331 : vector<8x96xf32>
    %333 = vector.extract_strided_slice %332 {offsets = [0, 0], sizes = [8, 8], strides = [1, 1]} : vector<8x96xf32> to vector<8x8xf32>
    %334 = vector.extract_strided_slice %332 {offsets = [0, 32], sizes = [8, 8], strides = [1, 1]} : vector<8x96xf32> to vector<8x8xf32>
    %335 = vector.extract_strided_slice %332 {offsets = [0, 64], sizes = [8, 8], strides = [1, 1]} : vector<8x96xf32> to vector<8x8xf32>
    %cst_168 = arith.constant dense<0.000000e+00> : vector<8x8xf32>
    %336 = tpu.matmul %333, %334, %cst_168 {dimension_numbers = #tpu.dot_dimension_numbers<[1], [1], [0], [0], [0, 0, 1, 0], [], []>} : vector<8x8xf32>, vector<8x8xf32>, vector<8x8xf32> -> vector<8x8xf32>
    %337 = vector.broadcast %3 : vector<1x8xf32> to vector<8x8xf32>
    %338 = arith.addf %336, %337 : vector<8x8xf32>
    %cst_169 = arith.constant dense<0xFF800000> : vector<8xf32>
    %339 = vector.multi_reduction <maximumf>, %338, %cst_169 [1] : vector<8x8xf32> to vector<8xf32>
    %340 = vector.shape_cast %339 : vector<8xf32> to vector<8x1xf32>
    %341 = vector.broadcast %340 : vector<8x1xf32> to vector<8x8xf32>
    %342 = arith.subf %338, %341 : vector<8x8xf32>
    %343 = math.exp %342 : vector<8x8xf32>
    %cst_170 = arith.constant dense<0.000000e+00> : vector<8xf32>
    %344 = vector.multi_reduction <add>, %343, %cst_170 [1] : vector<8x8xf32> to vector<8xf32>
    %345 = vector.shape_cast %344 : vector<8xf32> to vector<8x1xf32>
    %346 = tpu.reciprocal %345 {approx = true} : vector<8x1xf32> -> vector<8x1xf32>
    %347 = vector.broadcast %346 : vector<8x1xf32> to vector<8x8xf32>
    %348 = arith.mulf %343, %347 : vector<8x8xf32>
    %cst_171 = arith.constant dense<0.000000e+00> : vector<8x8xf32>
    %349 = tpu.matmul %348, %335, %cst_171 {dimension_numbers = #tpu.dot_dimension_numbers<[1], [0], [0], [1], [0, 0, 1, 1], [], []>} : vector<8x8xf32>, vector<8x8xf32>, vector<8x8xf32> -> vector<8x8xf32>
    %350 = vector.extract_strided_slice %332 {offsets = [0, 8], sizes = [8, 8], strides = [1, 1]} : vector<8x96xf32> to vector<8x8xf32>
    %351 = vector.extract_strided_slice %332 {offsets = [0, 40], sizes = [8, 8], strides = [1, 1]} : vector<8x96xf32> to vector<8x8xf32>
    %352 = vector.extract_strided_slice %332 {offsets = [0, 72], sizes = [8, 8], strides = [1, 1]} : vector<8x96xf32> to vector<8x8xf32>
    %cst_172 = arith.constant dense<0.000000e+00> : vector<8x8xf32>
    %353 = tpu.matmul %350, %351, %cst_172 {dimension_numbers = #tpu.dot_dimension_numbers<[1], [1], [0], [0], [0, 0, 1, 0], [], []>} : vector<8x8xf32>, vector<8x8xf32>, vector<8x8xf32> -> vector<8x8xf32>
    %354 = vector.broadcast %3 : vector<1x8xf32> to vector<8x8xf32>
    %355 = arith.addf %353, %354 : vector<8x8xf32>
    %cst_173 = arith.constant dense<0xFF800000> : vector<8xf32>
    %356 = vector.multi_reduction <maximumf>, %355, %cst_173 [1] : vector<8x8xf32> to vector<8xf32>
    %357 = vector.shape_cast %356 : vector<8xf32> to vector<8x1xf32>
    %358 = vector.broadcast %357 : vector<8x1xf32> to vector<8x8xf32>
    %359 = arith.subf %355, %358 : vector<8x8xf32>
    %360 = math.exp %359 : vector<8x8xf32>
    %cst_174 = arith.constant dense<0.000000e+00> : vector<8xf32>
    %361 = vector.multi_reduction <add>, %360, %cst_174 [1] : vector<8x8xf32> to vector<8xf32>
    %362 = vector.shape_cast %361 : vector<8xf32> to vector<8x1xf32>
    %363 = tpu.reciprocal %362 {approx = true} : vector<8x1xf32> -> vector<8x1xf32>
    %364 = vector.broadcast %363 : vector<8x1xf32> to vector<8x8xf32>
    %365 = arith.mulf %360, %364 : vector<8x8xf32>
    %cst_175 = arith.constant dense<0.000000e+00> : vector<8x8xf32>
    %366 = tpu.matmul %365, %352, %cst_175 {dimension_numbers = #tpu.dot_dimension_numbers<[1], [0], [0], [1], [0, 0, 1, 1], [], []>} : vector<8x8xf32>, vector<8x8xf32>, vector<8x8xf32> -> vector<8x8xf32>
    %367 = vector.extract_strided_slice %332 {offsets = [0, 16], sizes = [8, 8], strides = [1, 1]} : vector<8x96xf32> to vector<8x8xf32>
    %368 = vector.extract_strided_slice %332 {offsets = [0, 48], sizes = [8, 8], strides = [1, 1]} : vector<8x96xf32> to vector<8x8xf32>
    %369 = vector.extract_strided_slice %332 {offsets = [0, 80], sizes = [8, 8], strides = [1, 1]} : vector<8x96xf32> to vector<8x8xf32>
    %cst_176 = arith.constant dense<0.000000e+00> : vector<8x8xf32>
    %370 = tpu.matmul %367, %368, %cst_176 {dimension_numbers = #tpu.dot_dimension_numbers<[1], [1], [0], [0], [0, 0, 1, 0], [], []>} : vector<8x8xf32>, vector<8x8xf32>, vector<8x8xf32> -> vector<8x8xf32>
    %371 = vector.broadcast %3 : vector<1x8xf32> to vector<8x8xf32>
    %372 = arith.addf %370, %371 : vector<8x8xf32>
    %cst_177 = arith.constant dense<0xFF800000> : vector<8xf32>
    %373 = vector.multi_reduction <maximumf>, %372, %cst_177 [1] : vector<8x8xf32> to vector<8xf32>
    %374 = vector.shape_cast %373 : vector<8xf32> to vector<8x1xf32>
    %375 = vector.broadcast %374 : vector<8x1xf32> to vector<8x8xf32>
    %376 = arith.subf %372, %375 : vector<8x8xf32>
    %377 = math.exp %376 : vector<8x8xf32>
    %cst_178 = arith.constant dense<0.000000e+00> : vector<8xf32>
    %378 = vector.multi_reduction <add>, %377, %cst_178 [1] : vector<8x8xf32> to vector<8xf32>
    %379 = vector.shape_cast %378 : vector<8xf32> to vector<8x1xf32>
    %380 = tpu.reciprocal %379 {approx = true} : vector<8x1xf32> -> vector<8x1xf32>
    %381 = vector.broadcast %380 : vector<8x1xf32> to vector<8x8xf32>
    %382 = arith.mulf %377, %381 : vector<8x8xf32>
    %cst_179 = arith.constant dense<0.000000e+00> : vector<8x8xf32>
    %383 = tpu.matmul %382, %369, %cst_179 {dimension_numbers = #tpu.dot_dimension_numbers<[1], [0], [0], [1], [0, 0, 1, 1], [], []>} : vector<8x8xf32>, vector<8x8xf32>, vector<8x8xf32> -> vector<8x8xf32>
    %384 = vector.extract_strided_slice %332 {offsets = [0, 24], sizes = [8, 8], strides = [1, 1]} : vector<8x96xf32> to vector<8x8xf32>
    %385 = vector.extract_strided_slice %332 {offsets = [0, 56], sizes = [8, 8], strides = [1, 1]} : vector<8x96xf32> to vector<8x8xf32>
    %386 = vector.extract_strided_slice %332 {offsets = [0, 88], sizes = [8, 8], strides = [1, 1]} : vector<8x96xf32> to vector<8x8xf32>
    %cst_180 = arith.constant dense<0.000000e+00> : vector<8x8xf32>
    %387 = tpu.matmul %384, %385, %cst_180 {dimension_numbers = #tpu.dot_dimension_numbers<[1], [1], [0], [0], [0, 0, 1, 0], [], []>} : vector<8x8xf32>, vector<8x8xf32>, vector<8x8xf32> -> vector<8x8xf32>
    %388 = vector.broadcast %3 : vector<1x8xf32> to vector<8x8xf32>
    %389 = arith.addf %387, %388 : vector<8x8xf32>
    %cst_181 = arith.constant dense<0xFF800000> : vector<8xf32>
    %390 = vector.multi_reduction <maximumf>, %389, %cst_181 [1] : vector<8x8xf32> to vector<8xf32>
    %391 = vector.shape_cast %390 : vector<8xf32> to vector<8x1xf32>
    %392 = vector.broadcast %391 : vector<8x1xf32> to vector<8x8xf32>
    %393 = arith.subf %389, %392 : vector<8x8xf32>
    %394 = math.exp %393 : vector<8x8xf32>
    %cst_182 = arith.constant dense<0.000000e+00> : vector<8xf32>
    %395 = vector.multi_reduction <add>, %394, %cst_182 [1] : vector<8x8xf32> to vector<8xf32>
    %396 = vector.shape_cast %395 : vector<8xf32> to vector<8x1xf32>
    %397 = tpu.reciprocal %396 {approx = true} : vector<8x1xf32> -> vector<8x1xf32>
    %398 = vector.broadcast %397 : vector<8x1xf32> to vector<8x8xf32>
    %399 = arith.mulf %394, %398 : vector<8x8xf32>
    %cst_183 = arith.constant dense<0.000000e+00> : vector<8x8xf32>
    %400 = tpu.matmul %399, %386, %cst_183 {dimension_numbers = #tpu.dot_dimension_numbers<[1], [0], [0], [1], [0, 0, 1, 1], [], []>} : vector<8x8xf32>, vector<8x8xf32>, vector<8x8xf32> -> vector<8x8xf32>
    %401 = tpu.concatenate %349, %366, %383, %400 in 1 : vector<8x8xf32>, vector<8x8xf32>, vector<8x8xf32>, vector<8x8xf32> -> vector<8x32xf32>
    %cst_184 = arith.constant dense<0.000000e+00> : vector<8x32xf32>
    %402 = tpu.matmul %401, %323, %cst_184 {dimension_numbers = #tpu.dot_dimension_numbers<[1], [0], [0], [1], [0, 0, 1, 1], [], []>} : vector<8x32xf32>, vector<32x32xf32>, vector<8x32xf32> -> vector<8x32xf32>
    %403 = vector.broadcast %325 : vector<1x32xf32> to vector<8x32xf32>
    %404 = arith.addf %402, %403 : vector<8x32xf32>
    %405 = arith.addf %404, %317 : vector<8x32xf32>
    %cst_185 = arith.constant dense<0.000000e+00> : vector<8xf32>
    %406 = vector.multi_reduction <add>, %405, %cst_185 [1] : vector<8x32xf32> to vector<8xf32>
    %407 = vector.shape_cast %406 : vector<8xf32> to vector<8x1xf32>
    %cst_186 = arith.constant 3.200000e+01 : f32
    %408 = vector.broadcast %cst_186 : f32 to vector<8x1xf32>
    %409 = arith.divf %407, %408 : vector<8x1xf32>
    %410 = vector.broadcast %409 : vector<8x1xf32> to vector<8x32xf32>
    %411 = arith.subf %405, %410 : vector<8x32xf32>
    %412 = arith.mulf %411, %411 : vector<8x32xf32>
    %cst_187 = arith.constant dense<0.000000e+00> : vector<8xf32>
    %413 = vector.multi_reduction <add>, %412, %cst_187 [1] : vector<8x32xf32> to vector<8xf32>
    %414 = vector.shape_cast %413 : vector<8xf32> to vector<8x1xf32>
    %cst_188 = arith.constant 3.200000e+01 : f32
    %415 = vector.broadcast %cst_188 : f32 to vector<8x1xf32>
    %416 = arith.divf %414, %415 : vector<8x1xf32>
    %cst_189 = arith.constant 9.99999974E-6 : f32
    %417 = vector.broadcast %cst_189 : f32 to vector<8x1xf32>
    %418 = arith.addf %416, %417 : vector<8x1xf32>
    %419 = math.rsqrt %418 : vector<8x1xf32>
    %420 = vector.broadcast %419 : vector<8x1xf32> to vector<8x32xf32>
    %421 = arith.mulf %411, %420 : vector<8x32xf32>
    %422 = vector.broadcast %327 : vector<1x32xf32> to vector<8x32xf32>
    %423 = arith.mulf %421, %422 : vector<8x32xf32>
    %424 = vector.broadcast %329 : vector<1x32xf32> to vector<8x32xf32>
    %425 = arith.addf %423, %424 : vector<8x32xf32>
    %426 = vector.broadcast %7 : vector<8x1xf32> to vector<8x32xf32>
    %427 = arith.mulf %425, %426 : vector<8x32xf32>
    %c0_190 = arith.constant 0 : index
    %c0_191 = arith.constant 0 : index
    %c0_192 = arith.constant 0 : index
    %428 = vector.load %arg25[%c0_190, %c0_191, %c0_192] : memref<2x32x96xf32, #tpu.memory_space<vmem>>, vector<1x32x96xf32>
    %429 = vector.shape_cast %428 : vector<1x32x96xf32> to vector<32x96xf32>
    %c0_193 = arith.constant 0 : index
    %c0_194 = arith.constant 0 : index
    %c0_195 = arith.constant 0 : index
    %430 = vector.load %arg26[%c0_193, %c0_194, %c0_195] : memref<2x1x96xf32, #tpu.memory_space<vmem>>, vector<1x1x96xf32>
    %431 = vector.shape_cast %430 : vector<1x1x96xf32> to vector<1x96xf32>
    %c0_196 = arith.constant 0 : index
    %c0_197 = arith.constant 0 : index
    %c0_198 = arith.constant 0 : index
    %432 = vector.load %arg27[%c0_196, %c0_197, %c0_198] : memref<2x32x32xf32, #tpu.memory_space<vmem>>, vector<1x32x32xf32>
    %433 = vector.shape_cast %432 : vector<1x32x32xf32> to vector<32x32xf32>
    %c0_199 = arith.constant 0 : index
    %c0_200 = arith.constant 0 : index
    %c0_201 = arith.constant 0 : index
    %434 = vector.load %arg28[%c0_199, %c0_200, %c0_201] : memref<2x1x32xf32, #tpu.memory_space<vmem>>, vector<1x1x32xf32>
    %435 = vector.shape_cast %434 : vector<1x1x32xf32> to vector<1x32xf32>
    %c0_202 = arith.constant 0 : index
    %c0_203 = arith.constant 0 : index
    %c0_204 = arith.constant 0 : index
    %436 = vector.load %arg29[%c0_202, %c0_203, %c0_204] : memref<2x1x32xf32, #tpu.memory_space<vmem>>, vector<1x1x32xf32>
    %437 = vector.shape_cast %436 : vector<1x1x32xf32> to vector<1x32xf32>
    %c0_205 = arith.constant 0 : index
    %c0_206 = arith.constant 0 : index
    %c0_207 = arith.constant 0 : index
    %438 = vector.load %arg30[%c0_205, %c0_206, %c0_207] : memref<2x1x32xf32, #tpu.memory_space<vmem>>, vector<1x1x32xf32>
    %439 = vector.shape_cast %438 : vector<1x1x32xf32> to vector<1x32xf32>
    %cst_208 = arith.constant dense<0.000000e+00> : vector<8x96xf32>
    %440 = tpu.matmul %427, %429, %cst_208 {dimension_numbers = #tpu.dot_dimension_numbers<[1], [0], [0], [1], [0, 0, 1, 1], [], []>} : vector<8x32xf32>, vector<32x96xf32>, vector<8x96xf32> -> vector<8x96xf32>
    %441 = vector.broadcast %431 : vector<1x96xf32> to vector<8x96xf32>
    %442 = arith.addf %440, %441 : vector<8x96xf32>
    %cst_209 = arith.constant dense<0.000000e+00> : vector<10x96xf32>
    %443 = tpu.matmul %315, %429, %cst_209 {dimension_numbers = #tpu.dot_dimension_numbers<[1], [0], [0], [1], [0, 0, 1, 1], [], []>} : vector<10x32xf32>, vector<32x96xf32>, vector<10x96xf32> -> vector<10x96xf32>
    %444 = vector.broadcast %431 : vector<1x96xf32> to vector<10x96xf32>
    %445 = arith.addf %443, %444 : vector<10x96xf32>
    %446 = vector.extract_strided_slice %442 {offsets = [0, 0], sizes = [8, 8], strides = [1, 1]} : vector<8x96xf32> to vector<8x8xf32>
    %447 = vector.extract_strided_slice %445 {offsets = [0, 32], sizes = [10, 8], strides = [1, 1]} : vector<10x96xf32> to vector<10x8xf32>
    %448 = vector.extract_strided_slice %445 {offsets = [0, 64], sizes = [10, 8], strides = [1, 1]} : vector<10x96xf32> to vector<10x8xf32>
    %cst_210 = arith.constant dense<0.000000e+00> : vector<8x10xf32>
    %449 = tpu.matmul %446, %447, %cst_210 {dimension_numbers = #tpu.dot_dimension_numbers<[1], [1], [0], [0], [0, 0, 1, 0], [], []>} : vector<8x8xf32>, vector<10x8xf32>, vector<8x10xf32> -> vector<8x10xf32>
    %450 = vector.broadcast %1 : vector<1x10xf32> to vector<8x10xf32>
    %451 = arith.addf %449, %450 : vector<8x10xf32>
    %cst_211 = arith.constant dense<0xFF800000> : vector<8xf32>
    %452 = vector.multi_reduction <maximumf>, %451, %cst_211 [1] : vector<8x10xf32> to vector<8xf32>
    %453 = vector.shape_cast %452 : vector<8xf32> to vector<8x1xf32>
    %454 = vector.broadcast %453 : vector<8x1xf32> to vector<8x10xf32>
    %455 = arith.subf %451, %454 : vector<8x10xf32>
    %456 = math.exp %455 : vector<8x10xf32>
    %cst_212 = arith.constant dense<0.000000e+00> : vector<8xf32>
    %457 = vector.multi_reduction <add>, %456, %cst_212 [1] : vector<8x10xf32> to vector<8xf32>
    %458 = vector.shape_cast %457 : vector<8xf32> to vector<8x1xf32>
    %459 = tpu.reciprocal %458 {approx = true} : vector<8x1xf32> -> vector<8x1xf32>
    %460 = vector.broadcast %459 : vector<8x1xf32> to vector<8x10xf32>
    %461 = arith.mulf %456, %460 : vector<8x10xf32>
    %cst_213 = arith.constant dense<0.000000e+00> : vector<8x8xf32>
    %462 = tpu.matmul %461, %448, %cst_213 {dimension_numbers = #tpu.dot_dimension_numbers<[1], [0], [0], [1], [0, 0, 1, 1], [], []>} : vector<8x10xf32>, vector<10x8xf32>, vector<8x8xf32> -> vector<8x8xf32>
    %463 = vector.extract_strided_slice %442 {offsets = [0, 8], sizes = [8, 8], strides = [1, 1]} : vector<8x96xf32> to vector<8x8xf32>
    %464 = vector.extract_strided_slice %445 {offsets = [0, 40], sizes = [10, 8], strides = [1, 1]} : vector<10x96xf32> to vector<10x8xf32>
    %465 = vector.extract_strided_slice %445 {offsets = [0, 72], sizes = [10, 8], strides = [1, 1]} : vector<10x96xf32> to vector<10x8xf32>
    %cst_214 = arith.constant dense<0.000000e+00> : vector<8x10xf32>
    %466 = tpu.matmul %463, %464, %cst_214 {dimension_numbers = #tpu.dot_dimension_numbers<[1], [1], [0], [0], [0, 0, 1, 0], [], []>} : vector<8x8xf32>, vector<10x8xf32>, vector<8x10xf32> -> vector<8x10xf32>
    %467 = vector.broadcast %1 : vector<1x10xf32> to vector<8x10xf32>
    %468 = arith.addf %466, %467 : vector<8x10xf32>
    %cst_215 = arith.constant dense<0xFF800000> : vector<8xf32>
    %469 = vector.multi_reduction <maximumf>, %468, %cst_215 [1] : vector<8x10xf32> to vector<8xf32>
    %470 = vector.shape_cast %469 : vector<8xf32> to vector<8x1xf32>
    %471 = vector.broadcast %470 : vector<8x1xf32> to vector<8x10xf32>
    %472 = arith.subf %468, %471 : vector<8x10xf32>
    %473 = math.exp %472 : vector<8x10xf32>
    %cst_216 = arith.constant dense<0.000000e+00> : vector<8xf32>
    %474 = vector.multi_reduction <add>, %473, %cst_216 [1] : vector<8x10xf32> to vector<8xf32>
    %475 = vector.shape_cast %474 : vector<8xf32> to vector<8x1xf32>
    %476 = tpu.reciprocal %475 {approx = true} : vector<8x1xf32> -> vector<8x1xf32>
    %477 = vector.broadcast %476 : vector<8x1xf32> to vector<8x10xf32>
    %478 = arith.mulf %473, %477 : vector<8x10xf32>
    %cst_217 = arith.constant dense<0.000000e+00> : vector<8x8xf32>
    %479 = tpu.matmul %478, %465, %cst_217 {dimension_numbers = #tpu.dot_dimension_numbers<[1], [0], [0], [1], [0, 0, 1, 1], [], []>} : vector<8x10xf32>, vector<10x8xf32>, vector<8x8xf32> -> vector<8x8xf32>
    %480 = vector.extract_strided_slice %442 {offsets = [0, 16], sizes = [8, 8], strides = [1, 1]} : vector<8x96xf32> to vector<8x8xf32>
    %481 = vector.extract_strided_slice %445 {offsets = [0, 48], sizes = [10, 8], strides = [1, 1]} : vector<10x96xf32> to vector<10x8xf32>
    %482 = vector.extract_strided_slice %445 {offsets = [0, 80], sizes = [10, 8], strides = [1, 1]} : vector<10x96xf32> to vector<10x8xf32>
    %cst_218 = arith.constant dense<0.000000e+00> : vector<8x10xf32>
    %483 = tpu.matmul %480, %481, %cst_218 {dimension_numbers = #tpu.dot_dimension_numbers<[1], [1], [0], [0], [0, 0, 1, 0], [], []>} : vector<8x8xf32>, vector<10x8xf32>, vector<8x10xf32> -> vector<8x10xf32>
    %484 = vector.broadcast %1 : vector<1x10xf32> to vector<8x10xf32>
    %485 = arith.addf %483, %484 : vector<8x10xf32>
    %cst_219 = arith.constant dense<0xFF800000> : vector<8xf32>
    %486 = vector.multi_reduction <maximumf>, %485, %cst_219 [1] : vector<8x10xf32> to vector<8xf32>
    %487 = vector.shape_cast %486 : vector<8xf32> to vector<8x1xf32>
    %488 = vector.broadcast %487 : vector<8x1xf32> to vector<8x10xf32>
    %489 = arith.subf %485, %488 : vector<8x10xf32>
    %490 = math.exp %489 : vector<8x10xf32>
    %cst_220 = arith.constant dense<0.000000e+00> : vector<8xf32>
    %491 = vector.multi_reduction <add>, %490, %cst_220 [1] : vector<8x10xf32> to vector<8xf32>
    %492 = vector.shape_cast %491 : vector<8xf32> to vector<8x1xf32>
    %493 = tpu.reciprocal %492 {approx = true} : vector<8x1xf32> -> vector<8x1xf32>
    %494 = vector.broadcast %493 : vector<8x1xf32> to vector<8x10xf32>
    %495 = arith.mulf %490, %494 : vector<8x10xf32>
    %cst_221 = arith.constant dense<0.000000e+00> : vector<8x8xf32>
    %496 = tpu.matmul %495, %482, %cst_221 {dimension_numbers = #tpu.dot_dimension_numbers<[1], [0], [0], [1], [0, 0, 1, 1], [], []>} : vector<8x10xf32>, vector<10x8xf32>, vector<8x8xf32> -> vector<8x8xf32>
    %497 = vector.extract_strided_slice %442 {offsets = [0, 24], sizes = [8, 8], strides = [1, 1]} : vector<8x96xf32> to vector<8x8xf32>
    %498 = vector.extract_strided_slice %445 {offsets = [0, 56], sizes = [10, 8], strides = [1, 1]} : vector<10x96xf32> to vector<10x8xf32>
    %499 = vector.extract_strided_slice %445 {offsets = [0, 88], sizes = [10, 8], strides = [1, 1]} : vector<10x96xf32> to vector<10x8xf32>
    %cst_222 = arith.constant dense<0.000000e+00> : vector<8x10xf32>
    %500 = tpu.matmul %497, %498, %cst_222 {dimension_numbers = #tpu.dot_dimension_numbers<[1], [1], [0], [0], [0, 0, 1, 0], [], []>} : vector<8x8xf32>, vector<10x8xf32>, vector<8x10xf32> -> vector<8x10xf32>
    %501 = vector.broadcast %1 : vector<1x10xf32> to vector<8x10xf32>
    %502 = arith.addf %500, %501 : vector<8x10xf32>
    %cst_223 = arith.constant dense<0xFF800000> : vector<8xf32>
    %503 = vector.multi_reduction <maximumf>, %502, %cst_223 [1] : vector<8x10xf32> to vector<8xf32>
    %504 = vector.shape_cast %503 : vector<8xf32> to vector<8x1xf32>
    %505 = vector.broadcast %504 : vector<8x1xf32> to vector<8x10xf32>
    %506 = arith.subf %502, %505 : vector<8x10xf32>
    %507 = math.exp %506 : vector<8x10xf32>
    %cst_224 = arith.constant dense<0.000000e+00> : vector<8xf32>
    %508 = vector.multi_reduction <add>, %507, %cst_224 [1] : vector<8x10xf32> to vector<8xf32>
    %509 = vector.shape_cast %508 : vector<8xf32> to vector<8x1xf32>
    %510 = tpu.reciprocal %509 {approx = true} : vector<8x1xf32> -> vector<8x1xf32>
    %511 = vector.broadcast %510 : vector<8x1xf32> to vector<8x10xf32>
    %512 = arith.mulf %507, %511 : vector<8x10xf32>
    %cst_225 = arith.constant dense<0.000000e+00> : vector<8x8xf32>
    %513 = tpu.matmul %512, %499, %cst_225 {dimension_numbers = #tpu.dot_dimension_numbers<[1], [0], [0], [1], [0, 0, 1, 1], [], []>} : vector<8x10xf32>, vector<10x8xf32>, vector<8x8xf32> -> vector<8x8xf32>
    %514 = tpu.concatenate %462, %479, %496, %513 in 1 : vector<8x8xf32>, vector<8x8xf32>, vector<8x8xf32>, vector<8x8xf32> -> vector<8x32xf32>
    %cst_226 = arith.constant dense<0.000000e+00> : vector<8x32xf32>
    %515 = tpu.matmul %514, %433, %cst_226 {dimension_numbers = #tpu.dot_dimension_numbers<[1], [0], [0], [1], [0, 0, 1, 1], [], []>} : vector<8x32xf32>, vector<32x32xf32>, vector<8x32xf32> -> vector<8x32xf32>
    %516 = vector.broadcast %435 : vector<1x32xf32> to vector<8x32xf32>
    %517 = arith.addf %515, %516 : vector<8x32xf32>
    %518 = arith.addf %517, %427 : vector<8x32xf32>
    %cst_227 = arith.constant dense<0.000000e+00> : vector<8xf32>
    %519 = vector.multi_reduction <add>, %518, %cst_227 [1] : vector<8x32xf32> to vector<8xf32>
    %520 = vector.shape_cast %519 : vector<8xf32> to vector<8x1xf32>
    %cst_228 = arith.constant 3.200000e+01 : f32
    %521 = vector.broadcast %cst_228 : f32 to vector<8x1xf32>
    %522 = arith.divf %520, %521 : vector<8x1xf32>
    %523 = vector.broadcast %522 : vector<8x1xf32> to vector<8x32xf32>
    %524 = arith.subf %518, %523 : vector<8x32xf32>
    %525 = arith.mulf %524, %524 : vector<8x32xf32>
    %cst_229 = arith.constant dense<0.000000e+00> : vector<8xf32>
    %526 = vector.multi_reduction <add>, %525, %cst_229 [1] : vector<8x32xf32> to vector<8xf32>
    %527 = vector.shape_cast %526 : vector<8xf32> to vector<8x1xf32>
    %cst_230 = arith.constant 3.200000e+01 : f32
    %528 = vector.broadcast %cst_230 : f32 to vector<8x1xf32>
    %529 = arith.divf %527, %528 : vector<8x1xf32>
    %cst_231 = arith.constant 9.99999974E-6 : f32
    %530 = vector.broadcast %cst_231 : f32 to vector<8x1xf32>
    %531 = arith.addf %529, %530 : vector<8x1xf32>
    %532 = math.rsqrt %531 : vector<8x1xf32>
    %533 = vector.broadcast %532 : vector<8x1xf32> to vector<8x32xf32>
    %534 = arith.mulf %524, %533 : vector<8x32xf32>
    %535 = vector.broadcast %437 : vector<1x32xf32> to vector<8x32xf32>
    %536 = arith.mulf %534, %535 : vector<8x32xf32>
    %537 = vector.broadcast %439 : vector<1x32xf32> to vector<8x32xf32>
    %538 = arith.addf %536, %537 : vector<8x32xf32>
    %539 = vector.broadcast %7 : vector<8x1xf32> to vector<8x32xf32>
    %540 = arith.mulf %538, %539 : vector<8x32xf32>
    %c0_232 = arith.constant 0 : index
    %c0_233 = arith.constant 0 : index
    %c0_234 = arith.constant 0 : index
    %541 = vector.load %arg31[%c0_232, %c0_233, %c0_234] : memref<2x32x128xf32, #tpu.memory_space<vmem>>, vector<1x32x128xf32>
    %542 = vector.shape_cast %541 : vector<1x32x128xf32> to vector<32x128xf32>
    %c0_235 = arith.constant 0 : index
    %c0_236 = arith.constant 0 : index
    %c0_237 = arith.constant 0 : index
    %543 = vector.load %arg32[%c0_235, %c0_236, %c0_237] : memref<2x1x128xf32, #tpu.memory_space<vmem>>, vector<1x1x128xf32>
    %544 = vector.shape_cast %543 : vector<1x1x128xf32> to vector<1x128xf32>
    %c0_238 = arith.constant 0 : index
    %c0_239 = arith.constant 0 : index
    %c0_240 = arith.constant 0 : index
    %545 = vector.load %arg33[%c0_238, %c0_239, %c0_240] : memref<2x32x128xf32, #tpu.memory_space<vmem>>, vector<1x32x128xf32>
    %546 = vector.shape_cast %545 : vector<1x32x128xf32> to vector<32x128xf32>
    %c0_241 = arith.constant 0 : index
    %c0_242 = arith.constant 0 : index
    %c0_243 = arith.constant 0 : index
    %547 = vector.load %arg34[%c0_241, %c0_242, %c0_243] : memref<2x1x32xf32, #tpu.memory_space<vmem>>, vector<1x1x32xf32>
    %548 = vector.shape_cast %547 : vector<1x1x32xf32> to vector<1x32xf32>
    %c0_244 = arith.constant 0 : index
    %c0_245 = arith.constant 0 : index
    %c0_246 = arith.constant 0 : index
    %549 = vector.load %arg35[%c0_244, %c0_245, %c0_246] : memref<2x1x32xf32, #tpu.memory_space<vmem>>, vector<1x1x32xf32>
    %550 = vector.shape_cast %549 : vector<1x1x32xf32> to vector<1x32xf32>
    %c0_247 = arith.constant 0 : index
    %c0_248 = arith.constant 0 : index
    %c0_249 = arith.constant 0 : index
    %551 = vector.load %arg36[%c0_247, %c0_248, %c0_249] : memref<2x1x32xf32, #tpu.memory_space<vmem>>, vector<1x1x32xf32>
    %552 = vector.shape_cast %551 : vector<1x1x32xf32> to vector<1x32xf32>
    %cst_250 = arith.constant dense<0.000000e+00> : vector<8x128xf32>
    %553 = tpu.matmul %540, %542, %cst_250 {dimension_numbers = #tpu.dot_dimension_numbers<[1], [0], [0], [1], [0, 0, 1, 1], [], []>} : vector<8x32xf32>, vector<32x128xf32>, vector<8x128xf32> -> vector<8x128xf32>
    %554 = vector.broadcast %544 : vector<1x128xf32> to vector<8x128xf32>
    %555 = arith.addf %553, %554 : vector<8x128xf32>
    %cst_251 = arith.constant 0.000000e+00 : f32
    %556 = vector.broadcast %cst_251 : f32 to vector<8x128xf32>
    %557 = arith.maximumf %555, %556 : vector<8x128xf32>
    %cst_252 = arith.constant dense<0.000000e+00> : vector<8x32xf32>
    %558 = tpu.matmul %557, %546, %cst_252 {dimension_numbers = #tpu.dot_dimension_numbers<[1], [1], [0], [0], [0, 0, 1, 0], [], []>} : vector<8x128xf32>, vector<32x128xf32>, vector<8x32xf32> -> vector<8x32xf32>
    %559 = vector.broadcast %548 : vector<1x32xf32> to vector<8x32xf32>
    %560 = arith.addf %558, %559 : vector<8x32xf32>
    %561 = arith.addf %560, %540 : vector<8x32xf32>
    %cst_253 = arith.constant dense<0.000000e+00> : vector<8xf32>
    %562 = vector.multi_reduction <add>, %561, %cst_253 [1] : vector<8x32xf32> to vector<8xf32>
    %563 = vector.shape_cast %562 : vector<8xf32> to vector<8x1xf32>
    %cst_254 = arith.constant 3.200000e+01 : f32
    %564 = vector.broadcast %cst_254 : f32 to vector<8x1xf32>
    %565 = arith.divf %563, %564 : vector<8x1xf32>
    %566 = vector.broadcast %565 : vector<8x1xf32> to vector<8x32xf32>
    %567 = arith.subf %561, %566 : vector<8x32xf32>
    %568 = arith.mulf %567, %567 : vector<8x32xf32>
    %cst_255 = arith.constant dense<0.000000e+00> : vector<8xf32>
    %569 = vector.multi_reduction <add>, %568, %cst_255 [1] : vector<8x32xf32> to vector<8xf32>
    %570 = vector.shape_cast %569 : vector<8xf32> to vector<8x1xf32>
    %cst_256 = arith.constant 3.200000e+01 : f32
    %571 = vector.broadcast %cst_256 : f32 to vector<8x1xf32>
    %572 = arith.divf %570, %571 : vector<8x1xf32>
    %cst_257 = arith.constant 9.99999974E-6 : f32
    %573 = vector.broadcast %cst_257 : f32 to vector<8x1xf32>
    %574 = arith.addf %572, %573 : vector<8x1xf32>
    %575 = math.rsqrt %574 : vector<8x1xf32>
    %576 = vector.broadcast %575 : vector<8x1xf32> to vector<8x32xf32>
    %577 = arith.mulf %567, %576 : vector<8x32xf32>
    %578 = vector.broadcast %550 : vector<1x32xf32> to vector<8x32xf32>
    %579 = arith.mulf %577, %578 : vector<8x32xf32>
    %580 = vector.broadcast %552 : vector<1x32xf32> to vector<8x32xf32>
    %581 = arith.addf %579, %580 : vector<8x32xf32>
    %582 = vector.broadcast %7 : vector<8x1xf32> to vector<8x32xf32>
    %583 = arith.mulf %581, %582 : vector<8x32xf32>
    %c1_258 = arith.constant 1 : index
    %c0_259 = arith.constant 0 : index
    %c0_260 = arith.constant 0 : index
    %584 = vector.load %arg19[%c1_258, %c0_259, %c0_260] : memref<2x32x96xf32, #tpu.memory_space<vmem>>, vector<1x32x96xf32>
    %585 = vector.shape_cast %584 : vector<1x32x96xf32> to vector<32x96xf32>
    %c1_261 = arith.constant 1 : index
    %c0_262 = arith.constant 0 : index
    %c0_263 = arith.constant 0 : index
    %586 = vector.load %arg20[%c1_261, %c0_262, %c0_263] : memref<2x1x96xf32, #tpu.memory_space<vmem>>, vector<1x1x96xf32>
    %587 = vector.shape_cast %586 : vector<1x1x96xf32> to vector<1x96xf32>
    %c1_264 = arith.constant 1 : index
    %c0_265 = arith.constant 0 : index
    %c0_266 = arith.constant 0 : index
    %588 = vector.load %arg21[%c1_264, %c0_265, %c0_266] : memref<2x32x32xf32, #tpu.memory_space<vmem>>, vector<1x32x32xf32>
    %589 = vector.shape_cast %588 : vector<1x32x32xf32> to vector<32x32xf32>
    %c1_267 = arith.constant 1 : index
    %c0_268 = arith.constant 0 : index
    %c0_269 = arith.constant 0 : index
    %590 = vector.load %arg22[%c1_267, %c0_268, %c0_269] : memref<2x1x32xf32, #tpu.memory_space<vmem>>, vector<1x1x32xf32>
    %591 = vector.shape_cast %590 : vector<1x1x32xf32> to vector<1x32xf32>
    %c1_270 = arith.constant 1 : index
    %c0_271 = arith.constant 0 : index
    %c0_272 = arith.constant 0 : index
    %592 = vector.load %arg23[%c1_270, %c0_271, %c0_272] : memref<2x1x32xf32, #tpu.memory_space<vmem>>, vector<1x1x32xf32>
    %593 = vector.shape_cast %592 : vector<1x1x32xf32> to vector<1x32xf32>
    %c1_273 = arith.constant 1 : index
    %c0_274 = arith.constant 0 : index
    %c0_275 = arith.constant 0 : index
    %594 = vector.load %arg24[%c1_273, %c0_274, %c0_275] : memref<2x1x32xf32, #tpu.memory_space<vmem>>, vector<1x1x32xf32>
    %595 = vector.shape_cast %594 : vector<1x1x32xf32> to vector<1x32xf32>
    %cst_276 = arith.constant dense<0.000000e+00> : vector<8x96xf32>
    %596 = tpu.matmul %583, %585, %cst_276 {dimension_numbers = #tpu.dot_dimension_numbers<[1], [0], [0], [1], [0, 0, 1, 1], [], []>} : vector<8x32xf32>, vector<32x96xf32>, vector<8x96xf32> -> vector<8x96xf32>
    %597 = vector.broadcast %587 : vector<1x96xf32> to vector<8x96xf32>
    %598 = arith.addf %596, %597 : vector<8x96xf32>
    %599 = vector.extract_strided_slice %598 {offsets = [0, 0], sizes = [8, 8], strides = [1, 1]} : vector<8x96xf32> to vector<8x8xf32>
    %600 = vector.extract_strided_slice %598 {offsets = [0, 32], sizes = [8, 8], strides = [1, 1]} : vector<8x96xf32> to vector<8x8xf32>
    %601 = vector.extract_strided_slice %598 {offsets = [0, 64], sizes = [8, 8], strides = [1, 1]} : vector<8x96xf32> to vector<8x8xf32>
    %cst_277 = arith.constant dense<0.000000e+00> : vector<8x8xf32>
    %602 = tpu.matmul %599, %600, %cst_277 {dimension_numbers = #tpu.dot_dimension_numbers<[1], [1], [0], [0], [0, 0, 1, 0], [], []>} : vector<8x8xf32>, vector<8x8xf32>, vector<8x8xf32> -> vector<8x8xf32>
    %603 = vector.broadcast %3 : vector<1x8xf32> to vector<8x8xf32>
    %604 = arith.addf %602, %603 : vector<8x8xf32>
    %cst_278 = arith.constant dense<0xFF800000> : vector<8xf32>
    %605 = vector.multi_reduction <maximumf>, %604, %cst_278 [1] : vector<8x8xf32> to vector<8xf32>
    %606 = vector.shape_cast %605 : vector<8xf32> to vector<8x1xf32>
    %607 = vector.broadcast %606 : vector<8x1xf32> to vector<8x8xf32>
    %608 = arith.subf %604, %607 : vector<8x8xf32>
    %609 = math.exp %608 : vector<8x8xf32>
    %cst_279 = arith.constant dense<0.000000e+00> : vector<8xf32>
    %610 = vector.multi_reduction <add>, %609, %cst_279 [1] : vector<8x8xf32> to vector<8xf32>
    %611 = vector.shape_cast %610 : vector<8xf32> to vector<8x1xf32>
    %612 = tpu.reciprocal %611 {approx = true} : vector<8x1xf32> -> vector<8x1xf32>
    %613 = vector.broadcast %612 : vector<8x1xf32> to vector<8x8xf32>
    %614 = arith.mulf %609, %613 : vector<8x8xf32>
    %cst_280 = arith.constant dense<0.000000e+00> : vector<8x8xf32>
    %615 = tpu.matmul %614, %601, %cst_280 {dimension_numbers = #tpu.dot_dimension_numbers<[1], [0], [0], [1], [0, 0, 1, 1], [], []>} : vector<8x8xf32>, vector<8x8xf32>, vector<8x8xf32> -> vector<8x8xf32>
    %616 = vector.extract_strided_slice %598 {offsets = [0, 8], sizes = [8, 8], strides = [1, 1]} : vector<8x96xf32> to vector<8x8xf32>
    %617 = vector.extract_strided_slice %598 {offsets = [0, 40], sizes = [8, 8], strides = [1, 1]} : vector<8x96xf32> to vector<8x8xf32>
    %618 = vector.extract_strided_slice %598 {offsets = [0, 72], sizes = [8, 8], strides = [1, 1]} : vector<8x96xf32> to vector<8x8xf32>
    %cst_281 = arith.constant dense<0.000000e+00> : vector<8x8xf32>
    %619 = tpu.matmul %616, %617, %cst_281 {dimension_numbers = #tpu.dot_dimension_numbers<[1], [1], [0], [0], [0, 0, 1, 0], [], []>} : vector<8x8xf32>, vector<8x8xf32>, vector<8x8xf32> -> vector<8x8xf32>
    %620 = vector.broadcast %3 : vector<1x8xf32> to vector<8x8xf32>
    %621 = arith.addf %619, %620 : vector<8x8xf32>
    %cst_282 = arith.constant dense<0xFF800000> : vector<8xf32>
    %622 = vector.multi_reduction <maximumf>, %621, %cst_282 [1] : vector<8x8xf32> to vector<8xf32>
    %623 = vector.shape_cast %622 : vector<8xf32> to vector<8x1xf32>
    %624 = vector.broadcast %623 : vector<8x1xf32> to vector<8x8xf32>
    %625 = arith.subf %621, %624 : vector<8x8xf32>
    %626 = math.exp %625 : vector<8x8xf32>
    %cst_283 = arith.constant dense<0.000000e+00> : vector<8xf32>
    %627 = vector.multi_reduction <add>, %626, %cst_283 [1] : vector<8x8xf32> to vector<8xf32>
    %628 = vector.shape_cast %627 : vector<8xf32> to vector<8x1xf32>
    %629 = tpu.reciprocal %628 {approx = true} : vector<8x1xf32> -> vector<8x1xf32>
    %630 = vector.broadcast %629 : vector<8x1xf32> to vector<8x8xf32>
    %631 = arith.mulf %626, %630 : vector<8x8xf32>
    %cst_284 = arith.constant dense<0.000000e+00> : vector<8x8xf32>
    %632 = tpu.matmul %631, %618, %cst_284 {dimension_numbers = #tpu.dot_dimension_numbers<[1], [0], [0], [1], [0, 0, 1, 1], [], []>} : vector<8x8xf32>, vector<8x8xf32>, vector<8x8xf32> -> vector<8x8xf32>
    %633 = vector.extract_strided_slice %598 {offsets = [0, 16], sizes = [8, 8], strides = [1, 1]} : vector<8x96xf32> to vector<8x8xf32>
    %634 = vector.extract_strided_slice %598 {offsets = [0, 48], sizes = [8, 8], strides = [1, 1]} : vector<8x96xf32> to vector<8x8xf32>
    %635 = vector.extract_strided_slice %598 {offsets = [0, 80], sizes = [8, 8], strides = [1, 1]} : vector<8x96xf32> to vector<8x8xf32>
    %cst_285 = arith.constant dense<0.000000e+00> : vector<8x8xf32>
    %636 = tpu.matmul %633, %634, %cst_285 {dimension_numbers = #tpu.dot_dimension_numbers<[1], [1], [0], [0], [0, 0, 1, 0], [], []>} : vector<8x8xf32>, vector<8x8xf32>, vector<8x8xf32> -> vector<8x8xf32>
    %637 = vector.broadcast %3 : vector<1x8xf32> to vector<8x8xf32>
    %638 = arith.addf %636, %637 : vector<8x8xf32>
    %cst_286 = arith.constant dense<0xFF800000> : vector<8xf32>
    %639 = vector.multi_reduction <maximumf>, %638, %cst_286 [1] : vector<8x8xf32> to vector<8xf32>
    %640 = vector.shape_cast %639 : vector<8xf32> to vector<8x1xf32>
    %641 = vector.broadcast %640 : vector<8x1xf32> to vector<8x8xf32>
    %642 = arith.subf %638, %641 : vector<8x8xf32>
    %643 = math.exp %642 : vector<8x8xf32>
    %cst_287 = arith.constant dense<0.000000e+00> : vector<8xf32>
    %644 = vector.multi_reduction <add>, %643, %cst_287 [1] : vector<8x8xf32> to vector<8xf32>
    %645 = vector.shape_cast %644 : vector<8xf32> to vector<8x1xf32>
    %646 = tpu.reciprocal %645 {approx = true} : vector<8x1xf32> -> vector<8x1xf32>
    %647 = vector.broadcast %646 : vector<8x1xf32> to vector<8x8xf32>
    %648 = arith.mulf %643, %647 : vector<8x8xf32>
    %cst_288 = arith.constant dense<0.000000e+00> : vector<8x8xf32>
    %649 = tpu.matmul %648, %635, %cst_288 {dimension_numbers = #tpu.dot_dimension_numbers<[1], [0], [0], [1], [0, 0, 1, 1], [], []>} : vector<8x8xf32>, vector<8x8xf32>, vector<8x8xf32> -> vector<8x8xf32>
    %650 = vector.extract_strided_slice %598 {offsets = [0, 24], sizes = [8, 8], strides = [1, 1]} : vector<8x96xf32> to vector<8x8xf32>
    %651 = vector.extract_strided_slice %598 {offsets = [0, 56], sizes = [8, 8], strides = [1, 1]} : vector<8x96xf32> to vector<8x8xf32>
    %652 = vector.extract_strided_slice %598 {offsets = [0, 88], sizes = [8, 8], strides = [1, 1]} : vector<8x96xf32> to vector<8x8xf32>
    %cst_289 = arith.constant dense<0.000000e+00> : vector<8x8xf32>
    %653 = tpu.matmul %650, %651, %cst_289 {dimension_numbers = #tpu.dot_dimension_numbers<[1], [1], [0], [0], [0, 0, 1, 0], [], []>} : vector<8x8xf32>, vector<8x8xf32>, vector<8x8xf32> -> vector<8x8xf32>
    %654 = vector.broadcast %3 : vector<1x8xf32> to vector<8x8xf32>
    %655 = arith.addf %653, %654 : vector<8x8xf32>
    %cst_290 = arith.constant dense<0xFF800000> : vector<8xf32>
    %656 = vector.multi_reduction <maximumf>, %655, %cst_290 [1] : vector<8x8xf32> to vector<8xf32>
    %657 = vector.shape_cast %656 : vector<8xf32> to vector<8x1xf32>
    %658 = vector.broadcast %657 : vector<8x1xf32> to vector<8x8xf32>
    %659 = arith.subf %655, %658 : vector<8x8xf32>
    %660 = math.exp %659 : vector<8x8xf32>
    %cst_291 = arith.constant dense<0.000000e+00> : vector<8xf32>
    %661 = vector.multi_reduction <add>, %660, %cst_291 [1] : vector<8x8xf32> to vector<8xf32>
    %662 = vector.shape_cast %661 : vector<8xf32> to vector<8x1xf32>
    %663 = tpu.reciprocal %662 {approx = true} : vector<8x1xf32> -> vector<8x1xf32>
    %664 = vector.broadcast %663 : vector<8x1xf32> to vector<8x8xf32>
    %665 = arith.mulf %660, %664 : vector<8x8xf32>
    %cst_292 = arith.constant dense<0.000000e+00> : vector<8x8xf32>
    %666 = tpu.matmul %665, %652, %cst_292 {dimension_numbers = #tpu.dot_dimension_numbers<[1], [0], [0], [1], [0, 0, 1, 1], [], []>} : vector<8x8xf32>, vector<8x8xf32>, vector<8x8xf32> -> vector<8x8xf32>
    %667 = tpu.concatenate %615, %632, %649, %666 in 1 : vector<8x8xf32>, vector<8x8xf32>, vector<8x8xf32>, vector<8x8xf32> -> vector<8x32xf32>
    %cst_293 = arith.constant dense<0.000000e+00> : vector<8x32xf32>
    %668 = tpu.matmul %667, %589, %cst_293 {dimension_numbers = #tpu.dot_dimension_numbers<[1], [0], [0], [1], [0, 0, 1, 1], [], []>} : vector<8x32xf32>, vector<32x32xf32>, vector<8x32xf32> -> vector<8x32xf32>
    %669 = vector.broadcast %591 : vector<1x32xf32> to vector<8x32xf32>
    %670 = arith.addf %668, %669 : vector<8x32xf32>
    %671 = arith.addf %670, %583 : vector<8x32xf32>
    %cst_294 = arith.constant dense<0.000000e+00> : vector<8xf32>
    %672 = vector.multi_reduction <add>, %671, %cst_294 [1] : vector<8x32xf32> to vector<8xf32>
    %673 = vector.shape_cast %672 : vector<8xf32> to vector<8x1xf32>
    %cst_295 = arith.constant 3.200000e+01 : f32
    %674 = vector.broadcast %cst_295 : f32 to vector<8x1xf32>
    %675 = arith.divf %673, %674 : vector<8x1xf32>
    %676 = vector.broadcast %675 : vector<8x1xf32> to vector<8x32xf32>
    %677 = arith.subf %671, %676 : vector<8x32xf32>
    %678 = arith.mulf %677, %677 : vector<8x32xf32>
    %cst_296 = arith.constant dense<0.000000e+00> : vector<8xf32>
    %679 = vector.multi_reduction <add>, %678, %cst_296 [1] : vector<8x32xf32> to vector<8xf32>
    %680 = vector.shape_cast %679 : vector<8xf32> to vector<8x1xf32>
    %cst_297 = arith.constant 3.200000e+01 : f32
    %681 = vector.broadcast %cst_297 : f32 to vector<8x1xf32>
    %682 = arith.divf %680, %681 : vector<8x1xf32>
    %cst_298 = arith.constant 9.99999974E-6 : f32
    %683 = vector.broadcast %cst_298 : f32 to vector<8x1xf32>
    %684 = arith.addf %682, %683 : vector<8x1xf32>
    %685 = math.rsqrt %684 : vector<8x1xf32>
    %686 = vector.broadcast %685 : vector<8x1xf32> to vector<8x32xf32>
    %687 = arith.mulf %677, %686 : vector<8x32xf32>
    %688 = vector.broadcast %593 : vector<1x32xf32> to vector<8x32xf32>
    %689 = arith.mulf %687, %688 : vector<8x32xf32>
    %690 = vector.broadcast %595 : vector<1x32xf32> to vector<8x32xf32>
    %691 = arith.addf %689, %690 : vector<8x32xf32>
    %692 = vector.broadcast %7 : vector<8x1xf32> to vector<8x32xf32>
    %693 = arith.mulf %691, %692 : vector<8x32xf32>
    %c1_299 = arith.constant 1 : index
    %c0_300 = arith.constant 0 : index
    %c0_301 = arith.constant 0 : index
    %694 = vector.load %arg25[%c1_299, %c0_300, %c0_301] : memref<2x32x96xf32, #tpu.memory_space<vmem>>, vector<1x32x96xf32>
    %695 = vector.shape_cast %694 : vector<1x32x96xf32> to vector<32x96xf32>
    %c1_302 = arith.constant 1 : index
    %c0_303 = arith.constant 0 : index
    %c0_304 = arith.constant 0 : index
    %696 = vector.load %arg26[%c1_302, %c0_303, %c0_304] : memref<2x1x96xf32, #tpu.memory_space<vmem>>, vector<1x1x96xf32>
    %697 = vector.shape_cast %696 : vector<1x1x96xf32> to vector<1x96xf32>
    %c1_305 = arith.constant 1 : index
    %c0_306 = arith.constant 0 : index
    %c0_307 = arith.constant 0 : index
    %698 = vector.load %arg27[%c1_305, %c0_306, %c0_307] : memref<2x32x32xf32, #tpu.memory_space<vmem>>, vector<1x32x32xf32>
    %699 = vector.shape_cast %698 : vector<1x32x32xf32> to vector<32x32xf32>
    %c1_308 = arith.constant 1 : index
    %c0_309 = arith.constant 0 : index
    %c0_310 = arith.constant 0 : index
    %700 = vector.load %arg28[%c1_308, %c0_309, %c0_310] : memref<2x1x32xf32, #tpu.memory_space<vmem>>, vector<1x1x32xf32>
    %701 = vector.shape_cast %700 : vector<1x1x32xf32> to vector<1x32xf32>
    %c1_311 = arith.constant 1 : index
    %c0_312 = arith.constant 0 : index
    %c0_313 = arith.constant 0 : index
    %702 = vector.load %arg29[%c1_311, %c0_312, %c0_313] : memref<2x1x32xf32, #tpu.memory_space<vmem>>, vector<1x1x32xf32>
    %703 = vector.shape_cast %702 : vector<1x1x32xf32> to vector<1x32xf32>
    %c1_314 = arith.constant 1 : index
    %c0_315 = arith.constant 0 : index
    %c0_316 = arith.constant 0 : index
    %704 = vector.load %arg30[%c1_314, %c0_315, %c0_316] : memref<2x1x32xf32, #tpu.memory_space<vmem>>, vector<1x1x32xf32>
    %705 = vector.shape_cast %704 : vector<1x1x32xf32> to vector<1x32xf32>
    %cst_317 = arith.constant dense<0.000000e+00> : vector<8x96xf32>
    %706 = tpu.matmul %693, %695, %cst_317 {dimension_numbers = #tpu.dot_dimension_numbers<[1], [0], [0], [1], [0, 0, 1, 1], [], []>} : vector<8x32xf32>, vector<32x96xf32>, vector<8x96xf32> -> vector<8x96xf32>
    %707 = vector.broadcast %697 : vector<1x96xf32> to vector<8x96xf32>
    %708 = arith.addf %706, %707 : vector<8x96xf32>
    %cst_318 = arith.constant dense<0.000000e+00> : vector<10x96xf32>
    %709 = tpu.matmul %315, %695, %cst_318 {dimension_numbers = #tpu.dot_dimension_numbers<[1], [0], [0], [1], [0, 0, 1, 1], [], []>} : vector<10x32xf32>, vector<32x96xf32>, vector<10x96xf32> -> vector<10x96xf32>
    %710 = vector.broadcast %697 : vector<1x96xf32> to vector<10x96xf32>
    %711 = arith.addf %709, %710 : vector<10x96xf32>
    %712 = vector.extract_strided_slice %708 {offsets = [0, 0], sizes = [8, 8], strides = [1, 1]} : vector<8x96xf32> to vector<8x8xf32>
    %713 = vector.extract_strided_slice %711 {offsets = [0, 32], sizes = [10, 8], strides = [1, 1]} : vector<10x96xf32> to vector<10x8xf32>
    %714 = vector.extract_strided_slice %711 {offsets = [0, 64], sizes = [10, 8], strides = [1, 1]} : vector<10x96xf32> to vector<10x8xf32>
    %cst_319 = arith.constant dense<0.000000e+00> : vector<8x10xf32>
    %715 = tpu.matmul %712, %713, %cst_319 {dimension_numbers = #tpu.dot_dimension_numbers<[1], [1], [0], [0], [0, 0, 1, 0], [], []>} : vector<8x8xf32>, vector<10x8xf32>, vector<8x10xf32> -> vector<8x10xf32>
    %716 = vector.broadcast %1 : vector<1x10xf32> to vector<8x10xf32>
    %717 = arith.addf %715, %716 : vector<8x10xf32>
    %cst_320 = arith.constant dense<0xFF800000> : vector<8xf32>
    %718 = vector.multi_reduction <maximumf>, %717, %cst_320 [1] : vector<8x10xf32> to vector<8xf32>
    %719 = vector.shape_cast %718 : vector<8xf32> to vector<8x1xf32>
    %720 = vector.broadcast %719 : vector<8x1xf32> to vector<8x10xf32>
    %721 = arith.subf %717, %720 : vector<8x10xf32>
    %722 = math.exp %721 : vector<8x10xf32>
    %cst_321 = arith.constant dense<0.000000e+00> : vector<8xf32>
    %723 = vector.multi_reduction <add>, %722, %cst_321 [1] : vector<8x10xf32> to vector<8xf32>
    %724 = vector.shape_cast %723 : vector<8xf32> to vector<8x1xf32>
    %725 = tpu.reciprocal %724 {approx = true} : vector<8x1xf32> -> vector<8x1xf32>
    %726 = vector.broadcast %725 : vector<8x1xf32> to vector<8x10xf32>
    %727 = arith.mulf %722, %726 : vector<8x10xf32>
    %cst_322 = arith.constant dense<0.000000e+00> : vector<8x8xf32>
    %728 = tpu.matmul %727, %714, %cst_322 {dimension_numbers = #tpu.dot_dimension_numbers<[1], [0], [0], [1], [0, 0, 1, 1], [], []>} : vector<8x10xf32>, vector<10x8xf32>, vector<8x8xf32> -> vector<8x8xf32>
    %729 = vector.extract_strided_slice %708 {offsets = [0, 8], sizes = [8, 8], strides = [1, 1]} : vector<8x96xf32> to vector<8x8xf32>
    %730 = vector.extract_strided_slice %711 {offsets = [0, 40], sizes = [10, 8], strides = [1, 1]} : vector<10x96xf32> to vector<10x8xf32>
    %731 = vector.extract_strided_slice %711 {offsets = [0, 72], sizes = [10, 8], strides = [1, 1]} : vector<10x96xf32> to vector<10x8xf32>
    %cst_323 = arith.constant dense<0.000000e+00> : vector<8x10xf32>
    %732 = tpu.matmul %729, %730, %cst_323 {dimension_numbers = #tpu.dot_dimension_numbers<[1], [1], [0], [0], [0, 0, 1, 0], [], []>} : vector<8x8xf32>, vector<10x8xf32>, vector<8x10xf32> -> vector<8x10xf32>
    %733 = vector.broadcast %1 : vector<1x10xf32> to vector<8x10xf32>
    %734 = arith.addf %732, %733 : vector<8x10xf32>
    %cst_324 = arith.constant dense<0xFF800000> : vector<8xf32>
    %735 = vector.multi_reduction <maximumf>, %734, %cst_324 [1] : vector<8x10xf32> to vector<8xf32>
    %736 = vector.shape_cast %735 : vector<8xf32> to vector<8x1xf32>
    %737 = vector.broadcast %736 : vector<8x1xf32> to vector<8x10xf32>
    %738 = arith.subf %734, %737 : vector<8x10xf32>
    %739 = math.exp %738 : vector<8x10xf32>
    %cst_325 = arith.constant dense<0.000000e+00> : vector<8xf32>
    %740 = vector.multi_reduction <add>, %739, %cst_325 [1] : vector<8x10xf32> to vector<8xf32>
    %741 = vector.shape_cast %740 : vector<8xf32> to vector<8x1xf32>
    %742 = tpu.reciprocal %741 {approx = true} : vector<8x1xf32> -> vector<8x1xf32>
    %743 = vector.broadcast %742 : vector<8x1xf32> to vector<8x10xf32>
    %744 = arith.mulf %739, %743 : vector<8x10xf32>
    %cst_326 = arith.constant dense<0.000000e+00> : vector<8x8xf32>
    %745 = tpu.matmul %744, %731, %cst_326 {dimension_numbers = #tpu.dot_dimension_numbers<[1], [0], [0], [1], [0, 0, 1, 1], [], []>} : vector<8x10xf32>, vector<10x8xf32>, vector<8x8xf32> -> vector<8x8xf32>
    %746 = vector.extract_strided_slice %708 {offsets = [0, 16], sizes = [8, 8], strides = [1, 1]} : vector<8x96xf32> to vector<8x8xf32>
    %747 = vector.extract_strided_slice %711 {offsets = [0, 48], sizes = [10, 8], strides = [1, 1]} : vector<10x96xf32> to vector<10x8xf32>
    %748 = vector.extract_strided_slice %711 {offsets = [0, 80], sizes = [10, 8], strides = [1, 1]} : vector<10x96xf32> to vector<10x8xf32>
    %cst_327 = arith.constant dense<0.000000e+00> : vector<8x10xf32>
    %749 = tpu.matmul %746, %747, %cst_327 {dimension_numbers = #tpu.dot_dimension_numbers<[1], [1], [0], [0], [0, 0, 1, 0], [], []>} : vector<8x8xf32>, vector<10x8xf32>, vector<8x10xf32> -> vector<8x10xf32>
    %750 = vector.broadcast %1 : vector<1x10xf32> to vector<8x10xf32>
    %751 = arith.addf %749, %750 : vector<8x10xf32>
    %cst_328 = arith.constant dense<0xFF800000> : vector<8xf32>
    %752 = vector.multi_reduction <maximumf>, %751, %cst_328 [1] : vector<8x10xf32> to vector<8xf32>
    %753 = vector.shape_cast %752 : vector<8xf32> to vector<8x1xf32>
    %754 = vector.broadcast %753 : vector<8x1xf32> to vector<8x10xf32>
    %755 = arith.subf %751, %754 : vector<8x10xf32>
    %756 = math.exp %755 : vector<8x10xf32>
    %cst_329 = arith.constant dense<0.000000e+00> : vector<8xf32>
    %757 = vector.multi_reduction <add>, %756, %cst_329 [1] : vector<8x10xf32> to vector<8xf32>
    %758 = vector.shape_cast %757 : vector<8xf32> to vector<8x1xf32>
    %759 = tpu.reciprocal %758 {approx = true} : vector<8x1xf32> -> vector<8x1xf32>
    %760 = vector.broadcast %759 : vector<8x1xf32> to vector<8x10xf32>
    %761 = arith.mulf %756, %760 : vector<8x10xf32>
    %cst_330 = arith.constant dense<0.000000e+00> : vector<8x8xf32>
    %762 = tpu.matmul %761, %748, %cst_330 {dimension_numbers = #tpu.dot_dimension_numbers<[1], [0], [0], [1], [0, 0, 1, 1], [], []>} : vector<8x10xf32>, vector<10x8xf32>, vector<8x8xf32> -> vector<8x8xf32>
    %763 = vector.extract_strided_slice %708 {offsets = [0, 24], sizes = [8, 8], strides = [1, 1]} : vector<8x96xf32> to vector<8x8xf32>
    %764 = vector.extract_strided_slice %711 {offsets = [0, 56], sizes = [10, 8], strides = [1, 1]} : vector<10x96xf32> to vector<10x8xf32>
    %765 = vector.extract_strided_slice %711 {offsets = [0, 88], sizes = [10, 8], strides = [1, 1]} : vector<10x96xf32> to vector<10x8xf32>
    %cst_331 = arith.constant dense<0.000000e+00> : vector<8x10xf32>
    %766 = tpu.matmul %763, %764, %cst_331 {dimension_numbers = #tpu.dot_dimension_numbers<[1], [1], [0], [0], [0, 0, 1, 0], [], []>} : vector<8x8xf32>, vector<10x8xf32>, vector<8x10xf32> -> vector<8x10xf32>
    %767 = vector.broadcast %1 : vector<1x10xf32> to vector<8x10xf32>
    %768 = arith.addf %766, %767 : vector<8x10xf32>
    %cst_332 = arith.constant dense<0xFF800000> : vector<8xf32>
    %769 = vector.multi_reduction <maximumf>, %768, %cst_332 [1] : vector<8x10xf32> to vector<8xf32>
    %770 = vector.shape_cast %769 : vector<8xf32> to vector<8x1xf32>
    %771 = vector.broadcast %770 : vector<8x1xf32> to vector<8x10xf32>
    %772 = arith.subf %768, %771 : vector<8x10xf32>
    %773 = math.exp %772 : vector<8x10xf32>
    %cst_333 = arith.constant dense<0.000000e+00> : vector<8xf32>
    %774 = vector.multi_reduction <add>, %773, %cst_333 [1] : vector<8x10xf32> to vector<8xf32>
    %775 = vector.shape_cast %774 : vector<8xf32> to vector<8x1xf32>
    %776 = tpu.reciprocal %775 {approx = true} : vector<8x1xf32> -> vector<8x1xf32>
    %777 = vector.broadcast %776 : vector<8x1xf32> to vector<8x10xf32>
    %778 = arith.mulf %773, %777 : vector<8x10xf32>
    %cst_334 = arith.constant dense<0.000000e+00> : vector<8x8xf32>
    %779 = tpu.matmul %778, %765, %cst_334 {dimension_numbers = #tpu.dot_dimension_numbers<[1], [0], [0], [1], [0, 0, 1, 1], [], []>} : vector<8x10xf32>, vector<10x8xf32>, vector<8x8xf32> -> vector<8x8xf32>
    %780 = tpu.concatenate %728, %745, %762, %779 in 1 : vector<8x8xf32>, vector<8x8xf32>, vector<8x8xf32>, vector<8x8xf32> -> vector<8x32xf32>
    %cst_335 = arith.constant dense<0.000000e+00> : vector<8x32xf32>
    %781 = tpu.matmul %780, %699, %cst_335 {dimension_numbers = #tpu.dot_dimension_numbers<[1], [0], [0], [1], [0, 0, 1, 1], [], []>} : vector<8x32xf32>, vector<32x32xf32>, vector<8x32xf32> -> vector<8x32xf32>
    %782 = vector.broadcast %701 : vector<1x32xf32> to vector<8x32xf32>
    %783 = arith.addf %781, %782 : vector<8x32xf32>
    %784 = arith.addf %783, %693 : vector<8x32xf32>
    %cst_336 = arith.constant dense<0.000000e+00> : vector<8xf32>
    %785 = vector.multi_reduction <add>, %784, %cst_336 [1] : vector<8x32xf32> to vector<8xf32>
    %786 = vector.shape_cast %785 : vector<8xf32> to vector<8x1xf32>
    %cst_337 = arith.constant 3.200000e+01 : f32
    %787 = vector.broadcast %cst_337 : f32 to vector<8x1xf32>
    %788 = arith.divf %786, %787 : vector<8x1xf32>
    %789 = vector.broadcast %788 : vector<8x1xf32> to vector<8x32xf32>
    %790 = arith.subf %784, %789 : vector<8x32xf32>
    %791 = arith.mulf %790, %790 : vector<8x32xf32>
    %cst_338 = arith.constant dense<0.000000e+00> : vector<8xf32>
    %792 = vector.multi_reduction <add>, %791, %cst_338 [1] : vector<8x32xf32> to vector<8xf32>
    %793 = vector.shape_cast %792 : vector<8xf32> to vector<8x1xf32>
    %cst_339 = arith.constant 3.200000e+01 : f32
    %794 = vector.broadcast %cst_339 : f32 to vector<8x1xf32>
    %795 = arith.divf %793, %794 : vector<8x1xf32>
    %cst_340 = arith.constant 9.99999974E-6 : f32
    %796 = vector.broadcast %cst_340 : f32 to vector<8x1xf32>
    %797 = arith.addf %795, %796 : vector<8x1xf32>
    %798 = math.rsqrt %797 : vector<8x1xf32>
    %799 = vector.broadcast %798 : vector<8x1xf32> to vector<8x32xf32>
    %800 = arith.mulf %790, %799 : vector<8x32xf32>
    %801 = vector.broadcast %703 : vector<1x32xf32> to vector<8x32xf32>
    %802 = arith.mulf %800, %801 : vector<8x32xf32>
    %803 = vector.broadcast %705 : vector<1x32xf32> to vector<8x32xf32>
    %804 = arith.addf %802, %803 : vector<8x32xf32>
    %805 = vector.broadcast %7 : vector<8x1xf32> to vector<8x32xf32>
    %806 = arith.mulf %804, %805 : vector<8x32xf32>
    %c1_341 = arith.constant 1 : index
    %c0_342 = arith.constant 0 : index
    %c0_343 = arith.constant 0 : index
    %807 = vector.load %arg31[%c1_341, %c0_342, %c0_343] : memref<2x32x128xf32, #tpu.memory_space<vmem>>, vector<1x32x128xf32>
    %808 = vector.shape_cast %807 : vector<1x32x128xf32> to vector<32x128xf32>
    %c1_344 = arith.constant 1 : index
    %c0_345 = arith.constant 0 : index
    %c0_346 = arith.constant 0 : index
    %809 = vector.load %arg32[%c1_344, %c0_345, %c0_346] : memref<2x1x128xf32, #tpu.memory_space<vmem>>, vector<1x1x128xf32>
    %810 = vector.shape_cast %809 : vector<1x1x128xf32> to vector<1x128xf32>
    %c1_347 = arith.constant 1 : index
    %c0_348 = arith.constant 0 : index
    %c0_349 = arith.constant 0 : index
    %811 = vector.load %arg33[%c1_347, %c0_348, %c0_349] : memref<2x32x128xf32, #tpu.memory_space<vmem>>, vector<1x32x128xf32>
    %812 = vector.shape_cast %811 : vector<1x32x128xf32> to vector<32x128xf32>
    %c1_350 = arith.constant 1 : index
    %c0_351 = arith.constant 0 : index
    %c0_352 = arith.constant 0 : index
    %813 = vector.load %arg34[%c1_350, %c0_351, %c0_352] : memref<2x1x32xf32, #tpu.memory_space<vmem>>, vector<1x1x32xf32>
    %814 = vector.shape_cast %813 : vector<1x1x32xf32> to vector<1x32xf32>
    %c1_353 = arith.constant 1 : index
    %c0_354 = arith.constant 0 : index
    %c0_355 = arith.constant 0 : index
    %815 = vector.load %arg35[%c1_353, %c0_354, %c0_355] : memref<2x1x32xf32, #tpu.memory_space<vmem>>, vector<1x1x32xf32>
    %816 = vector.shape_cast %815 : vector<1x1x32xf32> to vector<1x32xf32>
    %c1_356 = arith.constant 1 : index
    %c0_357 = arith.constant 0 : index
    %c0_358 = arith.constant 0 : index
    %817 = vector.load %arg36[%c1_356, %c0_357, %c0_358] : memref<2x1x32xf32, #tpu.memory_space<vmem>>, vector<1x1x32xf32>
    %818 = vector.shape_cast %817 : vector<1x1x32xf32> to vector<1x32xf32>
    %cst_359 = arith.constant dense<0.000000e+00> : vector<8x128xf32>
    %819 = tpu.matmul %806, %808, %cst_359 {dimension_numbers = #tpu.dot_dimension_numbers<[1], [0], [0], [1], [0, 0, 1, 1], [], []>} : vector<8x32xf32>, vector<32x128xf32>, vector<8x128xf32> -> vector<8x128xf32>
    %820 = vector.broadcast %810 : vector<1x128xf32> to vector<8x128xf32>
    %821 = arith.addf %819, %820 : vector<8x128xf32>
    %cst_360 = arith.constant 0.000000e+00 : f32
    %822 = vector.broadcast %cst_360 : f32 to vector<8x128xf32>
    %823 = arith.maximumf %821, %822 : vector<8x128xf32>
    %cst_361 = arith.constant dense<0.000000e+00> : vector<8x32xf32>
    %824 = tpu.matmul %823, %812, %cst_361 {dimension_numbers = #tpu.dot_dimension_numbers<[1], [1], [0], [0], [0, 0, 1, 0], [], []>} : vector<8x128xf32>, vector<32x128xf32>, vector<8x32xf32> -> vector<8x32xf32>
    %825 = vector.broadcast %814 : vector<1x32xf32> to vector<8x32xf32>
    %826 = arith.addf %824, %825 : vector<8x32xf32>
    %827 = arith.addf %826, %806 : vector<8x32xf32>
    %cst_362 = arith.constant dense<0.000000e+00> : vector<8xf32>
    %828 = vector.multi_reduction <add>, %827, %cst_362 [1] : vector<8x32xf32> to vector<8xf32>
    %829 = vector.shape_cast %828 : vector<8xf32> to vector<8x1xf32>
    %cst_363 = arith.constant 3.200000e+01 : f32
    %830 = vector.broadcast %cst_363 : f32 to vector<8x1xf32>
    %831 = arith.divf %829, %830 : vector<8x1xf32>
    %832 = vector.broadcast %831 : vector<8x1xf32> to vector<8x32xf32>
    %833 = arith.subf %827, %832 : vector<8x32xf32>
    %834 = arith.mulf %833, %833 : vector<8x32xf32>
    %cst_364 = arith.constant dense<0.000000e+00> : vector<8xf32>
    %835 = vector.multi_reduction <add>, %834, %cst_364 [1] : vector<8x32xf32> to vector<8xf32>
    %836 = vector.shape_cast %835 : vector<8xf32> to vector<8x1xf32>
    %cst_365 = arith.constant 3.200000e+01 : f32
    %837 = vector.broadcast %cst_365 : f32 to vector<8x1xf32>
    %838 = arith.divf %836, %837 : vector<8x1xf32>
    %cst_366 = arith.constant 9.99999974E-6 : f32
    %839 = vector.broadcast %cst_366 : f32 to vector<8x1xf32>
    %840 = arith.addf %838, %839 : vector<8x1xf32>
    %841 = math.rsqrt %840 : vector<8x1xf32>
    %842 = vector.broadcast %841 : vector<8x1xf32> to vector<8x32xf32>
    %843 = arith.mulf %833, %842 : vector<8x32xf32>
    %844 = vector.broadcast %816 : vector<1x32xf32> to vector<8x32xf32>
    %845 = arith.mulf %843, %844 : vector<8x32xf32>
    %846 = vector.broadcast %818 : vector<1x32xf32> to vector<8x32xf32>
    %847 = arith.addf %845, %846 : vector<8x32xf32>
    %848 = vector.broadcast %7 : vector<8x1xf32> to vector<8x32xf32>
    %849 = arith.mulf %847, %848 : vector<8x32xf32>
    %850 = vector.extract_strided_slice %849 {offsets = [0, 0], sizes = [1, 32], strides = [1, 1]} : vector<8x32xf32> to vector<1x32xf32>
    %c0_367 = arith.constant 0 : index
    %c0_368 = arith.constant 0 : index
    %851 = vector.load %arg37[%c0_367, %c0_368] : memref<32x128xf32, #tpu.memory_space<vmem>>, vector<32x128xf32>
    %cst_369 = arith.constant dense<0.000000e+00> : vector<1x128xf32>
    %852 = tpu.matmul %850, %851, %cst_369 {dimension_numbers = #tpu.dot_dimension_numbers<[1], [0], [0], [1], [0, 0, 1, 1], [], []>} : vector<1x32xf32>, vector<32x128xf32>, vector<1x128xf32> -> vector<1x128xf32>
    %c0_370 = arith.constant 0 : index
    %c0_371 = arith.constant 0 : index
    %853 = vector.load %arg38[%c0_370, %c0_371] : memref<1x128xf32, #tpu.memory_space<vmem>>, vector<1x128xf32>
    %854 = arith.addf %852, %853 : vector<1x128xf32>
    %c0_372 = arith.constant 0 : index
    %c0_373 = arith.constant 0 : index
    %c0_374 = arith.constant 0 : index
    %855 = vector.load %arg39[%c0_372, %c0_373, %c0_374] : memref<1x1x128xf32, #tpu.memory_space<vmem>>, vector<1x1x128xf32>
    %856 = vector.shape_cast %855 : vector<1x1x128xf32> to vector<1x128xf32>
    %857 = vector.shape_cast %854 : vector<1x128xf32> to vector<1x1x128xf32>
    tpu.vector_store %arg39[%c0_372, %c0_373, %c0_374], %857 {strides = array<i32>} : memref<1x1x128xf32, #tpu.memory_space<vmem>>, vector<1x1x128xf32>,
    return
  }
  func.func @transform_0(%arg0: i32) -> (i32, i32, i32) {
    %c0_i32 = arith.constant 0 : i32
    %c0_i32_0 = arith.constant 0 : i32
    %c0_i32_1 = arith.constant 0 : i32
    return %arg0, %c0_i32, %c0_i32_0 : i32, i32, i32
  }
  func.func @transform_1(%arg0: i32) -> (i32, i32, i32) {
    %c0_i32 = arith.constant 0 : i32
    %c0_i32_0 = arith.constant 0 : i32
    %c0_i32_1 = arith.constant 0 : i32
    return %arg0, %c0_i32, %c0_i32_0 : i32, i32, i32
  }
  func.func @transform_2(%arg0: i32) -> (i32, i32, i32) {
    %c0_i32 = arith.constant 0 : i32
    %c0_i32_0 = arith.constant 0 : i32
    %c0_i32_1 = arith.constant 0 : i32
    return %arg0, %c0_i32, %c0_i32_0 : i32, i32, i32
  }
  func.func @transform_3(%arg0: i32) -> (i32, i32, i32) {
    %c0_i32 = arith.constant 0 : i32
    %c0_i32_0 = arith.constant 0 : i32
    %c0_i32_1 = arith.constant 0 : i32
    return %arg0, %c0_i32, %c0_i32_0 : i32, i32, i32
  }
  func.func @transform_4(%arg0: i32) -> (i32, i32, i32) {
    %c0_i32 = arith.constant 0 : i32
    %c0_i32_0 = arith.constant 0 : i32
    %c0_i32_1 = arith.constant 0 : i32
    return %arg0, %c0_i32, %c0_i32_0 : i32, i32, i32
  }
  func.func @transform_5(%arg0: i32) -> (i32, i32, i32) {
    %c0_i32 = arith.constant 0 : i32
    %c0_i32_0 = arith.constant 0 : i32
    %c0_i32_1 = arith.constant 0 : i32
    return %arg0, %c0_i32, %c0_i32_0 : i32, i32, i32
  }
  func.func @transform_6(%arg0: i32) -> (i32, i32, i32) {
    %c0_i32 = arith.constant 0 : i32
    %c0_i32_0 = arith.constant 0 : i32
    %c0_i32_1 = arith.constant 0 : i32
    %c0_i32_2 = arith.constant 0 : i32
    return %c0_i32, %c0_i32_0, %c0_i32_1 : i32, i32, i32
  }
  func.func @transform_7(%arg0: i32) -> (i32, i32, i32) {
    %c0_i32 = arith.constant 0 : i32
    %c0_i32_0 = arith.constant 0 : i32
    %c0_i32_1 = arith.constant 0 : i32
    %c0_i32_2 = arith.constant 0 : i32
    return %c0_i32, %c0_i32_0, %c0_i32_1 : i32, i32, i32
  }
  func.func @transform_8(%arg0: i32) -> (i32, i32, i32) {
    %c0_i32 = arith.constant 0 : i32
    %c0_i32_0 = arith.constant 0 : i32
    %c0_i32_1 = arith.constant 0 : i32
    %c0_i32_2 = arith.constant 0 : i32
    return %c0_i32, %c0_i32_0, %c0_i32_1 : i32, i32, i32
  }
  func.func @transform_9(%arg0: i32) -> (i32, i32, i32) {
    %c0_i32 = arith.constant 0 : i32
    %c0_i32_0 = arith.constant 0 : i32
    %c0_i32_1 = arith.constant 0 : i32
    %c0_i32_2 = arith.constant 0 : i32
    return %c0_i32, %c0_i32_0, %c0_i32_1 : i32, i32, i32
  }
  func.func @transform_10(%arg0: i32) -> (i32, i32, i32) {
    %c0_i32 = arith.constant 0 : i32
    %c0_i32_0 = arith.constant 0 : i32
    %c0_i32_1 = arith.constant 0 : i32
    %c0_i32_2 = arith.constant 0 : i32
    return %c0_i32, %c0_i32_0, %c0_i32_1 : i32, i32, i32
  }
  func.func @transform_11(%arg0: i32) -> (i32, i32, i32) {
    %c0_i32 = arith.constant 0 : i32
    %c0_i32_0 = arith.constant 0 : i32
    %c0_i32_1 = arith.constant 0 : i32
    %c0_i32_2 = arith.constant 0 : i32
    return %c0_i32, %c0_i32_0, %c0_i32_1 : i32, i32, i32
  }
  func.func @transform_12(%arg0: i32) -> (i32, i32, i32) {
    %c0_i32 = arith.constant 0 : i32
    %c0_i32_0 = arith.constant 0 : i32
    %c0_i32_1 = arith.constant 0 : i32
    %c0_i32_2 = arith.constant 0 : i32
    return %c0_i32, %c0_i32_0, %c0_i32_1 : i32, i32, i32
  }
  func.func @transform_13(%arg0: i32) -> (i32, i32, i32) {
    %c0_i32 = arith.constant 0 : i32
    %c0_i32_0 = arith.constant 0 : i32
    %c0_i32_1 = arith.constant 0 : i32
    %c0_i32_2 = arith.constant 0 : i32
    return %c0_i32, %c0_i32_0, %c0_i32_1 : i32, i32, i32
  }
  func.func @transform_14(%arg0: i32) -> (i32, i32, i32) {
    %c0_i32 = arith.constant 0 : i32
    %c0_i32_0 = arith.constant 0 : i32
    %c0_i32_1 = arith.constant 0 : i32
    %c0_i32_2 = arith.constant 0 : i32
    return %c0_i32, %c0_i32_0, %c0_i32_1 : i32, i32, i32
  }
  func.func @transform_15(%arg0: i32) -> (i32, i32, i32) {
    %c0_i32 = arith.constant 0 : i32
    %c0_i32_0 = arith.constant 0 : i32
    %c0_i32_1 = arith.constant 0 : i32
    %c0_i32_2 = arith.constant 0 : i32
    return %c0_i32, %c0_i32_0, %c0_i32_1 : i32, i32, i32
  }
  func.func @transform_16(%arg0: i32) -> (i32, i32, i32) {
    %c0_i32 = arith.constant 0 : i32
    %c0_i32_0 = arith.constant 0 : i32
    %c0_i32_1 = arith.constant 0 : i32
    %c0_i32_2 = arith.constant 0 : i32
    return %c0_i32, %c0_i32_0, %c0_i32_1 : i32, i32, i32
  }
  func.func @transform_17(%arg0: i32) -> (i32, i32, i32) {
    %c0_i32 = arith.constant 0 : i32
    %c0_i32_0 = arith.constant 0 : i32
    %c0_i32_1 = arith.constant 0 : i32
    %c0_i32_2 = arith.constant 0 : i32
    return %c0_i32, %c0_i32_0, %c0_i32_1 : i32, i32, i32
  }
  func.func @transform_18(%arg0: i32) -> (i32, i32, i32) {
    %c0_i32 = arith.constant 0 : i32
    %c0_i32_0 = arith.constant 0 : i32
    %c0_i32_1 = arith.constant 0 : i32
    %c0_i32_2 = arith.constant 0 : i32
    return %c0_i32, %c0_i32_0, %c0_i32_1 : i32, i32, i32
  }
  func.func @transform_19(%arg0: i32) -> (i32, i32, i32) {
    %c0_i32 = arith.constant 0 : i32
    %c0_i32_0 = arith.constant 0 : i32
    %c0_i32_1 = arith.constant 0 : i32
    %c0_i32_2 = arith.constant 0 : i32
    return %c0_i32, %c0_i32_0, %c0_i32_1 : i32, i32, i32
  }
  func.func @transform_20(%arg0: i32) -> (i32, i32, i32) {
    %c0_i32 = arith.constant 0 : i32
    %c0_i32_0 = arith.constant 0 : i32
    %c0_i32_1 = arith.constant 0 : i32
    %c0_i32_2 = arith.constant 0 : i32
    return %c0_i32, %c0_i32_0, %c0_i32_1 : i32, i32, i32
  }
  func.func @transform_21(%arg0: i32) -> (i32, i32, i32) {
    %c0_i32 = arith.constant 0 : i32
    %c0_i32_0 = arith.constant 0 : i32
    %c0_i32_1 = arith.constant 0 : i32
    %c0_i32_2 = arith.constant 0 : i32
    return %c0_i32, %c0_i32_0, %c0_i32_1 : i32, i32, i32
  }
  func.func @transform_22(%arg0: i32) -> (i32, i32, i32) {
    %c0_i32 = arith.constant 0 : i32
    %c0_i32_0 = arith.constant 0 : i32
    %c0_i32_1 = arith.constant 0 : i32
    %c0_i32_2 = arith.constant 0 : i32
    return %c0_i32, %c0_i32_0, %c0_i32_1 : i32, i32, i32
  }
  func.func @transform_23(%arg0: i32) -> (i32, i32, i32) {
    %c0_i32 = arith.constant 0 : i32
    %c0_i32_0 = arith.constant 0 : i32
    %c0_i32_1 = arith.constant 0 : i32
    %c0_i32_2 = arith.constant 0 : i32
    return %c0_i32, %c0_i32_0, %c0_i32_1 : i32, i32, i32
  }
  func.func @transform_24(%arg0: i32) -> (i32, i32, i32) {
    %c0_i32 = arith.constant 0 : i32
    %c0_i32_0 = arith.constant 0 : i32
    %c0_i32_1 = arith.constant 0 : i32
    %c0_i32_2 = arith.constant 0 : i32
    return %c0_i32, %c0_i32_0, %c0_i32_1 : i32, i32, i32
  }
  func.func @transform_25(%arg0: i32) -> (i32, i32, i32) {
    %c0_i32 = arith.constant 0 : i32
    %c0_i32_0 = arith.constant 0 : i32
    %c0_i32_1 = arith.constant 0 : i32
    %c0_i32_2 = arith.constant 0 : i32
    return %c0_i32, %c0_i32_0, %c0_i32_1 : i32, i32, i32
  }
  func.func @transform_26(%arg0: i32) -> (i32, i32, i32) {
    %c0_i32 = arith.constant 0 : i32
    %c0_i32_0 = arith.constant 0 : i32
    %c0_i32_1 = arith.constant 0 : i32
    %c0_i32_2 = arith.constant 0 : i32
    return %c0_i32, %c0_i32_0, %c0_i32_1 : i32, i32, i32
  }
  func.func @transform_27(%arg0: i32) -> (i32, i32, i32) {
    %c0_i32 = arith.constant 0 : i32
    %c0_i32_0 = arith.constant 0 : i32
    %c0_i32_1 = arith.constant 0 : i32
    %c0_i32_2 = arith.constant 0 : i32
    return %c0_i32, %c0_i32_0, %c0_i32_1 : i32, i32, i32
  }
  func.func @transform_28(%arg0: i32) -> (i32, i32, i32) {
    %c0_i32 = arith.constant 0 : i32
    %c0_i32_0 = arith.constant 0 : i32
    %c0_i32_1 = arith.constant 0 : i32
    %c0_i32_2 = arith.constant 0 : i32
    return %c0_i32, %c0_i32_0, %c0_i32_1 : i32, i32, i32
  }
  func.func @transform_29(%arg0: i32) -> (i32, i32, i32) {
    %c0_i32 = arith.constant 0 : i32
    %c0_i32_0 = arith.constant 0 : i32
    %c0_i32_1 = arith.constant 0 : i32
    %c0_i32_2 = arith.constant 0 : i32
    return %c0_i32, %c0_i32_0, %c0_i32_1 : i32, i32, i32
  }
  func.func @transform_30(%arg0: i32) -> (i32, i32, i32) {
    %c0_i32 = arith.constant 0 : i32
    %c0_i32_0 = arith.constant 0 : i32
    %c0_i32_1 = arith.constant 0 : i32
    %c0_i32_2 = arith.constant 0 : i32
    return %c0_i32, %c0_i32_0, %c0_i32_1 : i32, i32, i32
  }
  func.func @transform_31(%arg0: i32) -> (i32, i32, i32) {
    %c0_i32 = arith.constant 0 : i32
    %c0_i32_0 = arith.constant 0 : i32
    %c0_i32_1 = arith.constant 0 : i32
    %c0_i32_2 = arith.constant 0 : i32
    return %c0_i32, %c0_i32_0, %c0_i32_1 : i32, i32, i32
  }
  func.func @transform_32(%arg0: i32) -> (i32, i32, i32) {
    %c0_i32 = arith.constant 0 : i32
    %c0_i32_0 = arith.constant 0 : i32
    %c0_i32_1 = arith.constant 0 : i32
    %c0_i32_2 = arith.constant 0 : i32
    return %c0_i32, %c0_i32_0, %c0_i32_1 : i32, i32, i32
  }
  func.func @transform_33(%arg0: i32) -> (i32, i32, i32) {
    %c0_i32 = arith.constant 0 : i32
    %c0_i32_0 = arith.constant 0 : i32
    %c0_i32_1 = arith.constant 0 : i32
    %c0_i32_2 = arith.constant 0 : i32
    return %c0_i32, %c0_i32_0, %c0_i32_1 : i32, i32, i32
  }
  func.func @transform_34(%arg0: i32) -> (i32, i32, i32) {
    %c0_i32 = arith.constant 0 : i32
    %c0_i32_0 = arith.constant 0 : i32
    %c0_i32_1 = arith.constant 0 : i32
    %c0_i32_2 = arith.constant 0 : i32
    return %c0_i32, %c0_i32_0, %c0_i32_1 : i32, i32, i32
  }
  func.func @transform_35(%arg0: i32) -> (i32, i32, i32) {
    %c0_i32 = arith.constant 0 : i32
    %c0_i32_0 = arith.constant 0 : i32
    %c0_i32_1 = arith.constant 0 : i32
    %c0_i32_2 = arith.constant 0 : i32
    return %c0_i32, %c0_i32_0, %c0_i32_1 : i32, i32, i32
  }
  func.func @transform_36(%arg0: i32) -> (i32, i32) {
    %c0_i32 = arith.constant 0 : i32
    %c0_i32_0 = arith.constant 0 : i32
    %c0_i32_1 = arith.constant 0 : i32
    return %c0_i32, %c0_i32_0 : i32, i32
  }
  func.func @transform_37(%arg0: i32) -> (i32, i32) {
    %c0_i32 = arith.constant 0 : i32
    %c0_i32_0 = arith.constant 0 : i32
    %c0_i32_1 = arith.constant 0 : i32
    return %c0_i32, %c0_i32_0 : i32, i32
  }
  func.func @transform_38(%arg0: i32) -> (i32, i32, i32) {
    %c0_i32 = arith.constant 0 : i32
    %c0_i32_0 = arith.constant 0 : i32
    %c0_i32_1 = arith.constant 0 : i32
    return %arg0, %c0_i32, %c0_i32_0 : i32, i32, i32
  }
}

</mosaic_0001>

<bundles_post_ra>
// kernel: ranker_forward.1
= control target key start
LH: loop header
LB: loop body
LE: loop exit
PB: predicated region body
PF: predicated region fallthrough
CT: control target
= control target key end

     0   :  { %s9649_s6 = smov 1   ;;  %s9650_s10 = smov 2   ;;  %s11017_s0 = inlined_call_operand.smem [shape: u32[39], index: -1, kind: input, shape index: {}] }
   0x1   :  { %s9713_s5 = sld [smem:[%s11017_s0]]   ;;  %s9651_s14 = smov 3  }
   0x2   :  { %s9718_s9 = sld [smem:[%s11017_s0 + %s9649_s6]]   ;;  %s9652_s18 = smov 4  }
   0x3   :  { %s9723_s13 = sld [smem:[%s11017_s0 + %s9650_s10]]   ;;  %s9653_s22 = smov 5  }
   0x4   :  { %s9728_s17 = sld [smem:[%s11017_s0 + %s9651_s14]]   ;;  %s9654_s26 = smov 6  }
   0x5   :  { %s9733_s21 = sld [smem:[%s11017_s0 + %s9652_s18]]   ;;  %s9655_s30 = smov 7  }
   0x6   :  { %s9738_s25 = sld [smem:[%s11017_s0 + %s9653_s22]]   ;;  %s9656_s4 = smov 8  }
   0x7   :  { %11091 = sst [smem:[#allocation5_spill]] %s9713_s5  ;;  %s9657_s10 = smov 9  }
   0x8   :  { %11092 = sst [smem:[#allocation6_spill]] %s9718_s9  ;;  %s9658_s15 = smov 10  }
   0x9   :  { %11093 = sst [smem:[#allocation7_spill]] %s9723_s13  ;;  %s9659_s20 = smov 11  }
   0xa   :  { %11094 = sst [smem:[#allocation8_spill]] %s9728_s17  ;;  %s9661_s1 = smov 13  }
   0xb   :  { %11095 = sst [smem:[#allocation9_spill]] %s9733_s21  ;;  %s9662_s7 = smov 14  }
   0xc   :  { %11096 = sst [smem:[#allocation10_spill]] %s9738_s25  ;;  %s9664_s22 = smov 16  }
   0xd   :  { %s9743_s29 = sld [smem:[%s11017_s0 + %s9654_s26]]   ;;  %s9660_s26 = smov 12  }
   0xe   :  { %s9748_s3 = sld [smem:[%s11017_s0 + %s9655_s30]]   ;;  %s9665_s28 = smov 17  }
   0xf   :  { %s9753_s8 = sld [smem:[%s11017_s0 + %s9656_s4]]  }
  0x10   :  { %s9758_s14 = sld [smem:[%s11017_s0 + %s9657_s10]]  }
  0x11   :  { %s9763_s19 = sld [smem:[%s11017_s0 + %s9658_s15]]   ;;  %s9663_s15 = smov 15  }
  0x12   :  { %s9768_s24 = sld [smem:[%s11017_s0 + %s9659_s20]]  }
  0x13   :  { %11097 = sst [smem:[#allocation11_spill]] %s9743_s29 }
  0x14   :  { %11098 = sst [smem:[#allocation12_spill]] %s9748_s3 }
  0x15   :  { %11099 = sst [smem:[#allocation13_spill]] %s9753_s8 }
  0x16   :  { %11100 = sst [smem:[#allocation14_spill]] %s9758_s14 }
  0x17   :  { %11101 = sst [smem:[#allocation15_spill]] %s9763_s19 }
  0x18   :  { %11102 = sst [smem:[#allocation16_spill]] %s9768_s24 }
  0x19   :  { %s9773_s30 = sld [smem:[%s11017_s0 + %s9660_s26]]  }
  0x1a   :  { %s9778_s6 = sld [smem:[%s11017_s0 + %s9661_s1]]  }
  0x1b   :  { %s9783_s12 = sld [smem:[%s11017_s0 + %s9662_s7]]   ;;  %s9666_s7 = smov 18  }
  0x1c   :  { %s9788_s20 = sld [smem:[%s11017_s0 + %s9663_s15]]   ;;  %s9667_s15 = smov 19  }
  0x1d   :  { %s9793_s27 = sld [smem:[%s11017_s0 + %s9664_s22]]   ;;  %s9668_s22 = smov 20  }
  0x1e   :  { %s9798_s4 = sld [smem:[%s11017_s0 + %s9665_s28]]   ;;  %s9669_s28 = smov 21  }
  0x1f   :  { %11103 = sst [smem:[#allocation17_spill]] %s9773_s30 }
  0x20   :  { %11104 = sst [smem:[#allocation18_spill]] %s9778_s6 }
  0x21   :  { %11105 = sst [smem:[#allocation19_spill]] %s9783_s12 }
  0x22   :  { %11106 = sst [smem:[#allocation20_spill]] %s9788_s20 }
  0x23   :  { %11107 = sst [smem:[#allocation21_spill]] %s9793_s27 }
  0x24   :  { %11108 = sst [smem:[#allocation22_spill]] %s9798_s4 }
  0x25   :  { %s9803_s25 = sld [smem:[%s11017_s0 + %s9666_s7]]   ;;  %s9670_s7 = smov 22  }
  0x26   :  { %s9808_s17 = sld [smem:[%s11017_s0 + %s9667_s15]]   ;;  %s9671_s15 = smov 23  }
  0x27   :  { %s9813_s9 = sld [smem:[%s11017_s0 + %s9668_s22]]   ;;  %s9672_s22 = smov 24  }
  0x28   :  { %s9818_s4 = sld [smem:[%s11017_s0 + %s9669_s28]]   ;;  %s9673_s28 = smov 25  }
  0x2b   :  { %11109 = sst [smem:[#allocation23_spill]] %s9803_s25 }
  0x2c   :  { %11110 = sst [smem:[#allocation24_spill]] %s9808_s17 }
  0x2d   :  { %11111 = sst [smem:[#allocation25_spill]] %s9813_s9 }
  0x2e   :  { %11112 = sst [smem:[#allocation26_spill]] %s9818_s4 }
  0x2f   :  { %s9823_s25 = sld [smem:[%s11017_s0 + %s9670_s7]]   ;;  %s9674_s7 = smov 26  }
  0x30   :  { %s9828_s17 = sld [smem:[%s11017_s0 + %s9671_s15]]   ;;  %s9675_s15 = smov 27  }
  0x31   :  { %s9833_s9 = sld [smem:[%s11017_s0 + %s9672_s22]]   ;;  %s9676_s22 = smov 28  }
  0x32   :  { %s9838_s4 = sld [smem:[%s11017_s0 + %s9673_s28]]   ;;  %s9677_s28 = smov 29  }
  0x35   :  { %11113 = sst [smem:[#allocation27_spill]] %s9823_s25 }
  0x36   :  { %11114 = sst [smem:[#allocation28_spill]] %s9828_s17 }
  0x37   :  { %11115 = sst [smem:[#allocation29_spill]] %s9833_s9 }
  0x38   :  { %11116 = sst [smem:[#allocation30_spill]] %s9838_s4 }
  0x39   :  { %s9843_s25 = sld [smem:[%s11017_s0 + %s9674_s7]]   ;;  %s9678_s7 = smov 30  }
  0x3a   :  { %s9848_s17 = sld [smem:[%s11017_s0 + %s9675_s15]]   ;;  %s9679_s15 = smov 31  }
  0x3b   :  { %s9853_s9 = sld [smem:[%s11017_s0 + %s9676_s22]]   ;;  %s9680_s22 = smov 32  }
  0x3c   :  { %s9858_s4 = sld [smem:[%s11017_s0 + %s9677_s28]]   ;;  %s9681_s28 = smov 33  }
  0x3f   :  { %11117 = sst [smem:[#allocation31_spill]] %s9843_s25 }
  0x40   :  { %11118 = sst [smem:[#allocation32_spill]] %s9848_s17 }
  0x41   :  { %11119 = sst [smem:[#allocation33_spill]] %s9853_s9 }
  0x42   :  { %11120 = sst [smem:[#allocation34_spill]] %s9858_s4 }
  0x43   :  { %s9863_s25 = sld [smem:[%s11017_s0 + %s9678_s7]]   ;;  %s9682_s7 = smov 34  }
  0x44   :  { %s9868_s17 = sld [smem:[%s11017_s0 + %s9679_s15]]   ;;  %s9683_s15 = smov 35  }
  0x45   :  { %s9873_s9 = sld [smem:[%s11017_s0 + %s9680_s22]]   ;;  %s9684_s22 = smov 36  }
  0x46   :  { %s9878_s4 = sld [smem:[%s11017_s0 + %s9681_s28]]   ;;  %s9685_s28 = smov 37  }
  0x49   :  { %11121 = sst [smem:[#allocation35_spill]] %s9863_s25 }
  0x4a   :  { %11122 = sst [smem:[#allocation36_spill]] %s9868_s17 }
  0x4b   :  { %11123 = sst [smem:[#allocation37_spill]] %s9873_s9 }
  0x4c   :  { %11124 = sst [smem:[#allocation38_spill]] %s9878_s4 }
  0x4d   :  { %s9883_s25 = sld [smem:[%s11017_s0 + %s9682_s7]]   ;;  %s9686_s7 = smov 38  }
  0x4e   :  { %s9888_s17 = sld [smem:[%s11017_s0 + %s9683_s15]]  }
  0x4f   :  { %s9893_s9 = sld [smem:[%s11017_s0 + %s9684_s22]]  }
  0x50   :  { %s9898_s4 = sld [smem:[%s11017_s0 + %s9685_s28]]  }
  0x53   :  { %11125 = sst [smem:[#allocation39_spill]] %s9883_s25 }
  0x54   :  { %s9903_s25 = sld [smem:[%s11017_s0 + %s9686_s7]]  }
  0x55   :  { %11126 = sst [smem:[#allocation40_spill]] %s9893_s9 }
  0x56   :  { %11127 = sst [smem:[#allocation41_spill]] %s9898_s4 }
  0x5a   :  { %11128 = sst [smem:[#allocation42_spill]] %s9903_s25 }
  0x5b   :  { %82 = vsyncpa [#allocation3], 0 }
  0x5c   :  { %84 = vsyncpa [#allocation3 + $0x1], 0  ;;  %s9905_s15 = smov 0   ;;  %s9907_s16 = smov 0  }
  0x5d   :  { %s9909_s18 = smov 0   ;;  %s9911_s22 = smov 0  }
  0x5e LB: > { %s11129_s27 = sld [smem:[#allocation21_spill]]  ;;  %s9926_s0 = sadd.s32 4294967295, %s9647_s22   ;;  %s9643_s18 = sphi %s9909_s18, %s11208_s18   ;;  %s9639_s16 = sphi %s9907_s16, %s11207_s16   ;;  %s9635_s15 = sphi %s9905_s15, %s11206_s15   ;;  %s9647_s22 = sphi %s9911_s22, %s11205_s22  }
  0x5f   : > { %s11130_s20 = sld [smem:[#allocation20_spill]]  ;;  %s8241_s23 = sadd.s32 4294967294, %s9647_s22  }
  0x60   : > { %s11131_s12 = sld [smem:[#allocation19_spill]]  ;;  %s9930_s26 = sadd.s32 1, %s9647_s22  }
  0x61   : > { %s11132_s6 = sld [smem:[#allocation18_spill]]  ;;  %s925_s28 = sadd.s32 1, %s9643_s18 }
  0x62   : > { %s11133_s30 = sld [smem:[#allocation17_spill]]  ;;  %s922_s1 = ssub.s32 %s9647_s22, %s9930_s26 }
  0x63   : > { %s11134_s24 = sld [smem:[#allocation16_spill]]  ;;  %p935_p0 = scmp.ne.s32.totalorder %s9643_s18, %s9639_s16 }
  0x64   : > { %s11135_s19 = sld [smem:[#allocation15_spill]]  ;;  %p923_p1 = scmp.eq.s32.totalorder %s922_s1, 0 }
  0x65   : > { %s11136_s14 = sld [smem:[#allocation14_spill]]  ;;  %p936_p2 = scmp.eq.s32.totalorder %s9926_s0, 1 }
  0x66   : > { %s11137_s8 = sld [smem:[#allocation13_spill]]  ;;  %p941_p3 = scmp.ne.s32.totalorder %s9639_s16, %s9635_s15 }
  0x67   : > { %s11138_s29 = sld [smem:[#allocation11_spill]]  ;;  %p942_p4 = scmp.eq.s32.totalorder %s8241_s23, 1 }
  0x68   : > { %s11139_s3 = sld [smem:[#allocation12_spill]]  ;;  %p9943_p5 = por %p936_p2, %p935_p0 }
  0x69   : > { %11140 = sst [smem:[#allocation43_spill]] %s9635_s15  ;;  %p9947_p6 = por %p942_p4, %p941_p3 }
  0x6a   : > { %11141 = sst [smem:[#allocation44_spill]] %s9639_s16  ;;  %p8244_p7 = scmp.ge.s32.totalorder %s9647_s22, 1 }
  0x6b   : > { %11142 = sst [smem:[#allocation45_spill]] %s9643_s18  ;;  %p1098_p8 = scmp.lt.s32.totalorder %s9647_s22, 3 }
  0x6c   : > { %11143 = sst [smem:[#allocation46_spill]] %s9647_s22 }
  0x6d   : > { %11144 = sst [smem:[#allocation47_spill]] %s9926_s0  ;;  %p1099_p9 = pnand %p8244_p7, %p1098_p8 }
  0x6e   : > { %11145 = sst [smem:[#allocation48_spill]] %s9930_s26  ;;  %p1210_p10 = scmp.lt.s32.totalorder (!%p1099_p9), %s9926_s0, 1 }
  0x6f   : > { %s9941_s2 = scalar_select %p923_p1, %s9643_s18, %s925_s28  }
  0x70   : > { %s11147_s7 = scalar_select %p9943_p5, 1, 0 }
  0x71   : > { %11146 = sst [smem:[#allocation49_spill]] %s9941_s2  ;;  %1102 = sbr.rel (%p1099_p9) target bundleno = 17097 (0x42c9), region = 172 }
  0x72   : > { %11148 = sst [smem:[#allocation50_spill]] %s11147_s7  ;;  %s11036_s1 = smov (!%p1099_p9), 96  }
  0x73   : > { %s11149_s10 = scalar_select %p9947_p6, 1, 0 }
  0x74   : > { %s11151_s5 = sld [smem:[#allocation5_spill]] (!%p1099_p9)  ;;  %s11162_s2 = smov (!%p1099_p9), 112  }
  0x75   : > { %11150 = sst [smem:[#allocation51_spill]] %s11149_s10  ;;  %s11163_s18 = smov (!%p1099_p9), 48  }
  0x76   : > { %v1244_v0 = vld [vmem:[%s11138_s29 + $0x18] sm:$0xff]  ;;  %v1243_v1 = vld [vmem:[%s11138_s29 + $0x10] sm:$0xff]  ;;  %v1242_v2 = vld [vmem:[%s11138_s29 + $0x8] sm:$0xff]  ;;  %s9958_s11 = scalar_select %p1210_p10, %s9926_s0, 1  ;;  %vm1259_vm0 = vcmask 261120   ;;  %vm1353_vm1 = vcmask 64512  }
  0x77   : > { %8774 = vmatprep.subr.mxu0 %v1244_v0  ;;  %v1241_v3 = vld [vmem:[%s11138_s29] sm:$0xff]  ;;  %s11152_s13 = sld [smem:[#allocation7_spill]]  ;;  %vm1437_vm2 = vcmask 80896   ;;  %vm1441_vm3 = vcmask 74752   ;;  %vm1472_vm4 = vcmask 1041408   ;;  %vm2179_vm5 = vcmask 130048  }
  0x78   : > { %8775 = vmatpush3.msra.mxu0 %v1244_v0  ;;  %s11038_s23 = sshll.u32 %s9958_s11, 4  ;;  %v8251_v6 = vld [vmem:[%s11139_s3] ss:$0 sm:$0xff]  ;;  %vm2182_vm6 = vcmask 195584   ;;  %s11153_s21 = sld [smem:[#allocation9_spill]]  ;;  %vm2277_vm7 = vcmask 254976  }
  0x79   : > { %8776 = vmatprep.subr.mxu0 %v1243_v1  ;;  %s11164_s26 = smov 72   ;;  %s11165_s10 = smov 104   ;;  %vm9703_vm8 = vmmov 0  }
  0x7a   : > { %8777 = vmatpush3.msra.mxu0 %v1243_v1  ;;  %s1214_s28 = scalar_lea.vmem %s11151_s5, %s11038_s23  ;;  %s11041_s23 = smov 120  }
  0x7b   : > { %8778 = vmatprep.subr.mxu0 %v1242_v2  ;;  %v9965_v4 = vld [vmem:[%s1214_s28] sm:$0xff]  ;;  %v9967_v5 = vld [vmem:[%s1214_s28 + $0x8] sm:$0x3]  ;;  %s11043_s5 = smov 88   ;;  %s11166_s15 = smov 40  }
  0x7c   : > { %8779 = vmatpush3.msra.mxu0 %v1242_v2  ;;  %8782 = vmatprep.mubr.msk.f32.mxu0 %vm1259_vm0, %v9965_v4  ;;  %s11167_s22 = smov 8   ;;  %s11168_s7 = smov 16  }
  0x7d   : > { %8780 = vmatprep.subr.mxu0 %v1241_v3  ;;  %s9992_s28 = scalar_lea.vmem %s11152_s13, %s9958_s11  ;;  %s11159_s13 = smov 64  }
  0x7e   : > { %8781 = vmatpush3.msra.mxu0 %v1241_v3  ;;  %v9995_v14 = vld [vmem:[%s9992_s28] ss:$0 sm:$0xff]  ;;  %s11169_s25 = smov 24   ;;  %s11178_s0 = sld [smem:[#allocation29_spill]] }
  0x7f   : > { %8783 = vmatmul.mubr.msk.f32.vlgmr.msra.gmra.mxu0 %vm1259_vm0, %v9967_v5  ;;  %s11185_s4 = sld [smem:[#allocation37_spill]] }
  0x80   : > { %s11186_s16 = sld [smem:[#allocation33_spill]] }
  0x81   : > { %s11189_s9 = sld [smem:[#allocation38_spill]] }
 0x13f   : > { %v8784_v7 = vpop.f32.mrf.mxu0 }
 0x140   : > { %v9974_v8 = vadd.f32 %v8784_v7, %v8251_v6 }
 0x141   : > { %v1332_v9 = vpop.f32.mrf.mxu0 }
 0x142   : > { %v9976_v10 = vadd.f32 %v8251_v6, %v1332_v9  ;;  %1351 = vrot.lane.b32.xlu0 %v9974_v8, %s11036_s1 }
 0x144   : > { %8789 = vmatprep.mubr.msk.f32.mxu1 %vm1353_vm1, %v9976_v10 }
 0x146   : > { %1349 = vrot.lane.b32.xlu0 %v9976_v10, %s11036_s1  ;;  %s11039_s1 = smov 64  }
 0x1b4   : > { %v1352_v11 = vpop.permute.xlu0 %1351 }
 0x1b5   : > { %8785 = vmatprep.subr.msk.mxu1 %vm1353_vm1, %v1352_v11 }
 0x1b6   : > { %8786 = vmatpush3.xpose.msk.msra.mxu1 %vm1353_vm1, %v1352_v11 }
 0x1b8   : > { %v1350_v12 = vpop.permute.xlu0 %1349 }
 0x1b9   : > { %8787 = vmatprep.subr.msk.mxu1 %vm1353_vm1, %v1350_v12 }
 0x1ba   : > { %8788 = vmatpush3.xpose.msk.msra.mxu1 %vm1353_vm1, %v1350_v12 }
 0x1bd   : > { %8790 = vmatmul.mubr.msk.f32.vlgmr.msra.gmra.mxu1 %vm1353_vm1, %v9974_v8 }
 0x27d   : > { %v8791_v13 = vpop.f32.mrf.mxu1 }
 0x27e   : > { %v1434_v17 = vadd.f32 %v8791_v13, %v9995_v14 }
 0x27f   : > { %v1428_v15 = vpop.f32.mrf.mxu1 }
 0x280   : > { %v1429_v16 = vadd.f32 %v9995_v14, %v1428_v15  ;;  %v1442_v19 = vsel %vm1441_vm3, %v1434_v17, -inf }
 0x282   : > { %v1438_v18 = vsel %vm1437_vm2, %v1429_v16, -inf }
 0x283   : > { %1439 = vmax.xlane.f32.xlu1 %v1438_v18 }
 0x287   : > { %1443 = vmax.xlane.f32.xlu1 %v1442_v19 }
 0x30c   : > { %v1440_v20 = vpop.xlane.xlu1 %1439 }
 0x30d   : > { %v1445_v21 = vsub.f32 %v1429_v16, %v1440_v20 }
 0x30f   : > { %v1447_v22 = vmul.f32 1.442695, %v1445_v21 }
 0x310   : > { %v1444_v23 = vpop.xlane.xlu1 %1443 }
 0x311   : > { %9427 = vpow2.f32 %v1447_v22  ;;  %v1446_v24 = vsub.f32 %v1434_v17, %v1444_v23 }
 0x313   : > { %v1449_v25 = vmul.f32 1.442695, %v1446_v24 }
 0x315   : > { %9429 = vpow2.f32 %v1449_v25 }
 0x31e   : > { %v9428_v26 = vpop.eup %9427 }
 0x31f   : > { %v1451_v27 = vsel %vm1437_vm2, %v9428_v26, 0.0 }
 0x320   : > { %1452 = vadd.xlane.f32.xlu0 %v1451_v27 }
 0x322   : > { %v9430_v28 = vpop.eup %9429 }
 0x323   : > { %v1454_v29 = vsel %vm1441_vm3, %v9430_v28, 0.0 }
 0x324   : > { %1455 = vadd.xlane.f32.xlu1 %v1454_v29 }
 0x335   : > { %1463 = vrot.lane.b32.xlu1 %v9974_v8, %s11039_s1 }
 0x336   : > { %1550 = vrot.lane.b32.xlu0 %v9976_v10, %s11041_s23 }
 0x339   : > { %1461 = vrot.lane.b32.xlu1 %v9976_v10, %s11039_s1  ;;  %s11049_s1 = smov 56  }
 0x33d   : > { %1556 = vrot.lane.b32.xlu1 %v9974_v8, %s11043_s5 }
 0x341   : > { %1554 = vrot.lane.b32.xlu1 %v9976_v10, %s11043_s5  ;;  %s11045_s5 = smov 112  }
 0x345   : > { %1552 = vrot.lane.b32.xlu1 %v9974_v8, %s11041_s23  ;;  %s11047_s23 = smov 80  }
 0x3a9   : > { %v1453_v30 = vpop.xlane.xlu0 %1452 }
 0x3aa   : > { %9431 = vrcp.f32 %v1453_v30 }
 0x3ad   : > { %v1456_v31 = vpop.xlane.xlu1 %1455  ;;  %v1551_v40 = vpop.permute.xlu0 %1550 }
 0x3ae   : > { %9433 = vrcp.f32 %v1456_v31 }
 0x3b1   : > { %v1464_v32 = vpop.permute.xlu1 %1463 }
 0x3b2   : > { %8792 = vmatprep.subr.msk.mxu1 %vm1472_vm4, %v1464_v32 }
 0x3b3   : > { %8793 = vmatpush3.msk.msra.mxu1 %vm1472_vm4, %v1464_v32 }
 0x3b5   : > { %v1462_v33 = vpop.permute.xlu1 %1461 }
 0x3b6   : > { %8794 = vmatprep.subr.mxu1 %v1462_v33 }
 0x3b7   : > { %v9432_v34 = vpop.eup %9431  ;;  %8795 = vmatpush3.msra.mxu1 %v1462_v33 }
 0x3b8   : > { %v1459_v35 = vmul.f32 %v9432_v34, %v9428_v26 }
 0x3b9   : > { %v1557_v36 = vpop.permute.xlu1 %1556 }
 0x3ba   : > { %8796 = vmatprep.mubr.msk.f32.mxu1 %vm1437_vm2, %v1459_v35  ;;  %8799 = vmatprep.subr.msk.mxu1 %vm1353_vm1, %v1557_v36 }
 0x3bb   : > { %v9434_v37 = vpop.eup %9433 }
 0x3bc   : > { %v1460_v38 = vmul.f32 %v9434_v37, %v9430_v28 }
 0x3bd   : > { %v1555_v39 = vpop.permute.xlu1 %1554 }
 0x3be   : > { %8797 = vmatmul.mubr.msk.f32.vlgmr.msra.gmra.mxu1 %vm1437_vm2, %v1460_v38 }
 0x3bf   : > { %8800 = vmatpush3.xpose.msk.msra.mxu1 %vm1353_vm1, %v1557_v36  ;;  %8803 = vmatprep.mubr.msk.f32.mxu1 %vm1353_vm1, %v1551_v40 }
 0x3c0   : > { %8801 = vmatprep.subr.msk.mxu1 %vm1353_vm1, %v1555_v39 }
 0x3c1   : > { %v1553_v41 = vpop.permute.xlu1 %1552 }
 0x3c3   : > { %8802 = vmatpush3.xpose.msk.msra.mxu1 %vm1353_vm1, %v1555_v39 }
 0x3c6   : > { %8804 = vmatmul.mubr.msk.f32.vlgmr.msra.gmra.mxu1 %vm1353_vm1, %v1553_v41 }
 0x47e   : > { %v10025_v42 = vpop.f32.mrf.mxu1 }
 0x480   : > { %v10027_v43 = vpop.f32.mrf.mxu1 }
 0x486   : > { %v8805_v44 = vpop.f32.mrf.mxu1 }
 0x487   : > { %v1638_v45 = vadd.f32 %v8805_v44, %v9995_v14 }
 0x488   : > { %v1632_v46 = vpop.f32.mrf.mxu1 }
 0x489   : > { %v1633_v47 = vadd.f32 %v9995_v14, %v1632_v46  ;;  %v1644_v48 = vsel %vm1441_vm3, %v1638_v45, -inf }
 0x48a   : > { %1645 = vmax.xlane.f32.xlu0 %v1644_v48 }
 0x48b   : > { %v1641_v49 = vsel %vm1437_vm2, %v1633_v47, -inf }
 0x48c   : > { %1642 = vmax.xlane.f32.xlu1 %v1641_v49 }
 0x49d   : > { %1665 = vrot.lane.b32.xlu1 %v9974_v8, %s11049_s1 }
 0x4a0   : > { %1663 = vrot.lane.b32.xlu0 %v9976_v10, %s11049_s1  ;;  %s11051_s1 = smov 104  }
 0x4a1   : > { %1757 = vrot.lane.b32.xlu1 %v9974_v8, %s11047_s23 }
 0x4a4   : > { %1751 = vrot.lane.b32.xlu0 %v9976_v10, %s11045_s5 }
 0x4a5   : > { %1755 = vrot.lane.b32.xlu1 %v9976_v10, %s11047_s23  ;;  %s11053_s23 = smov 72  }
 0x513   : > { %v1646_v50 = vpop.xlane.xlu0 %1645 }
 0x514   : > { %v1648_v51 = vsub.f32 %v1638_v45, %v1646_v50 }
 0x515   : > { %v1643_v52 = vpop.xlane.xlu1 %1642 }
 0x516   : > { %v1651_v53 = vmul.f32 1.442695, %v1648_v51  ;;  %v1647_v54 = vsub.f32 %v1633_v47, %v1643_v52 }
 0x517   : > { %v1664_v57 = vpop.permute.xlu0 %1663 }
 0x518   : > { %9435 = vpow2.f32 %v1651_v53  ;;  %v1649_v55 = vmul.f32 1.442695, %v1647_v54 }
 0x519   : > { %v1666_v56 = vpop.permute.xlu1 %1665 }
 0x51a   : > { %9437 = vpow2.f32 %v1649_v55  ;;  %8806 = vmatprep.subr.msk.mxu0 %vm1472_vm4, %v1666_v56 }
 0x51b   : > { %8807 = vmatpush3.msk.msra.mxu0 %vm1472_vm4, %v1666_v56  ;;  %v1752_v9 = vpop.permute.xlu0 %1751 }
 0x51c   : > { %8808 = vmatprep.subr.mxu0 %v1664_v57 }
 0x51d   : > { %8809 = vmatpush3.msra.mxu0 %v1664_v57  ;;  %v1758_v58 = vpop.permute.xlu1 %1757 }
 0x51e   : > { %8813 = vmatprep.subr.msk.mxu0 %vm1353_vm1, %v1758_v58 }
 0x521   : > { %v1756_v63 = vpop.permute.xlu1 %1755 }
 0x525   : > { %v9436_v59 = vpop.eup %9435 }
 0x526   : > { %v1656_v60 = vsel %vm1441_vm3, %v9436_v59, 0.0 }
 0x527   : > { %v9438_v61 = vpop.eup %9437  ;;  %1657 = vadd.xlane.f32.xlu1 %v1656_v60 }
 0x528   : > { %v1653_v62 = vsel %vm1437_vm2, %v9438_v61, 0.0 }
 0x52b   : > { %1654 = vadd.xlane.f32.xlu1 %v1653_v62 }
 0x53c   : > { %1753 = vrot.lane.b32.xlu1 %v9974_v8, %s11045_s5  ;;  %s11055_s5 = smov 48  }
 0x5b0   : > { %v1658_v0 = vpop.xlane.xlu1 %1657 }
 0x5b1   : > { %9439 = vrcp.f32 %v1658_v0 }
 0x5b4   : > { %v1655_v1 = vpop.xlane.xlu1 %1654 }
 0x5b5   : > { %9441 = vrcp.f32 %v1655_v1 }
 0x5b8   : > { %v1754_v11 = vpop.permute.xlu1 %1753 }
 0x5be   : > { %v9440_v2 = vpop.eup %9439 }
 0x5bf   : > { %v1662_v7 = vmul.f32 %v9440_v2, %v9436_v59 }
 0x5c2   : > { %v9442_v3 = vpop.eup %9441 }
 0x5c3   : > { %v1661_v6 = vmul.f32 %v9442_v3, %v9438_v61 }
 0x5c5   : > { %8810 = vmatprep.mubr.msk.f32.mxu0 %vm1437_vm2, %v1661_v6 }
 0x5c6   : > { %8811 = vmatmul.mubr.msk.f32.vlgmr.msra.gmra.mxu0 %vm1437_vm2, %v1662_v7 }
 0x5c7   : > { %8814 = vmatpush3.xpose.msk.msra.mxu0 %vm1353_vm1, %v1758_v58  ;;  %8817 = vmatprep.mubr.msk.f32.mxu0 %vm1353_vm1, %v1752_v9  ;;  %v1248_v9 = vld [vmem:[%s11137_s8 + $0x10] sm:$0xff] }
 0x5c8   : > { %8815 = vmatprep.subr.msk.mxu0 %vm1353_vm1, %v1756_v63 }
 0x5cb   : > { %8816 = vmatpush3.xpose.msk.msra.mxu0 %vm1353_vm1, %v1756_v63 }
 0x5ce   : > { %8818 = vmatmul.mubr.msk.f32.vlgmr.msra.gmra.mxu0 %vm1353_vm1, %v1754_v11  ;;  %v1247_v11 = vld [vmem:[%s11137_s8 + $0x8] sm:$0xff] }
 0x686   : > { %v10057_v12 = vpop.f32.mrf.mxu0 }
 0x688   : > { %v10059_v13 = vpop.f32.mrf.mxu0 }
 0x68e   : > { %v8819_v15 = vpop.f32.mrf.mxu0 }
 0x68f   : > { %v1839_v16 = vadd.f32 %v8819_v15, %v9995_v14 }
 0x690   : > { %v1833_v17 = vpop.f32.mrf.mxu0 }
 0x691   : > { %v1834_v18 = vadd.f32 %v9995_v14, %v1833_v17  ;;  %v1845_v19 = vsel %vm1441_vm3, %v1839_v16, -inf }
 0x692   : > { %1846 = vmax.xlane.f32.xlu1 %v1845_v19 }
 0x693   : > { %v1842_v20 = vsel %vm1437_vm2, %v1834_v18, -inf }
 0x694   : > { %1843 = vmax.xlane.f32.xlu0 %v1842_v20 }
 0x6a3   : > { %1866 = vrot.lane.b32.xlu1 %v9974_v8, %s11055_s5 }
 0x6a7   : > { %1958 = vrot.lane.b32.xlu1 %v9974_v8, %s11053_s23 }
 0x6ab   : > { %1956 = vrot.lane.b32.xlu1 %v9976_v10, %s11053_s23  ;;  %s11061_s23 = smov 8  }
 0x6af   : > { %1954 = vrot.lane.b32.xlu1 %v9974_v8, %s11051_s1 }
 0x71b   : > { %v1847_v21 = vpop.xlane.xlu1 %1846 }
 0x71c   : > { %v1849_v22 = vsub.f32 %v1839_v16, %v1847_v21 }
 0x71d   : > { %v1844_v23 = vpop.xlane.xlu0 %1843 }
 0x71e   : > { %v1852_v24 = vmul.f32 1.442695, %v1849_v22  ;;  %v1848_v25 = vsub.f32 %v1834_v18, %v1844_v23 }
 0x71f   : > { %v1867_v26 = vpop.permute.xlu1 %1866 }
 0x720   : > { %9443 = vpow2.f32 %v1852_v24  ;;  %v1850_v27 = vmul.f32 1.442695, %v1848_v25  ;;  %8820 = vmatprep.subr.msk.mxu1 %vm1472_vm4, %v1867_v26 }
 0x721   : > { %8821 = vmatpush3.msk.msra.mxu1 %vm1472_vm4, %v1867_v26 }
 0x722   : > { %9445 = vpow2.f32 %v1850_v27 }
 0x723   : > { %v1959_v35 = vpop.permute.xlu1 %1958 }
 0x727   : > { %v1957_v41 = vpop.permute.xlu1 %1956 }
 0x72b   : > { %v1955_v44 = vpop.permute.xlu1 %1954 }
 0x72d   : > { %v9444_v28 = vpop.eup %9443 }
 0x72e   : > { %v1857_v29 = vsel %vm1441_vm3, %v9444_v28, 0.0 }
 0x72f   : > { %v9446_v30 = vpop.eup %9445  ;;  %1858 = vadd.xlane.f32.xlu0 %v1857_v29 }
 0x730   : > { %v1854_v31 = vsel %vm1437_vm2, %v9446_v30, 0.0 }
 0x733   : > { %1855 = vadd.xlane.f32.xlu0 %v1854_v31 }
 0x749   : > { %1864 = vrot.lane.b32.xlu0 %v9976_v10, %s11055_s5  ;;  %s11057_s5 = smov 16  }
 0x74d   : > { %1952 = vrot.lane.b32.xlu0 %v9976_v10, %s11051_s1  ;;  %s11063_s1 = smov 40  }
 0x7b8   : > { %v1859_v32 = vpop.xlane.xlu0 %1858 }
 0x7b9   : > { %9447 = vrcp.f32 %v1859_v32 }
 0x7bc   : > { %v1856_v33 = vpop.xlane.xlu0 %1855 }
 0x7bd   : > { %9449 = vrcp.f32 %v1856_v33 }
 0x7c0   : > { %v1865_v34 = vpop.permute.xlu0 %1864 }
 0x7c1   : > { %8822 = vmatprep.subr.mxu1 %v1865_v34 }
 0x7c2   : > { %8823 = vmatpush3.msra.mxu1 %v1865_v34 }
 0x7c3   : > { %8827 = vmatprep.subr.msk.mxu1 %vm1353_vm1, %v1959_v35 }
 0x7c4   : > { %v1953_v40 = vpop.permute.xlu0 %1952 }
 0x7c6   : > { %v9448_v36 = vpop.eup %9447 }
 0x7c7   : > { %v1863_v39 = vmul.f32 %v9448_v36, %v9444_v28 }
 0x7ca   : > { %v9450_v37 = vpop.eup %9449 }
 0x7cb   : > { %v1862_v38 = vmul.f32 %v9450_v37, %v9446_v30 }
 0x7cd   : > { %8824 = vmatprep.mubr.msk.f32.mxu1 %vm1437_vm2, %v1862_v38 }
 0x7ce   : > { %8825 = vmatmul.mubr.msk.f32.vlgmr.msra.gmra.mxu1 %vm1437_vm2, %v1863_v39 }
 0x7cf   : > { %8828 = vmatpush3.xpose.msk.msra.mxu1 %vm1353_vm1, %v1959_v35  ;;  %8831 = vmatprep.mubr.msk.f32.mxu1 %vm1353_vm1, %v1953_v40  ;;  %v9701_v35 = vmov 0  }
 0x7d0   : > { %8829 = vmatprep.subr.msk.mxu1 %vm1353_vm1, %v1957_v41  ;;  %9425 = vset.pattern.permute.xlu1 %v9701_v35 }
 0x7d1   : > { %9426 = vset.pattern.permute.xlu0 %v9701_v35 }
 0x7d3   : > { %8830 = vmatpush3.xpose.msk.msra.mxu1 %vm1353_vm1, %v1957_v41 }
 0x7d6   : > { %8832 = vmatmul.mubr.msk.f32.vlgmr.msra.gmra.mxu1 %vm1353_vm1, %v1955_v44 }
 0x88e   : > { %v8826_v45 = vpop.f32.mrf.mxu1 }
 0x890   : > { %v1943_v46 = vpop.f32.mrf.mxu1 }
 0x896   : > { %v8833_v47 = vpop.f32.mrf.mxu1 }
 0x897   : > { %v2040_v48 = vadd.f32 %v8833_v47, %v9995_v14  ;;  %v2333_v47 = vld [vmem:[%s11133_s30 + $0x18] sm:$0xff] }
 0x898   : > { %v2034_v49 = vpop.f32.mrf.mxu1  ;;  %8852 = vmatprep.subr.mxu1 %v2333_v47 }
 0x899   : > { %v2035_v50 = vadd.f32 %v9995_v14, %v2034_v49  ;;  %v2046_v51 = vsel %vm1441_vm3, %v2040_v48, -inf  ;;  %8853 = vmatpush3.msra.mxu1 %v2333_v47  ;;  %v2331_v49 = vld [vmem:[%s11133_s30 + $0x8] sm:$0xff] }
 0x89a   : > { %2047 = vmax.xlane.f32.xlu1 %v2046_v51  ;;  %v2330_v51 = vld [vmem:[%s11133_s30] sm:$0xff] }
 0x89b   : > { %v2043_v52 = vsel %vm1437_vm2, %v2035_v50, -inf }
 0x89c   : > { %2044 = vmax.xlane.f32.xlu0 %v2043_v52  ;;  %v2338_v52 = vld [vmem:[%s11131_s12 + $0x18] sm:$0xff] }
 0x8ab   : > { %2067 = vrot.lane.b32.xlu1 %v9974_v8, %s11063_s1 }
 0x8af   : > { %2155 = vrot.lane.b32.xlu1 %v10059_v13, %s11061_s23 }
 0x8b3   : > { %2157 = vrot.lane.b32.xlu1 %v10057_v12, %s11061_s23  ;;  %v1246_v12 = vld [vmem:[%s11137_s8] sm:$0xff] }
 0x8b7   : > { %2165 = vrot.lane.b32.xlu1 %v8826_v45, %s11057_s5 }
 0x923   : > { %v2048_v53 = vpop.xlane.xlu1 %2047 }
 0x924   : > { %v2050_v54 = vsub.f32 %v2040_v48, %v2048_v53  ;;  %v2332_v48 = vld [vmem:[%s11133_s30 + $0x10] sm:$0xff] }
 0x925   : > { %v2045_v55 = vpop.xlane.xlu0 %2044  ;;  %8854 = vmatprep.subr.mxu1 %v2332_v48  ;;  %v2337_v53 = vld [vmem:[%s11131_s12 + $0x10] sm:$0xff] }
 0x926   : > { %v2053_v56 = vmul.f32 1.442695, %v2050_v54  ;;  %v2049_v57 = vsub.f32 %v2035_v50, %v2045_v55  ;;  %8855 = vmatpush3.msra.mxu1 %v2332_v48 }
 0x927   : > { %v2068_v58 = vpop.permute.xlu1 %2067  ;;  %8856 = vmatprep.subr.mxu1 %v2331_v49 }
 0x928   : > { %9451 = vpow2.f32 %v2053_v56  ;;  %v2051_v59 = vmul.f32 1.442695, %v2049_v57  ;;  %8834 = vmatprep.subr.msk.mxu0 %vm1472_vm4, %v2068_v58  ;;  %8857 = vmatpush3.msra.mxu1 %v2331_v49 }
 0x929   : > { %8835 = vmatpush3.msk.msra.mxu0 %vm1472_vm4, %v2068_v58  ;;  %8858 = vmatprep.subr.mxu1 %v2330_v51 }
 0x92a   : > { %9453 = vpow2.f32 %v2051_v59  ;;  %8859 = vmatpush3.msra.mxu1 %v2330_v51 }
 0x92b   : > { %v2156_v16 = vpop.permute.xlu1 %2155 }
 0x92c   : > { %v2177_v20 = vsel %vm1353_vm1, %v10027_v43, %v2156_v16  ;;  %v8283_v43 = vld [vmem:[%s11136_s14] ss:$0 sm:$0xff] }
 0x92f   : > { %v2158_v17 = vpop.permute.xlu1 %2157 }
 0x930   : > { %v2178_v22 = vsel %vm1353_vm1, %v10025_v42, %v2158_v17 }
 0x933   : > { %v2166_v18 = vpop.permute.xlu1 %2165 }
 0x934   : > { %v2181_v25 = vsel %vm2179_vm5, %v2178_v22, %v2166_v18  ;;  %v8291_v22 = vld [vmem:[%s11130_s20] ss:$0 sm:$0xff] }
 0x935   : > { %v9452_v8 = vpop.eup %9451 }
 0x936   : > { %v2058_v60 = vsel %vm1441_vm3, %v9452_v8, 0.0 }
 0x937   : > { %v9454_v61 = vpop.eup %9453  ;;  %2059 = vadd.xlane.f32.xlu0 %v2058_v60  ;;  %v8286_v60 = vld [vmem:[%s11135_s19] ss:$0 sm:$0xff] }
 0x938   : > { %v2055_v62 = vsel %vm1437_vm2, %v9454_v61, 0.0 }
 0x93b   : > { %2056 = vadd.xlane.f32.xlu0 %v2055_v62  ;;  %v8287_v62 = vld [vmem:[%s11134_s24] ss:$0 sm:$0xff] }
 0x951   : > { %2065 = vrot.lane.b32.xlu0 %v9976_v10, %s11063_s1  ;;  %v1249_v10 = vld [vmem:[%s11137_s8 + $0x18] sm:$0xff]  ;;  %s11157_s1 = smov 88  }
 0x955   : > { %2163 = vrot.lane.b32.xlu0 %v1943_v46, %s11057_s5  ;;  %s11059_s5 = smov 24  }
 0x9c0   : > { %v2060_v63 = vpop.xlane.xlu0 %2059 }
 0x9c1   : > { %9455 = vrcp.f32 %v2060_v63 }
 0x9c4   : > { %v2057_v0 = vpop.xlane.xlu0 %2056 }
 0x9c5   : > { %9457 = vrcp.f32 %v2057_v0 }
 0x9c8   : > { %v2066_v1 = vpop.permute.xlu0 %2065 }
 0x9c9   : > { %8836 = vmatprep.subr.mxu0 %v2066_v1 }
 0x9ca   : > { %8837 = vmatpush3.msra.mxu0 %v2066_v1 }
 0x9cb   : > { %8841 = vmatprep.subr.mxu0 %v1249_v10 }
 0x9cc   : > { %v2164_v19 = vpop.permute.xlu0 %2163 }
 0x9cd   : > { %v2180_v23 = vsel %vm2179_vm5, %v2177_v20, %v2164_v19 }
 0x9ce   : > { %v9456_v2 = vpop.eup %9455 }
 0x9cf   : > { %v2064_v7 = vmul.f32 %v9456_v2, %v9452_v8 }
 0x9d2   : > { %v9458_v3 = vpop.eup %9457 }
 0x9d3   : > { %v2063_v6 = vmul.f32 %v9458_v3, %v9454_v61 }
 0x9d5   : > { %8838 = vmatprep.mubr.msk.f32.mxu0 %vm1437_vm2, %v2063_v6 }
 0x9d6   : > { %8839 = vmatmul.mubr.msk.f32.vlgmr.msra.gmra.mxu0 %vm1437_vm2, %v2064_v7 }
 0x9d7   : > { %8842 = vmatpush3.msra.mxu0 %v1249_v10 }
 0x9d8   : > { %8843 = vmatprep.subr.mxu0 %v1248_v9 }
 0x9d9   : > { %8844 = vmatpush3.msra.mxu0 %v1248_v9 }
 0x9da   : > { %8845 = vmatprep.subr.mxu0 %v1247_v11 }
 0x9db   : > { %8846 = vmatpush3.msra.mxu0 %v1247_v11 }
 0x9dc   : > { %8847 = vmatprep.subr.mxu0 %v1246_v12 }
 0x9dd   : > { %8848 = vmatpush3.msra.mxu0 %v1246_v12  ;;  %v2336_v12 = vld [vmem:[%s11131_s12 + $0x8] sm:$0xff] }
 0x9de   : > { %8863 = vmatprep.subr.mxu0 %v2338_v52 }
 0xa96   : > { %v8840_v13 = vpop.f32.mrf.mxu0 }
 0xa97   : > { %2173 = vrot.lane.b32.xlu1 %v8840_v13, %s11059_s5  ;;  %v2335_v13 = vld [vmem:[%s11131_s12] sm:$0xff] }
 0xa98   : > { %v2144_v15 = vpop.f32.mrf.mxu0 }
 0xa99   : > { %2171 = vrot.lane.b32.xlu0 %v2144_v15, %s11059_s5  ;;  %s11154_s5 = sshll.u32 %s9958_s11, 4  ;;  %v8288_v15 = vld [vmem:[%s11132_s6] ss:$0 sm:$0xff] }
 0xa9a   : > { %s1229_s23 = scalar_lea.vmem %s11153_s21, %s11154_s5  ;;  %s11155_s5 = sld [smem:[#allocation22_spill]] }
 0xa9b   : > { %v1236_v36 = vld [vmem:[%s1229_s23] sm:$0xff]  ;;  %v1237_v50 = vld [vmem:[%s1229_s23 + $0x8] sm:$0x3]  ;;  %s11156_s23 = smov 96   ;;  %s11160_s21 = smov 56  }
 0xb09   : > { %v2174_v21 = vpop.permute.xlu1 %2173 }
 0xb0a   : > { %v2184_v27 = vsel %vm2182_vm6, %v2181_v25, %v2174_v21 }
 0xb0b   : > { %v2172_v24 = vpop.permute.xlu0 %2171 }
 0xb0c   : > { %v2183_v26 = vsel %vm2182_vm6, %v2180_v23, %v2172_v24 }
 0xb0d   : > { %8849 = vmatprep.mubr.msk.f32.mxu0 %vm1259_vm0, %v2183_v26 }
 0xb0e   : > { %8850 = vmatmul.mubr.msk.f32.vlgmr.msra.gmra.mxu0 %vm1259_vm0, %v2184_v27 }
 0xb0f   : > { %8864 = vmatpush3.xpose.msra.mxu0 %v2338_v52  ;;  %v8293_v52 = vld [vmem:[%s11155_s5] ss:$0 sm:$0xff] }
 0xb10   : > { %8865 = vmatprep.subr.mxu0 %v2337_v53 }
 0xb13   : > { %8866 = vmatpush3.xpose.msra.mxu0 %v2337_v53 }
 0xb14   : > { %8867 = vmatprep.subr.mxu0 %v2336_v12 }
 0xb17   : > { %8868 = vmatpush3.xpose.msra.mxu0 %v2336_v12 }
 0xb18   : > { %8869 = vmatprep.subr.mxu0 %v2335_v13 }
 0xb1b   : > { %8870 = vmatpush3.xpose.msra.mxu0 %v2335_v13 }
 0xbce   : > { %v8851_v28 = vpop.f32.mrf.mxu0 }
 0xbcf   : > { %v2269_v29 = vadd.f32 %v8851_v28, %v8283_v43 }
 0xbd0   : > { %v2263_v30 = vpop.f32.mrf.mxu0 }
 0xbd1   : > { %v2264_v42 = vadd.f32 %v8283_v43, %v2263_v30  ;;  %v2273_v31 = vadd.f32 %v2269_v29, %v9967_v5 }
 0xbd3   : > { %v2278_v32 = vsel %vm2277_vm7, %v2273_v31, 0.0  ;;  %v2272_v33 = vadd.f32 %v2264_v42, %v9965_v4 }
 0xbd4   : > { %2279 = vadd.xlane.f32.xlu1 %v2278_v32 }
 0xbd5   : > { %v2274_v34 = vsel %vm1259_vm0, %v2272_v33, 0.0 }
 0xbd6   : > { %2275 = vadd.xlane.f32.xlu0 %v2274_v34 }
 0xbe5   : > { %2320 = vperm.xlu1 %9425, %v1236_v36  }
 0xc5d   : > { %v2280_v37 = vpop.xlane.xlu1 %2279 }
 0xc5e   : > { %v2283_v5 = vmul.f32 0.03125, %v2280_v37 }
 0xc5f   : > { %v2276_v38 = vpop.xlane.xlu0 %2275 }
 0xc60   : > { %v2282_v39 = vmul.f32 0.03125, %v2276_v38  ;;  %v2285_v40 = vsub.f32 %v2273_v31, %v2283_v5  ;;  %v8297_v38 = vld [vmem:[%s11138_s29 + $0x38] sm:$0xff] }
 0xc61   : > { %v10143_v1 = vpop.permute.xlu1 %2320  ;;  %8874 = vmatprep.subr.mxu1 %v8297_v38 }
 0xc62   : > { %v2284_v4 = vsub.f32 %v2272_v33, %v2282_v39  ;;  %v2287_v45 = vmul.f32 %v2285_v40, %v2285_v40  ;;  %v8296_v39 = vld [vmem:[%s11138_s29 + $0x30] sm:$0xff] }
 0xc64   : > { %v2286_v41 = vmul.f32 %v2284_v4, %v2284_v4  ;;  %v2291_v46 = vsel %vm2277_vm7, %v2287_v45, 0.0 }
 0xc66   : > { %v2288_v44 = vsel %vm1259_vm0, %v2286_v41, 0.0 }
 0xc67   : > { %2289 = vadd.xlane.f32.xlu0 %v2288_v44 }
 0xc6b   : > { %2292 = vadd.xlane.f32.xlu0 %v2291_v46 }
 0xc81   : > { %2325 = vperm.xlu0 %9426, %v1237_v50   ;;  %v8292_v50 = vld [vmem:[%s11129_s27] ss:$0 sm:$0xff] }
 0xcf0   : > { %v2290_v54 = vpop.xlane.xlu0 %2289 }
 0xcf1   : > { %v2294_v55 = vmul.f32 0.03125, %v2290_v54 }
 0xcf3   : > { %v2296_v56 = vadd.f32 1e-05, %v2294_v55 }
 0xcf4   : > { %v2293_v57 = vpop.xlane.xlu0 %2292 }
 0xcf5   : > { %9459 = vrsqrt.f32 %v2296_v56  ;;  %v2295_v58 = vmul.f32 0.03125, %v2293_v57 }
 0xcf7   : > { %v2297_v59 = vadd.f32 1e-05, %v2295_v58 }
 0xcf9   : > { %9461 = vrsqrt.f32 %v2297_v59 }
 0xcfc   : > { %v10146_v10 = vpop.permute.xlu0 %2325 }
 0xd02   : > { %v9460_v8 = vpop.eup %9459 }
 0xd03   : > { %v2300_v61 = vmul.f32 %v9460_v8, %v2284_v4  ;;  %v8294_v4 = vld [vmem:[%s11138_s29 + $0x20] sm:$0xff] }
 0xd05   : > { %v2308_v63 = vmul.f32 %v8286_v60, %v2300_v61 }
 0xd06   : > { %v9462_v0 = vpop.eup %9461 }
 0xd07   : > { %v2316_v2 = vadd.f32 %v8287_v62, %v2308_v63  ;;  %v2301_v3 = vmul.f32 %v9462_v0, %v2285_v40  ;;  %v8295_v40 = vld [vmem:[%s11138_s29 + $0x28] sm:$0xff]  ;;  %s11161_s29 = smov 80  }
 0xd09   : > { %v2328_v6 = vmul.f32 %v10143_v1, %v2316_v2  ;;  %v2309_v7 = vmul.f32 %v8286_v60, %v2301_v3  ;;  %v8306_v60 = vld [vmem:[%s11139_s3 + $0x1] ss:$0 sm:$0xff]  ;;  %s11158_s3 = smov 120  }
 0xd0b   : > { %8860 = vmatprep.mubr.msk.f32.mxu1 %vm1259_vm0, %v2328_v6  ;;  %v2317_v9 = vadd.f32 %v8287_v62, %v2309_v7 }
 0xd0d   : > { %v2329_v11 = vmul.f32 %v10146_v10, %v2317_v9 }
 0xd0f   : > { %8861 = vmatmul.mubr.msk.f32.vlgmr.msra.gmra.mxu1 %vm1259_vm0, %v2329_v11 }
 0xd10   : > { %8875 = vmatpush3.msra.mxu1 %v8297_v38 }
 0xd11   : > { %8876 = vmatprep.subr.mxu1 %v8296_v39 }
 0xd12   : > { %8877 = vmatpush3.msra.mxu1 %v8296_v39 }
 0xd13   : > { %8878 = vmatprep.subr.mxu1 %v8295_v40 }
 0xd14   : > { %8879 = vmatpush3.msra.mxu1 %v8295_v40 }
 0xd15   : > { %8880 = vmatprep.subr.mxu1 %v8294_v4 }
 0xd16   : > { %8881 = vmatpush3.msra.mxu1 %v8294_v4 }
 0xdcf   : > { %v8862_v16 = vpop.f32.mrf.mxu1 }
 0xdd0   : > { %v2426_v17 = vadd.f32 %v8862_v16, %v8288_v15 }
 0xdd1   : > { %v2420_v18 = vpop.f32.mrf.mxu1 }
 0xdd2   : > { %v2421_v19 = vadd.f32 %v8288_v15, %v2420_v18  ;;  %v2430_v21 = vmax.f32 %v2426_v17, 0.0 }
 0xdd4   : > { %v2429_v20 = vmax.f32 %v2421_v19, 0.0 }
 0xdd6   : > { %8871 = vmatprep.mubr.f32.mxu0 %v2429_v20 }
 0xdd7   : > { %8872 = vmatmul.mubr.f32.vlgmr.msra.gmra.mxu0 %v2430_v21 }
 0xe97   : > { %v8873_v23 = vpop.f32.mrf.mxu0 }
 0xe98   : > { %v2509_v24 = vadd.f32 %v8873_v23, %v8291_v22 }
 0xe99   : > { %v2503_v25 = vpop.f32.mrf.mxu0 }
 0xe9a   : > { %v2504_v26 = vadd.f32 %v8291_v22, %v2503_v25  ;;  %v2513_v27 = vadd.f32 %v2509_v24, %v2329_v11 }
 0xe9c   : > { %v2517_v43 = vsel %vm2277_vm7, %v2513_v27, 0.0  ;;  %v2512_v28 = vadd.f32 %v2504_v26, %v2328_v6 }
 0xe9d   : > { %2518 = vadd.xlane.f32.xlu0 %v2517_v43 }
 0xe9e   : > { %v2514_v29 = vsel %vm1259_vm0, %v2512_v28, 0.0 }
 0xe9f   : > { %2515 = vadd.xlane.f32.xlu1 %v2514_v29 }
 0xf26   : > { %v2519_v30 = vpop.xlane.xlu0 %2518 }
 0xf27   : > { %v2521_v42 = vmul.f32 0.03125, %v2519_v30 }
 0xf28   : > { %v2516_v31 = vpop.xlane.xlu1 %2515 }
 0xf29   : > { %v2520_v32 = vmul.f32 0.03125, %v2516_v31  ;;  %v2523_v33 = vsub.f32 %v2513_v27, %v2521_v42 }
 0xf2b   : > { %v2522_v34 = vsub.f32 %v2512_v28, %v2520_v32  ;;  %v2525_v37 = vmul.f32 %v2523_v33, %v2523_v33 }
 0xf2d   : > { %v2524_v35 = vmul.f32 %v2522_v34, %v2522_v34  ;;  %v2529_v5 = vsel %vm2277_vm7, %v2525_v37, 0.0 }
 0xf2f   : > { %v2526_v36 = vsel %vm1259_vm0, %v2524_v35, 0.0 }
 0xf30   : > { %2527 = vadd.xlane.f32.xlu1 %v2526_v36 }
 0xf34   : > { %2530 = vadd.xlane.f32.xlu1 %v2529_v5 }
 0xfb9   : > { %v2528_v41 = vpop.xlane.xlu1 %2527 }
 0xfba   : > { %v2532_v44 = vmul.f32 0.03125, %v2528_v41 }
 0xfbc   : > { %v2534_v45 = vadd.f32 1e-05, %v2532_v44 }
 0xfbd   : > { %v2531_v46 = vpop.xlane.xlu1 %2530 }
 0xfbe   : > { %9463 = vrsqrt.f32 %v2534_v45  ;;  %v2533_v47 = vmul.f32 0.03125, %v2531_v46 }
 0xfc0   : > { %v2535_v48 = vadd.f32 1e-05, %v2533_v47 }
 0xfc2   : > { %9465 = vrsqrt.f32 %v2535_v48 }
 0xfcb   : > { %v9464_v49 = vpop.eup %9463 }
 0xfcc   : > { %v2538_v51 = vmul.f32 %v9464_v49, %v2522_v34 }
 0xfce   : > { %v2546_v53 = vmul.f32 %v8292_v50, %v2538_v51 }
 0xfcf   : > { %v9466_v54 = vpop.eup %9465 }
 0xfd0   : > { %v2539_v55 = vmul.f32 %v9466_v54, %v2523_v33  ;;  %v2554_v56 = vadd.f32 %v8293_v52, %v2546_v53 }
 0xfd2   : > { %v2547_v57 = vmul.f32 %v8292_v50, %v2539_v55  ;;  %v10166_v58 = vmul.f32 %v2554_v56, %v10143_v1 }
 0xfd4   : > { %v2555_v59 = vadd.f32 %v8293_v52, %v2547_v57  ;;  %8882 = vmatprep.mubr.msk.f32.mxu1 %vm1259_vm0, %v10166_v58 }
 0xfd6   : > { %v10171_v8 = vmul.f32 %v2555_v59, %v10146_v10 }
 0xfd8   : > { %8883 = vmatmul.mubr.msk.f32.vlgmr.msra.gmra.mxu1 %vm1259_vm0, %v10171_v8 }
0x1098   : > { %v8884_v61 = vpop.f32.mrf.mxu1 }
0x1099   : > { %v10176_v62 = vadd.f32 %v8884_v61, %v8306_v60 }
0x109a   : > { %v2654_v63 = vpop.f32.mrf.mxu1 }
0x109b   : > { %v10178_v0 = vadd.f32 %v8306_v60, %v2654_v63  ;;  %2667 = vrot.lane.b32.xlu1 %v10176_v62, %s11156_s23 }
0x109d   : > { %2665 = vrot.lane.b32.xlu0 %v10178_v0, %s11156_s23  ;;  %8889 = vmatprep.mubr.msk.f32.mxu1 %vm1353_vm1, %v10178_v0 }
0x109f   : > { %2868 = vrot.lane.b32.xlu1 %v10176_v62, %s11157_s1 }
0x10a3   : > { %2866 = vrot.lane.b32.xlu1 %v10178_v0, %s11157_s1 }
0x10a7   : > { %2862 = vrot.lane.b32.xlu1 %v10178_v0, %s11158_s3 }
0x10ab   : > { %2864 = vrot.lane.b32.xlu1 %v10176_v62, %s11158_s3 }
0x110d   : > { %v2668_v2 = vpop.permute.xlu1 %2667 }
0x110e   : > { %8885 = vmatprep.subr.msk.mxu1 %vm1353_vm1, %v2668_v2 }
0x110f   : > { %8886 = vmatpush3.xpose.msk.msra.mxu1 %vm1353_vm1, %v2668_v2  ;;  %v2666_v3 = vpop.permute.xlu0 %2665 }
0x1110   : > { %8887 = vmatprep.subr.msk.mxu1 %vm1353_vm1, %v2666_v3 }
0x1111   : > { %v2869_v6 = vpop.permute.xlu1 %2868 }
0x1113   : > { %8888 = vmatpush3.xpose.msk.msra.mxu1 %vm1353_vm1, %v2666_v3 }
0x1114   : > { %8899 = vmatprep.subr.msk.mxu1 %vm1353_vm1, %v2869_v6 }
0x1115   : > { %v2867_v7 = vpop.permute.xlu1 %2866 }
0x1116   : > { %8890 = vmatmul.mubr.msk.f32.vlgmr.msra.gmra.mxu1 %vm1353_vm1, %v10176_v62 }
0x1117   : > { %8900 = vmatpush3.xpose.msk.msra.mxu1 %vm1353_vm1, %v2869_v6 }
0x1118   : > { %8901 = vmatprep.subr.msk.mxu1 %vm1353_vm1, %v2867_v7 }
0x1119   : > { %v2863_v9 = vpop.permute.xlu1 %2862 }
0x111a   : > { %8903 = vmatprep.mubr.msk.f32.mxu1 %vm1353_vm1, %v2863_v9 }
0x111b   : > { %8902 = vmatpush3.xpose.msk.msra.mxu1 %vm1353_vm1, %v2867_v7 }
0x111d   : > { %v2865_v11 = vpop.permute.xlu1 %2864 }
0x111e   : > { %8904 = vmatmul.mubr.msk.f32.vlgmr.msra.gmra.mxu1 %vm1353_vm1, %v2865_v11  ;;  %v10257_v11 = vld [vmem:[%s9992_s28] ss:$0 sm:$0xff] }
0x11d6   : > { %v8891_v12 = vpop.f32.mrf.mxu1 }
0x11d7   : > { %v2749_v13 = vadd.f32 %v8891_v12, %v9995_v14 }
0x11d8   : > { %v2743_v15 = vpop.f32.mrf.mxu1 }
0x11d9   : > { %v2744_v16 = vadd.f32 %v9995_v14, %v2743_v15  ;;  %v2755_v17 = vsel %vm1441_vm3, %v2749_v13, -inf }
0x11da   : > { %2756 = vmax.xlane.f32.xlu0 %v2755_v17 }
0x11db   : > { %v2752_v18 = vsel %vm1437_vm2, %v2744_v16, -inf }
0x11dc   : > { %2753 = vmax.xlane.f32.xlu1 %v2752_v18 }
0x11de   : > { %v8905_v19 = vpop.f32.mrf.mxu1 }
0x11df   : > { %v2950_v20 = vadd.f32 %v8905_v19, %v9995_v14 }
0x11e0   : > { %v2944_v22 = vpop.f32.mrf.mxu1 }
0x11e1   : > { %v2956_v21 = vsel %vm1441_vm3, %v2950_v20, -inf  ;;  %v2945_v23 = vadd.f32 %v9995_v14, %v2944_v22 }
0x11e2   : > { %2957 = vmax.xlane.f32.xlu0 %v2956_v21 }
0x11e3   : > { %v2953_v24 = vsel %vm1437_vm2, %v2945_v23, -inf }
0x11ed   : > { %2776 = vrot.lane.b32.xlu1 %v10176_v62, %s11159_s13 }
0x11f1   : > { %2977 = vrot.lane.b32.xlu1 %v10176_v62, %s11160_s21 }
0x11f8   : > { %2774 = vrot.lane.b32.xlu0 %v10178_v0, %s11159_s13 }
0x1215   : > { %2954 = vmax.xlane.f32.xlu1 %v2953_v24 }
0x1226   : > { %2975 = vrot.lane.b32.xlu1 %v10178_v0, %s11160_s21 }
0x1263   : > { %v2757_v25 = vpop.xlane.xlu0 %2756 }
0x1264   : > { %v2759_v26 = vsub.f32 %v2749_v13, %v2757_v25 }
0x1265   : > { %v2754_v27 = vpop.xlane.xlu1 %2753 }
0x1266   : > { %v2762_v43 = vmul.f32 1.442695, %v2759_v26  ;;  %v2758_v28 = vsub.f32 %v2744_v16, %v2754_v27 }
0x1268   : > { %9467 = vpow2.f32 %v2762_v43  ;;  %v2760_v29 = vmul.f32 1.442695, %v2758_v28 }
0x1269   : > { %v2777_v30 = vpop.permute.xlu1 %2776 }
0x126a   : > { %9469 = vpow2.f32 %v2760_v29  ;;  %8892 = vmatprep.subr.msk.mxu0 %vm1472_vm4, %v2777_v30 }
0x126b   : > { %v2958_v42 = vpop.xlane.xlu0 %2957  ;;  %8893 = vmatpush3.msk.msra.mxu0 %vm1472_vm4, %v2777_v30 }
0x126c   : > { %v2960_v14 = vsub.f32 %v2950_v20, %v2958_v42 }
0x126d   : > { %v2978_v33 = vpop.permute.xlu1 %2977 }
0x126e   : > { %v2963_v31 = vmul.f32 1.442695, %v2960_v14 }
0x126f   : > { %v2775_v32 = vpop.permute.xlu0 %2774 }
0x1270   : > { %9471 = vpow2.f32 %v2963_v31  ;;  %8894 = vmatprep.subr.mxu0 %v2775_v32 }
0x1271   : > { %8895 = vmatpush3.msra.mxu0 %v2775_v32 }
0x1272   : > { %8906 = vmatprep.subr.msk.mxu0 %vm1472_vm4, %v2978_v33 }
0x1275   : > { %v9468_v34 = vpop.eup %9467 }
0x1276   : > { %v2767_v35 = vsel %vm1441_vm3, %v9468_v34, 0.0 }
0x1277   : > { %v9470_v36 = vpop.eup %9469  ;;  %2768 = vadd.xlane.f32.xlu0 %v2767_v35 }
0x1278   : > { %v2764_v37 = vsel %vm1437_vm2, %v9470_v36, 0.0 }
0x1279   : > { %2765 = vadd.xlane.f32.xlu1 %v2764_v37 }
0x127d   : > { %v9472_v5 = vpop.eup %9471 }
0x127e   : > { %v2968_v38 = vsel %vm1441_vm3, %v9472_v5, 0.0 }
0x127f   : > { %2969 = vadd.xlane.f32.xlu0 %v2968_v38 }
0x128a   : > { %3067 = vrot.lane.b32.xlu1 %v10178_v0, %s11161_s29 }
0x1295   : > { %3069 = vrot.lane.b32.xlu0 %v10176_v62, %s11161_s29 }
0x1299   : > { %3063 = vrot.lane.b32.xlu0 %v10178_v0, %s11162_s2 }
0x129e   : > { %v2955_v39 = vpop.xlane.xlu1 %2954 }
0x129f   : > { %v2959_v40 = vsub.f32 %v2945_v23, %v2955_v39 }
0x12a1   : > { %v2961_v4 = vmul.f32 1.442695, %v2959_v40 }
0x12a2   : > { %v2976_v45 = vpop.permute.xlu1 %2975 }
0x12a3   : > { %9473 = vpow2.f32 %v2961_v4 }
0x12b0   : > { %v9474_v41 = vpop.eup %9473 }
0x12b1   : > { %v2965_v44 = vsel %vm1437_vm2, %v9474_v41, 0.0 }
0x12b2   : > { %2966 = vadd.xlane.f32.xlu1 %v2965_v44 }
0x12c3   : > { %3065 = vrot.lane.b32.xlu1 %v10176_v62, %s11162_s2 }
0x1300   : > { %v2769_v46 = vpop.xlane.xlu0 %2768 }
0x1301   : > { %9475 = vrcp.f32 %v2769_v46 }
0x1302   : > { %v2766_v47 = vpop.xlane.xlu1 %2765 }
0x1303   : > { %9477 = vrcp.f32 %v2766_v47 }
0x1306   : > { %v3068_v54 = vpop.permute.xlu1 %3067 }
0x1308   : > { %v2970_v50 = vpop.xlane.xlu0 %2969 }
0x1309   : > { %9479 = vrcp.f32 %v2970_v50 }
0x130c   : > { %v3070_v53 = vpop.permute.xlu0 %3069 }
0x130e   : > { %v9476_v48 = vpop.eup %9475 }
0x130f   : > { %v2773_v52 = vmul.f32 %v9476_v48, %v9468_v34 }
0x1310   : > { %v9478_v49 = vpop.eup %9477  ;;  %v3064_v61 = vpop.permute.xlu0 %3063 }
0x1311   : > { %v2772_v51 = vmul.f32 %v9478_v49, %v9470_v36 }
0x1313   : > { %8896 = vmatprep.mubr.msk.f32.mxu0 %vm1437_vm2, %v2772_v51 }
0x1314   : > { %8897 = vmatmul.mubr.msk.f32.vlgmr.msra.gmra.mxu0 %vm1437_vm2, %v2773_v52 }
0x1315   : > { %8907 = vmatpush3.msk.msra.mxu0 %vm1472_vm4, %v2978_v33 }
0x1316   : > { %8908 = vmatprep.subr.mxu0 %v2976_v45  ;;  %v9480_v56 = vpop.eup %9479 }
0x1317   : > { %8909 = vmatpush3.msra.mxu0 %v2976_v45  ;;  %v2974_v60 = vmul.f32 %v9480_v56, %v9472_v5 }
0x1318   : > { %8913 = vmatprep.subr.msk.mxu0 %vm1353_vm1, %v3070_v53 }
0x133b   : > { %v2967_v55 = vpop.xlane.xlu1 %2966 }
0x133c   : > { %9481 = vrcp.f32 %v2967_v55 }
0x133f   : > { %v3066_v63 = vpop.permute.xlu1 %3065 }
0x1349   : > { %v9482_v57 = vpop.eup %9481 }
0x134a   : > { %v2973_v59 = vmul.f32 %v9482_v57, %v9474_v41 }
0x134c   : > { %8910 = vmatprep.mubr.msk.f32.mxu0 %vm1437_vm2, %v2973_v59 }
0x134d   : > { %8911 = vmatmul.mubr.msk.f32.vlgmr.msra.gmra.mxu0 %vm1437_vm2, %v2974_v60 }
0x134e   : > { %8914 = vmatpush3.xpose.msk.msra.mxu0 %vm1353_vm1, %v3070_v53  ;;  %8917 = vmatprep.mubr.msk.f32.mxu0 %vm1353_vm1, %v3064_v61 }
0x134f   : > { %8915 = vmatprep.subr.msk.mxu0 %vm1353_vm1, %v3068_v54 }
0x1352   : > { %8916 = vmatpush3.xpose.msk.msra.mxu0 %vm1353_vm1, %v3068_v54 }
0x1355   : > { %8918 = vmatmul.mubr.msk.f32.vlgmr.msra.gmra.mxu0 %vm1353_vm1, %v3066_v63 }
0x13d4   : > { %v10248_v2 = vpop.f32.mrf.mxu0 }
0x13d6   : > { %v10250_v3 = vpop.f32.mrf.mxu0 }
0x140d   : > { %v10252_v6 = vpop.f32.mrf.mxu0 }
0x140f   : > { %v10254_v7 = vpop.f32.mrf.mxu0 }
0x1415   : > { %v8919_v9 = vpop.f32.mrf.mxu0 }
0x1416   : > { %v3151_v12 = vadd.f32 %v10257_v11, %v8919_v9  ;;  %v8299_v9 = vld [vmem:[%s11137_s8 + $0x20] sm:$0xff] }
0x1417   : > { %v3145_v13 = vpop.f32.mrf.mxu0 }
0x1418   : > { %v3146_v15 = vadd.f32 %v10257_v11, %v3145_v13  ;;  %v3157_v16 = vsel %vm1441_vm3, %v3151_v12, -inf }
0x1419   : > { %3158 = vmax.xlane.f32.xlu1 %v3157_v16 }
0x141a   : > { %v3154_v17 = vsel %vm1437_vm2, %v3146_v15, -inf }
0x141b   : > { %3155 = vmax.xlane.f32.xlu0 %v3154_v17 }
0x142a   : > { %3178 = vrot.lane.b32.xlu1 %v10176_v62, %s11163_s18 }
0x142e   : > { %3270 = vrot.lane.b32.xlu1 %v10176_v62, %s11164_s26 }
0x1432   : > { %3268 = vrot.lane.b32.xlu1 %v10178_v0, %s11164_s26 }
0x1436   : > { %3266 = vrot.lane.b32.xlu1 %v10176_v62, %s11165_s10 }
0x14a2   : > { %v3159_v18 = vpop.xlane.xlu1 %3158 }
0x14a3   : > { %v3161_v19 = vsub.f32 %v3151_v12, %v3159_v18 }
0x14a4   : > { %v3156_v20 = vpop.xlane.xlu0 %3155 }
0x14a5   : > { %v3164_v21 = vmul.f32 1.442695, %v3161_v19  ;;  %v3160_v22 = vsub.f32 %v3146_v15, %v3156_v20 }
0x14a6   : > { %v3179_v23 = vpop.permute.xlu1 %3178 }
0x14a7   : > { %9483 = vpow2.f32 %v3164_v21  ;;  %v3162_v24 = vmul.f32 1.442695, %v3160_v22  ;;  %8920 = vmatprep.subr.msk.mxu1 %vm1472_vm4, %v3179_v23 }
0x14a8   : > { %8921 = vmatpush3.msk.msra.mxu1 %vm1472_vm4, %v3179_v23 }
0x14a9   : > { %9485 = vpow2.f32 %v3162_v24 }
0x14aa   : > { %v3271_v42 = vpop.permute.xlu1 %3270 }
0x14ae   : > { %v3269_v35 = vpop.permute.xlu1 %3268 }
0x14b2   : > { %v3267_v36 = vpop.permute.xlu1 %3266 }
0x14b4   : > { %v9484_v25 = vpop.eup %9483 }
0x14b5   : > { %v3169_v26 = vsel %vm1441_vm3, %v9484_v25, 0.0 }
0x14b6   : > { %v9486_v27 = vpop.eup %9485  ;;  %3170 = vadd.xlane.f32.xlu0 %v3169_v26 }
0x14b7   : > { %v3166_v43 = vsel %vm1437_vm2, %v9486_v27, 0.0 }
0x14ba   : > { %3167 = vadd.xlane.f32.xlu0 %v3166_v43 }
0x14d0   : > { %3176 = vrot.lane.b32.xlu0 %v10178_v0, %s11163_s18 }
0x14d4   : > { %3264 = vrot.lane.b32.xlu0 %v10178_v0, %s11165_s10 }
0x153f   : > { %v3171_v28 = vpop.xlane.xlu0 %3170 }
0x1540   : > { %9487 = vrcp.f32 %v3171_v28 }
0x1543   : > { %v3168_v29 = vpop.xlane.xlu0 %3167 }
0x1544   : > { %9489 = vrcp.f32 %v3168_v29 }
0x1547   : > { %v3177_v30 = vpop.permute.xlu0 %3176 }
0x1548   : > { %8922 = vmatprep.subr.mxu1 %v3177_v30 }
0x1549   : > { %8923 = vmatpush3.msra.mxu1 %v3177_v30 }
0x154a   : > { %8927 = vmatprep.subr.msk.mxu1 %vm1353_vm1, %v3271_v42 }
0x154b   : > { %v3265_v34 = vpop.permute.xlu0 %3264 }
0x154d   : > { %v9488_v14 = vpop.eup %9487 }
0x154e   : > { %v3175_v33 = vmul.f32 %v9488_v14, %v9484_v25 }
0x1551   : > { %v9490_v31 = vpop.eup %9489 }
0x1552   : > { %v3174_v32 = vmul.f32 %v9490_v31, %v9486_v27  ;;  %v8337_v27 = vld [vmem:[%s11136_s14 + $0x1] ss:$0 sm:$0xff]  ;;  %s11171_s14 = sld [smem:[#allocation6_spill]] }
0x1554   : > { %8924 = vmatprep.mubr.msk.f32.mxu1 %vm1437_vm2, %v3174_v32 }
0x1555   : > { %8925 = vmatmul.mubr.msk.f32.vlgmr.msra.gmra.mxu1 %vm1437_vm2, %v3175_v33 }
0x1556   : > { %8928 = vmatpush3.xpose.msk.msra.mxu1 %vm1353_vm1, %v3271_v42  ;;  %8931 = vmatprep.mubr.msk.f32.mxu1 %vm1353_vm1, %v3265_v34 }
0x1557   : > { %8929 = vmatprep.subr.msk.mxu1 %vm1353_vm1, %v3269_v35 }
0x155a   : > { %8930 = vmatpush3.xpose.msk.msra.mxu1 %vm1353_vm1, %v3269_v35 }
0x155d   : > { %8932 = vmatmul.mubr.msk.f32.vlgmr.msra.gmra.mxu1 %vm1353_vm1, %v3267_v36 }
0x1615   : > { %v8926_v37 = vpop.f32.mrf.mxu1 }
0x1617   : > { %v3255_v5 = vpop.f32.mrf.mxu1 }
0x161d   : > { %v8933_v38 = vpop.f32.mrf.mxu1 }
0x161e   : > { %v3352_v39 = vadd.f32 %v10257_v11, %v8933_v38  ;;  %v8345_v38 = vld [vmem:[%s11133_s30 + $0x38] sm:$0xff] }
0x161f   : > { %v3346_v40 = vpop.f32.mrf.mxu1  ;;  %8952 = vmatprep.subr.mxu1 %v8345_v38 }
0x1620   : > { %v3347_v4 = vadd.f32 %v10257_v11, %v3346_v40  ;;  %v3358_v41 = vsel %vm1441_vm3, %v3352_v39, -inf  ;;  %8953 = vmatpush3.msra.mxu1 %v8345_v38  ;;  %v8343_v40 = vld [vmem:[%s11133_s30 + $0x28] sm:$0xff] }
0x1621   : > { %3359 = vmax.xlane.f32.xlu1 %v3358_v41  ;;  %v9702_v41 = vmov 0.0  }
0x1622   : > { %v3355_v44 = vsel %vm1437_vm2, %v3347_v4, -inf }
0x1623   : > { %3356 = vmax.xlane.f32.xlu0 %v3355_v44  ;;  %v8350_v44 = vld [vmem:[%s11131_s12 + $0x38] sm:$0xff] }
0x1632   : > { %3379 = vrot.lane.b32.xlu1 %v10176_v62, %s11166_s15 }
0x1636   : > { %3467 = vrot.lane.b32.xlu1 %v10254_v7, %s11167_s22  ;;  %v8300_v7 = vld [vmem:[%s11137_s8 + $0x28] sm:$0xff] }
0x163a   : > { %3469 = vrot.lane.b32.xlu1 %v10252_v6, %s11167_s22  ;;  %v8301_v6 = vld [vmem:[%s11137_s8 + $0x30] sm:$0xff] }
0x163e   : > { %3477 = vrot.lane.b32.xlu1 %v8926_v37, %s11168_s7 }
0x16aa   : > { %v3360_v45 = vpop.xlane.xlu1 %3359 }
0x16ab   : > { %v3362_v46 = vsub.f32 %v3352_v39, %v3360_v45  ;;  %v8344_v39 = vld [vmem:[%s11133_s30 + $0x30] sm:$0xff] }
0x16ac   : > { %v3357_v47 = vpop.xlane.xlu0 %3356  ;;  %8954 = vmatprep.subr.mxu1 %v8344_v39  ;;  %v8349_v45 = vld [vmem:[%s11131_s12 + $0x30] sm:$0xff] }
0x16ad   : > { %v3365_v48 = vmul.f32 1.442695, %v3362_v46  ;;  %v3361_v49 = vsub.f32 %v3347_v4, %v3357_v47  ;;  %8955 = vmatpush3.msra.mxu1 %v8344_v39  ;;  %v8342_v4 = vld [vmem:[%s11133_s30 + $0x20] sm:$0xff]  ;;  %s11172_s30 = sld [smem:[#allocation24_spill]] }
0x16ae   : > { %v3380_v50 = vpop.permute.xlu1 %3379  ;;  %8956 = vmatprep.subr.mxu1 %v8343_v40 }
0x16af   : > { %9491 = vpow2.f32 %v3365_v48  ;;  %v3363_v51 = vmul.f32 1.442695, %v3361_v49  ;;  %8934 = vmatprep.subr.msk.mxu0 %vm1472_vm4, %v3380_v50  ;;  %8957 = vmatpush3.msra.mxu1 %v8343_v40 }
0x16b0   : > { %8935 = vmatpush3.msk.msra.mxu0 %vm1472_vm4, %v3380_v50  ;;  %8958 = vmatprep.subr.mxu1 %v8342_v4 }
0x16b1   : > { %9493 = vpow2.f32 %v3363_v51  ;;  %8959 = vmatpush3.msra.mxu1 %v8342_v4 }
0x16b2   : > { %v3468_v15 = vpop.permute.xlu1 %3467  ;;  %8974 = vmatprep.subr.mxu1 %v9702_v41 }
0x16b3   : > { %v3489_v19 = vsel %vm1353_vm1, %v10250_v3, %v3468_v15  ;;  %v8348_v15 = vld [vmem:[%s11131_s12 + $0x28] sm:$0xff] }
0x16b6   : > { %v3470_v16 = vpop.permute.xlu1 %3469 }
0x16b7   : > { %v3490_v21 = vsel %vm1353_vm1, %v10248_v2, %v3470_v16  ;;  %v8347_v16 = vld [vmem:[%s11131_s12 + $0x20] sm:$0xff]  ;;  %s11177_s12 = sshll.u32 %s9958_s11, 3 }
0x16ba   : > { %v3478_v17 = vpop.permute.xlu1 %3477 }
0x16bb   : > { %v3492_v24 = vsel %vm2179_vm5, %v3490_v21, %v3478_v17  ;;  %v8354_v17 = vld [vmem:[%s11132_s6 + $0x1] ss:$0 sm:$0xff]  ;;  %s11176_s6 = sld [smem:[#allocation26_spill]] }
0x16bc   : > { %v9492_v62 = vpop.eup %9491 }
0x16bd   : > { %v3370_v52 = vsel %vm1441_vm3, %v9492_v62, 0.0 }
0x16be   : > { %v9494_v53 = vpop.eup %9493  ;;  %3371 = vadd.xlane.f32.xlu0 %v3370_v52  ;;  %v8340_v52 = vld [vmem:[%s11135_s19 + $0x1] ss:$0 sm:$0xff]  ;;  %s11081_s19 = sshll.u32 %s9958_s11, 3 }
0x16bf   : > { %v3367_v54 = vsel %vm1437_vm2, %v9494_v53, 0.0 }
0x16c2   : > { %3368 = vadd.xlane.f32.xlu0 %v3367_v54  ;;  %v8341_v54 = vld [vmem:[%s11134_s24 + $0x1] ss:$0 sm:$0xff]  ;;  %s1218_s24 = scalar_lea.vmem %s11171_s14, %s11081_s19  ;;  %s11173_s14 = sld [smem:[#allocation8_spill]] }
0x16c3   : > { %s11175_s19 = sld [smem:[#allocation10_spill]] }
0x16d8   : > { %3377 = vrot.lane.b32.xlu0 %v10178_v0, %s11166_s15  ;;  %v8302_v0 = vld [vmem:[%s11137_s8 + $0x38] sm:$0xff]  ;;  %s11170_s8 = sld [smem:[#allocation23_spill]] }
0x16dc   : > { %3475 = vrot.lane.b32.xlu0 %v3255_v5, %s11168_s7 }
0x1747   : > { %v3372_v55 = vpop.xlane.xlu0 %3371 }
0x1748   : > { %9495 = vrcp.f32 %v3372_v55 }
0x174b   : > { %v3369_v56 = vpop.xlane.xlu0 %3368 }
0x174c   : > { %9497 = vrcp.f32 %v3369_v56 }
0x174f   : > { %v3378_v57 = vpop.permute.xlu0 %3377 }
0x1750   : > { %8936 = vmatprep.subr.mxu0 %v3378_v57 }
0x1751   : > { %8937 = vmatpush3.msra.mxu0 %v3378_v57 }
0x1752   : > { %8941 = vmatprep.subr.mxu0 %v8302_v0 }
0x1753   : > { %v3476_v18 = vpop.permute.xlu0 %3475 }
0x1754   : > { %v3491_v22 = vsel %vm2179_vm5, %v3489_v19, %v3476_v18 }
0x1755   : > { %v9496_v59 = vpop.eup %9495 }
0x1756   : > { %v3376_v63 = vmul.f32 %v9496_v59, %v9492_v62 }
0x1759   : > { %v9498_v60 = vpop.eup %9497 }
0x175a   : > { %v3375_v61 = vmul.f32 %v9498_v60, %v9494_v53 }
0x175c   : > { %8938 = vmatprep.mubr.msk.f32.mxu0 %vm1437_vm2, %v3375_v61 }
0x175d   : > { %8939 = vmatmul.mubr.msk.f32.vlgmr.msra.gmra.mxu0 %vm1437_vm2, %v3376_v63 }
0x175e   : > { %8942 = vmatpush3.msra.mxu0 %v8302_v0 }
0x175f   : > { %8943 = vmatprep.subr.mxu0 %v8301_v6 }
0x1760   : > { %8944 = vmatpush3.msra.mxu0 %v8301_v6  ;;  %v3866_v6 = vld [vmem:[%s11170_s8 + $0x18] sm:$0xff] }
0x1761   : > { %8945 = vmatprep.subr.mxu0 %v8300_v7 }
0x1762   : > { %8946 = vmatpush3.msra.mxu0 %v8300_v7  ;;  %v3865_v7 = vld [vmem:[%s11170_s8 + $0x10] sm:$0xff] }
0x1763   : > { %8947 = vmatprep.subr.mxu0 %v8299_v9 }
0x1764   : > { %8948 = vmatpush3.msra.mxu0 %v8299_v9  ;;  %v3864_v9 = vld [vmem:[%s11170_s8 + $0x8] sm:$0xff] }
0x1765   : > { %8963 = vmatprep.subr.mxu0 %v8350_v44 }
0x181d   : > { %v8940_v12 = vpop.f32.mrf.mxu0 }
0x181e   : > { %3485 = vrot.lane.b32.xlu1 %v8940_v12, %s11169_s25  ;;  %v3863_v12 = vld [vmem:[%s11170_s8] sm:$0xff] }
0x181f   : > { %v3456_v13 = vpop.f32.mrf.mxu0 }
0x1820   : > { %3483 = vrot.lane.b32.xlu0 %v3456_v13, %s11169_s25  ;;  %v10361_v13 = vld [vmem:[%s1218_s24] sm:$0xff]  ;;  %s10417_s24 = scalar_lea.vmem %s11173_s14, %s9958_s11  ;;  %s11174_s14 = sld [smem:[#allocation25_spill]] }
0x1821   : > { %s11182_s11 = sld [smem:[#allocation31_spill]] }
0x1890   : > { %v3486_v20 = vpop.permute.xlu1 %3485 }
0x1891   : > { %v3494_v26 = vsel %vm2182_vm6, %v3492_v24, %v3486_v20  ;;  %v8360_v24 = vld [vmem:[%s11172_s30] ss:$0 sm:$0xff] }
0x1892   : > { %v3484_v23 = vpop.permute.xlu0 %3483 }
0x1893   : > { %v3493_v25 = vsel %vm2182_vm6, %v3491_v22, %v3484_v23 }
0x1894   : > { %8949 = vmatprep.mubr.msk.f32.mxu0 %vm1259_vm0, %v3493_v25 }
0x1895   : > { %8950 = vmatmul.mubr.msk.f32.vlgmr.msra.gmra.mxu0 %vm1259_vm0, %v3494_v26 }
0x1896   : > { %8964 = vmatpush3.xpose.msra.mxu0 %v8350_v44 }
0x1897   : > { %8965 = vmatprep.subr.mxu0 %v8349_v45 }
0x189a   : > { %8966 = vmatpush3.xpose.msra.mxu0 %v8349_v45 }
0x189b   : > { %8967 = vmatprep.subr.mxu0 %v8348_v15 }
0x189e   : > { %8968 = vmatpush3.xpose.msra.mxu0 %v8348_v15 }
0x189f   : > { %8969 = vmatprep.subr.mxu0 %v8347_v16 }
0x18a2   : > { %8970 = vmatpush3.xpose.msra.mxu0 %v8347_v16 }
0x18a3   : > { %8995 = vmatprep.subr.mxu0 %v9702_v41 }
0x1955   : > { %v8951_v43 = vpop.f32.mrf.mxu0 }
0x1956   : > { %v3579_v3 = vadd.f32 %v8951_v43, %v8337_v27 }
0x1957   : > { %v3573_v28 = vpop.f32.mrf.mxu0 }
0x1958   : > { %v3583_v29 = vadd.f32 %v3579_v3, %v10171_v8  ;;  %v3574_v2 = vadd.f32 %v8337_v27, %v3573_v28 }
0x195a   : > { %v3587_v30 = vsel %vm2277_vm7, %v3583_v29, 0.0  ;;  %v3582_v42 = vadd.f32 %v3574_v2, %v10166_v58 }
0x195b   : > { %3588 = vadd.xlane.f32.xlu1 %v3587_v30 }
0x195c   : > { %v3584_v14 = vsel %vm1259_vm0, %v3582_v42, 0.0 }
0x195d   : > { %3585 = vadd.xlane.f32.xlu0 %v3584_v14 }
0x19e4   : > { %v3589_v31 = vpop.xlane.xlu1 %3588 }
0x19e5   : > { %v3591_v32 = vmul.f32 0.03125, %v3589_v31  ;;  %v8362_v31 = vld [vmem:[%s10417_s24] ss:$0 sm:$0xff] }
0x19e6   : > { %v3586_v33 = vpop.xlane.xlu0 %3585 }
0x19e7   : > { %v3590_v34 = vmul.f32 0.03125, %v3586_v33  ;;  %v3593_v35 = vsub.f32 %v3583_v29, %v3591_v32 }
0x19e9   : > { %v3592_v36 = vsub.f32 %v3582_v42, %v3590_v34  ;;  %v3595_v5 = vmul.f32 %v3593_v35, %v3593_v35 }
0x19eb   : > { %v3594_v8 = vmul.f32 %v3592_v36, %v3592_v36  ;;  %v3599_v58 = vsel %vm2277_vm7, %v3595_v5, 0.0 }
0x19ed   : > { %v3596_v37 = vsel %vm1259_vm0, %v3594_v8, 0.0 }
0x19ee   : > { %3597 = vadd.xlane.f32.xlu0 %v3596_v37 }
0x19f2   : > { %3600 = vadd.xlane.f32.xlu0 %v3599_v58 }
0x1a77   : > { %v3598_v46 = vpop.xlane.xlu0 %3597 }
0x1a78   : > { %v3602_v47 = vmul.f32 0.03125, %v3598_v46 }
0x1a7a   : > { %v3604_v48 = vadd.f32 1e-05, %v3602_v47 }
0x1a7b   : > { %v3601_v49 = vpop.xlane.xlu0 %3600 }
0x1a7c   : > { %9499 = vrsqrt.f32 %v3604_v48  ;;  %v3603_v50 = vmul.f32 0.03125, %v3601_v49 }
0x1a7e   : > { %v3605_v51 = vadd.f32 1e-05, %v3603_v50 }
0x1a80   : > { %9501 = vrsqrt.f32 %v3605_v51 }
0x1a89   : > { %v9500_v62 = vpop.eup %9499 }
0x1a8a   : > { %v3608_v53 = vmul.f32 %v9500_v62, %v3592_v36 }
0x1a8c   : > { %v3616_v55 = vmul.f32 %v8340_v52, %v3608_v53 }
0x1a8d   : > { %v9502_v56 = vpop.eup %9501 }
0x1a8e   : > { %v3609_v57 = vmul.f32 %v9502_v56, %v3593_v35  ;;  %v3624_v59 = vadd.f32 %v8341_v54, %v3616_v55 }
0x1a90   : > { %v3617_v60 = vmul.f32 %v8340_v52, %v3609_v57  ;;  %v10340_v61 = vmul.f32 %v3624_v59, %v10143_v1 }
0x1a92   : > { %v3625_v63 = vadd.f32 %v8341_v54, %v3617_v60  ;;  %8960 = vmatprep.mubr.msk.f32.mxu1 %vm1259_vm0, %v10340_v61 }
0x1a94   : > { %v10345_v0 = vmul.f32 %v3625_v63, %v10146_v10 }
0x1a96   : > { %8961 = vmatmul.mubr.msk.f32.vlgmr.msra.gmra.mxu1 %vm1259_vm0, %v10345_v0 }
0x1a97   : > { %8975 = vmatpush3.msra.mxu1 %v3866_v6  ;;  %8982 = vmatprep.mubr.msk.f32.mxu1 %vm9703_vm8, %v9702_v41 }
0x1a98   : > { %8976 = vmatprep.subr.mxu1 %v9702_v41 }
0x1a99   : > { %8977 = vmatpush3.msra.mxu1 %v3865_v7 }
0x1a9a   : > { %8978 = vmatprep.subr.mxu1 %v9702_v41 }
0x1a9b   : > { %8979 = vmatpush3.msra.mxu1 %v3864_v9 }
0x1a9c   : > { %8980 = vmatprep.subr.mxu1 %v9702_v41 }
0x1a9d   : > { %8981 = vmatpush3.msra.mxu1 %v3863_v12 }
0x1a9e   : > { %8983 = vmatmul.mubr.msk.f32.vlgmr.msra.gmra.mxu1 %vm1259_vm0, %v10361_v13  ;;  %8985 = vmatprep.subr.mxu1 %v9702_v41 }
0x1a9f   : > { %8987 = vmatprep.mubr.msk.f32.mxu1 %vm9703_vm8, %v9702_v41 }
0x1b56   : > { %v8962_v18 = vpop.f32.mrf.mxu1 }
0x1b57   : > { %v3730_v19 = vadd.f32 %v8962_v18, %v8354_v17 }
0x1b58   : > { %v3724_v20 = vpop.f32.mrf.mxu1 }
0x1b59   : > { %v3725_v21 = vadd.f32 %v8354_v17, %v3724_v20  ;;  %v3734_v23 = vmax.f32 %v3730_v19, 0.0 }
0x1b5b   : > { %v3733_v22 = vmax.f32 %v3725_v21, 0.0 }
0x1b5d   : > { %8971 = vmatprep.mubr.f32.mxu0 %v3733_v22 }
0x1b5e   : > { %v3950_v25 = vpop.f32.mrf.mxu1  ;;  %8972 = vmatmul.mubr.f32.vlgmr.msra.gmra.mxu0 %v3734_v23 }
0x1b5f   : > { %v10374_v26 = vadd.f32 %v8360_v24, %v3950_v25  ;;  %8997 = vmatprep.mubr.msk.f32.mxu0 %vm9703_vm8, %v9702_v41 }
0x1b60   : > { %v8984_v27 = vpop.f32.mrf.mxu1 }
0x1b61   : > { %4126 = vrot.lane.b32.xlu0 %v10374_v26, %s11157_s1  ;;  %3961 = vrot.lane.b32.xlu1 %v10374_v26, %s11156_s23 }
0x1b65   : > { %4289 = vrot.lane.b32.xlu0 %v10374_v26, %s11162_s2  ;;  %4124 = vrot.lane.b32.xlu1 %v10374_v26, %s11158_s3 }
0x1b69   : > { %4454 = vrot.lane.b32.xlu0 %v10374_v26, %s11165_s10  ;;  %4291 = vrot.lane.b32.xlu1 %v10374_v26, %s11161_s29 }
0x1b6d   : > { %4456 = vrot.lane.b32.xlu1 %v10374_v26, %s11164_s26 }
0x1bd3   : > { %v4127_v43 = vpop.permute.xlu0 %4126  ;;  %v3962_v3 = vpop.permute.xlu1 %3961 }
0x1bd4   : > { %8986 = vmatpush3.xpose.msk.msra.mxu1 %vm1353_vm1, %v3962_v3  ;;  %8996 = vmatpush3.xpose.msk.msra.mxu0 %vm1353_vm1, %v4127_v43 }
0x1bd5   : > { %9005 = vmatprep.subr.mxu0 %v9702_v41  ;;  %8990 = vmatprep.subr.mxu1 %v9702_v41 }
0x1bd7   : > { %8988 = vmatmul.mubr.msk.f32.vlgmr.msra.gmra.mxu1 %vm1353_vm1, %v10374_v26  ;;  %v4125_v28 = vpop.permute.xlu1 %4124  ;;  %v4290_v2 = vpop.permute.xlu0 %4289 }
0x1bd8   : > { %8998 = vmatmul.mubr.msk.f32.vlgmr.msra.gmra.mxu0 %vm1353_vm1, %v4125_v28  ;;  %8992 = vmatprep.mubr.msk.f32.mxu1 %vm9703_vm8, %v9702_v41 }
0x1bd9   : > { %9007 = vmatprep.mubr.msk.f32.mxu0 %vm9703_vm8, %v9702_v41 }
0x1bdb   : > { %v4292_v29 = vpop.permute.xlu1 %4291  ;;  %v4455_v42 = vpop.permute.xlu0 %4454 }
0x1bdc   : > { %9006 = vmatpush3.xpose.msk.msra.mxu0 %vm1353_vm1, %v4292_v29 }
0x1bdd   : > { %9015 = vmatprep.subr.mxu0 %v9702_v41 }
0x1bdf   : > { %v4457_v30 = vpop.permute.xlu1 %4456  ;;  %9008 = vmatmul.mubr.msk.f32.vlgmr.msra.gmra.mxu0 %vm1353_vm1, %v4290_v2 }
0x1be0   : > { %9016 = vmatpush3.xpose.msk.msra.mxu0 %vm1353_vm1, %v4457_v30  ;;  %9017 = vmatprep.mubr.msk.f32.mxu0 %vm9703_vm8, %v9702_v41  ;;  %v3871_v30 = vld [vmem:[%s11174_s14 + $0x18] sm:$0xff] }
0x1be1   : > { %9025 = vmatprep.subr.mxu0 %v9702_v41 }
0x1be3   : > { %9018 = vmatmul.mubr.msk.f32.vlgmr.msra.gmra.mxu0 %vm1353_vm1, %v4455_v42 }
0x1be4   : > { %9033 = vmatprep.mubr.msk.f32.mxu0 %vm9703_vm8, %v9702_v41  ;;  %9026 = vmatpush3.msra.mxu0 %v3871_v30 }
0x1be5   : > { %9027 = vmatprep.subr.mxu0 %v9702_v41 }
0x1c1e   : > { %v10413_v14 = vpop.f32.mrf.mxu0 }
0x1c20   : > { %v10420_v32 = vpop.f32.mrf.mxu0 }
0x1c97   : > { %v4033_v33 = vpop.f32.mrf.mxu1 }
0x1c98   : > { %v4034_v34 = vadd.f32 %v8362_v31, %v4033_v33  ;;  %v4198_v35 = vpop.f32.mrf.mxu0 }
0x1c99   : > { %v4199_v36 = vadd.f32 %v8362_v31, %v4198_v35  ;;  %v8989_v8 = vpop.f32.mrf.mxu1  ;;  %v3870_v35 = vld [vmem:[%s11174_s14 + $0x10] sm:$0xff] }
0x1c9a   : > { %v8999_v37 = vpop.f32.mrf.mxu0  ;;  %v4037_v5 = vsel %vm1353_vm1, %v4034_v34, -inf  ;;  %9028 = vmatpush3.msra.mxu0 %v3870_v35  ;;  %v3868_v8 = vld [vmem:[%s11174_s14] sm:$0xff] }
0x1c9b   : > { %4038 = vmax.xlane.f32.xlu1 %v4037_v5  ;;  %v4202_v58 = vsel %vm1353_vm1, %v4199_v36, -inf  ;;  %9029 = vmatprep.subr.mxu0 %v9702_v41 }
0x1c9c   : > { %4203 = vmax.xlane.f32.xlu0 %v4202_v58 }
0x1c9f   : > { %v4363_v38 = vpop.f32.mrf.mxu0 }
0x1ca0   : > { %v4364_v39 = vadd.f32 %v8362_v31, %v4363_v38 }
0x1ca1   : > { %v9009_v40 = vpop.f32.mrf.mxu0 }
0x1ca2   : > { %v4367_v4 = vsel %vm1353_vm1, %v4364_v39, -inf }
0x1ca3   : > { %4368 = vmax.xlane.f32.xlu0 %v4367_v4  ;;  %v4528_v44 = vpop.f32.mrf.mxu0 }
0x1ca4   : > { %v4529_v45 = vadd.f32 %v8362_v31, %v4528_v44 }
0x1ca5   : > { %v9019_v46 = vpop.f32.mrf.mxu0 }
0x1ca6   : > { %v4532_v47 = vsel %vm1353_vm1, %v4529_v45, -inf }
0x1ca7   : > { %4533 = vmax.xlane.f32.xlu1 %v4532_v47 }
0x1cb8   : > { %4213 = vrot.lane.b32.xlu1 %v10374_v26, %s11160_s21 }
0x1d24   : > { %v4039_v48 = vpop.xlane.xlu1 %4038 }
0x1d25   : > { %v4040_v49 = vsub.f32 %v4034_v34, %v4039_v48  ;;  %v4204_v50 = vpop.xlane.xlu0 %4203 }
0x1d26   : > { %v4205_v51 = vsub.f32 %v4199_v36, %v4204_v50  ;;  %v3869_v36 = vld [vmem:[%s11174_s14 + $0x8] sm:$0xff] }
0x1d27   : > { %v4041_v62 = vmul.f32 1.442695, %v4040_v49  ;;  %9030 = vmatpush3.msra.mxu0 %v3869_v36 }
0x1d28   : > { %v4206_v52 = vmul.f32 1.442695, %v4205_v51  ;;  %9031 = vmatprep.subr.mxu0 %v9702_v41 }
0x1d29   : > { %9503 = vpow2.f32 %v4041_v62  ;;  %9032 = vmatpush3.msra.mxu0 %v3868_v8 }
0x1d2a   : > { %9505 = vpow2.f32 %v4206_v52 }
0x1d2c   : > { %v4369_v7 = vpop.xlane.xlu0 %4368 }
0x1d2d   : > { %v4370_v9 = vsub.f32 %v4364_v39, %v4369_v7  ;;  %v8357_v39 = vld [vmem:[%s11130_s20 + $0x1] ss:$0 sm:$0xff]  ;;  %s1233_s20 = scalar_lea.vmem %s11175_s19, %s11177_s12  ;;  %s11179_s19 = sld [smem:[#allocation27_spill]] }
0x1d2e   : > { %v3808_v40 = vadd.f32 %v8357_v39, %v10420_v32  ;;  %s11180_s12 = sld [smem:[#allocation28_spill]] }
0x1d2f   : > { %v4371_v12 = vmul.f32 1.442695, %v4370_v9 }
0x1d30   : > { %v4534_v53 = vpop.xlane.xlu1 %4533  ;;  %v3816_v4 = vadd.f32 %v3808_v40, %v10340_v61 }
0x1d31   : > { %v4535_v54 = vsub.f32 %v4529_v45, %v4534_v53  ;;  %v3813_v45 = vadd.f32 %v10413_v14, %v8357_v39 }
0x1d32   : > { %v3818_v44 = vsel %vm1259_vm0, %v3816_v4, 0.0 }
0x1d33   : > { %v4536_v55 = vmul.f32 1.442695, %v4535_v54  ;;  %v3817_v46 = vadd.f32 %v3813_v45, %v10345_v0  ;;  %v1238_v54 = vld [vmem:[%s1233_s20] sm:$0xff]  ;;  %s11181_s20 = sld [smem:[#allocation30_spill]] }
0x1d34   : > { %v4214_v17 = vpop.permute.xlu1 %4213 }
0x1d35   : > { %9507 = vpow2.f32 %v4536_v55  ;;  %v3821_v47 = vsel %vm2277_vm7, %v3817_v46, 0.0 }
0x1d36   : > { %v9504_v56 = vpop.eup %9503  ;;  %9509 = vpow2.f32 %v4371_v12 }
0x1d37   : > { %v9506_v57 = vpop.eup %9505  ;;  %v4043_v59 = vsel %vm1353_vm1, %v9504_v56, 0.0 }
0x1d38   : > { %4044 = vadd.xlane.f32.xlu0 %v4043_v59  ;;  %v4208_v60 = vsel %vm1353_vm1, %v9506_v57, 0.0 }
0x1d39   : > { %4209 = vadd.xlane.f32.xlu1 %v4208_v60 }
0x1d42   : > { %v9508_v63 = vpop.eup %9507 }
0x1d43   : > { %v4538_v6 = vsel %vm1353_vm1, %v9508_v63, 0.0  ;;  %v9510_v15 = vpop.eup %9509 }
0x1d44   : > { %4539 = vadd.xlane.f32.xlu1 %v4538_v6  ;;  %v4373_v16 = vsel %vm1353_vm1, %v9510_v15, 0.0 }
0x1d4e   : > { %4048 = vrot.lane.b32.xlu0 %v10374_v26, %s11159_s13 }
0x1d55   : > { %4378 = vrot.lane.b32.xlu1 %v10374_v26, %s11163_s18 }
0x1d6d   : > { %4374 = vadd.xlane.f32.xlu0 %v4373_v16  ;;  %v4750_v16 = vld [vmem:[%s11178_s0 + $0x18] sm:$0xff] }
0x1d6e   : > { %9047 = vmatprep.subr.mxu0 %v4750_v16 }
0x1d83   : > { %4543 = vrot.lane.b32.xlu0 %v10374_v26, %s11166_s15 }
0x1dc1   : > { %v4045_v18 = vpop.xlane.xlu0 %4044 }
0x1dc2   : > { %9511 = vrcp.f32 %v4045_v18  ;;  %v4210_v19 = vpop.xlane.xlu1 %4209  ;;  %v4748_v18 = vld [vmem:[%s11178_s0 + $0x8] sm:$0xff] }
0x1dc3   : > { %9513 = vrcp.f32 %v4210_v19 }
0x1dc5   : > { %v4049_v20 = vpop.permute.xlu0 %4048 }
0x1dc6   : > { %8991 = vmatpush3.msra.mxu1 %v4049_v20 }
0x1dc7   : > { %9000 = vmatprep.subr.mxu1 %v9702_v41 }
0x1dcd   : > { %v4540_v22 = vpop.xlane.xlu1 %4539 }
0x1dcf   : > { %v9512_v21 = vpop.eup %9511 }
0x1dd0   : > { %v4047_v23 = vmul.f32 %v9512_v21, %v9504_v56  ;;  %v9514_v24 = vpop.eup %9513 }
0x1dd1   : > { %v4212_v25 = vmul.f32 %v9514_v24, %v9506_v57  ;;  %v4379_v26 = vpop.permute.xlu1 %4378  ;;  %v8375_v57 = vld [vmem:[%s11176_s6] ss:$0 sm:$0xff] }
0x1dd2   : > { %8993 = vmatmul.mubr.msk.f32.vlgmr.msra.gmra.mxu1 %vm1353_vm1, %v4047_v23 }
0x1dd3   : > { %9001 = vmatpush3.msra.mxu1 %v4214_v17  ;;  %9002 = vmatprep.mubr.msk.f32.mxu1 %vm9703_vm8, %v9702_v41  ;;  %v4749_v17 = vld [vmem:[%s11178_s0 + $0x10] sm:$0xff] }
0x1dd4   : > { %9010 = vmatprep.subr.mxu1 %v9702_v41 }
0x1dd6   : > { %9003 = vmatmul.mubr.msk.f32.vlgmr.msra.gmra.mxu1 %vm1353_vm1, %v4212_v25 }
0x1dd7   : > { %9011 = vmatpush3.msra.mxu1 %v4379_v26  ;;  %9012 = vmatprep.mubr.msk.f32.mxu1 %vm9703_vm8, %v9702_v41 }
0x1dd8   : > { %9020 = vmatprep.subr.mxu1 %v9702_v41 }
0x1df6   : > { %v4375_v27 = vpop.xlane.xlu0 %4374 }
0x1df7   : > { %9515 = vrcp.f32 %v4375_v27 }
0x1df8   : > { %9517 = vrcp.f32 %v4540_v22 }
0x1dfa   : > { %v4544_v29 = vpop.permute.xlu0 %4543 }
0x1e04   : > { %v9516_v43 = vpop.eup %9515 }
0x1e05   : > { %v4377_v3 = vmul.f32 %v9516_v43, %v9510_v15  ;;  %v9518_v28 = vpop.eup %9517 }
0x1e06   : > { %v4542_v2 = vmul.f32 %v9518_v28, %v9508_v63 }
0x1e07   : > { %9013 = vmatmul.mubr.msk.f32.vlgmr.msra.gmra.mxu1 %vm1353_vm1, %v4377_v3 }
0x1e08   : > { %9021 = vmatpush3.msra.mxu1 %v4544_v29  ;;  %9022 = vmatprep.mubr.msk.f32.mxu1 %vm9703_vm8, %v9702_v41 }
0x1e09   : > { %9036 = vmatprep.subr.mxu1 %v9702_v41 }
0x1e0b   : > { %9023 = vmatmul.mubr.msk.f32.vlgmr.msra.gmra.mxu1 %vm1353_vm1, %v4542_v2  ;;  %v8358_v2 = vld [vmem:[%s11129_s27 + $0x1] ss:$0 sm:$0xff]  ;;  %s11184_s27 = sld [smem:[#allocation35_spill]] }
0x1e0c   : > { %9044 = vmatprep.mubr.msk.f32.mxu1 %vm9703_vm8, %v9702_v41  ;;  %9037 = vmatpush3.msra.mxu1 %v4750_v16 }
0x1e0d   : > { %9038 = vmatprep.subr.mxu1 %v9702_v41 }
0x1e0e   : > { %9039 = vmatpush3.msra.mxu1 %v4749_v17 }
0x1e0f   : > { %9040 = vmatprep.subr.mxu1 %v9702_v41 }
0x1e10   : > { %9041 = vmatpush3.msra.mxu1 %v4748_v18 }
0x1e11   : > { %9042 = vmatprep.subr.mxu1 %v9702_v41 }
0x1e92   : > { %v4120_v42 = vpop.f32.mrf.mxu1 }
0x1e94   : > { %v8994_v31 = vpop.f32.mrf.mxu1 }
0x1e95   : > { %v8359_v31 = vld [vmem:[%s11155_s5 + $0x1] ss:$0 sm:$0xff]  ;;  %s11183_s5 = sld [smem:[#allocation32_spill]] }
0x1e96   : > { %v4285_v33 = vpop.f32.mrf.mxu1 }
0x1e97   : > { %4620 = vrot.lane.b32.xlu1 %v4285_v33, %s11167_s22 }
0x1e98   : > { %v9004_v34 = vpop.f32.mrf.mxu1 }
0x1ec7   : > { %v4450_v37 = vpop.f32.mrf.mxu1 }
0x1ec8   : > { %4624 = vrot.lane.b32.xlu0 %v4450_v37, %s11168_s7 }
0x1ec9   : > { %v9014_v5 = vpop.f32.mrf.mxu1 }
0x1ecb   : > { %v4615_v58 = vpop.f32.mrf.mxu1 }
0x1ecc   : > { %4628 = vrot.lane.b32.xlu1 %v4615_v58, %s11169_s25 }
0x1ecd   : > { %v9024_v38 = vpop.f32.mrf.mxu1 }
0x1ee7   : > { %3819 = vadd.xlane.f32.xlu0 %v3818_v44 }
0x1ef0   : > { %3822 = vadd.xlane.f32.xlu1 %v3821_v47  ;;  %v8379_v47 = vld [vmem:[%s11181_s20] ss:$0 sm:$0xff] }
0x1f09   : > { %v4621_v48 = vpop.permute.xlu1 %4620 }
0x1f0a   : > { %v4631_v50 = vsel %vm1353_vm1, %v4120_v42, %v4621_v48 }
0x1f3a   : > { %v4625_v49 = vpop.permute.xlu0 %4624 }
0x1f3b   : > { %v4632_v32 = vsel %vm2179_vm5, %v4631_v50, %v4625_v49 }
0x1f3e   : > { %v4629_v61 = vpop.permute.xlu1 %4628 }
0x1f3f   : > { %v4633_v51 = vsel %vm2182_vm6, %v4632_v32, %v4629_v61 }
0x1f40   : > { %9034 = vmatmul.mubr.msk.f32.vlgmr.msra.gmra.mxu0 %vm1259_vm0, %v4633_v51 }
0x1f41   : > { %9048 = vmatpush3.msra.mxu0 %v4750_v16 }
0x1f42   : > { %9049 = vmatprep.subr.mxu0 %v4749_v17 }
0x1f43   : > { %9050 = vmatpush3.msra.mxu0 %v4749_v17 }
0x1f44   : > { %9051 = vmatprep.subr.mxu0 %v4748_v18 }
0x1f45   : > { %9052 = vmatpush3.msra.mxu0 %v4748_v18 }
0x1f70   : > { %v3820_v55 = vpop.xlane.xlu0 %3819 }
0x1f71   : > { %v3824_v56 = vmul.f32 0.03125, %v3820_v55 }
0x1f73   : > { %v3826_v60 = vsub.f32 %v3816_v4, %v3824_v56  ;;  %v8378_v4 = vld [vmem:[%s11180_s12] ss:$0 sm:$0xff] }
0x1f75   : > { %v3828_v12 = vmul.f32 %v3826_v60, %v3826_v60 }
0x1f77   : > { %v3830_v15 = vsel %vm1259_vm0, %v3828_v12, 0.0 }
0x1f79   : > { %v3823_v14 = vpop.xlane.xlu1 %3822 }
0x1f7a   : > { %v3825_v62 = vmul.f32 0.03125, %v3823_v14 }
0x1f7c   : > { %v3827_v0 = vsub.f32 %v3817_v46, %v3825_v62 }
0x1f7e   : > { %v3829_v52 = vmul.f32 %v3827_v0, %v3827_v0 }
0x1f80   : > { %v3833_v53 = vsel %vm2277_vm7, %v3829_v52, 0.0 }
0x1f81   : > { %3834 = vadd.xlane.f32.xlu1 %v3833_v53 }
0x1f92   : > { %4743 = vperm.xlu1 %9425, %v1238_v54  }
0x2000   : > { %v4709_v59 = vpop.f32.mrf.mxu0 }
0x2001   : > { %v4710_v63 = vadd.f32 %v8375_v57, %v4709_v59 }
0x2002   : > { %v9035_v6 = vpop.f32.mrf.mxu0 }
0x2003   : > { %v4713_v7 = vadd.f32 %v4710_v63, %v10361_v13  ;;  %v4747_v13 = vld [vmem:[%s11178_s0] sm:$0xff] }
0x2004   : > { %9053 = vmatprep.subr.mxu0 %v4747_v13  ;;  %9043 = vmatpush3.msra.mxu1 %v4747_v13  ;;  %v10555_v63 = vld [vmem:[%s9992_s28] ss:$0 sm:$0xff] }
0x2005   : > { %v4714_v9 = vsel %vm1259_vm0, %v4713_v7, 0.0  ;;  %9054 = vmatpush3.msra.mxu0 %v4747_v13  ;;  %9058 = vmatprep.subr.mxu1 %v9702_v41 }
0x2006   : > { %4715 = vadd.xlane.f32.xlu0 %v4714_v9  ;;  %9065 = vmatprep.subr.mxu0 %v9702_v41 }
0x200a   : > { %3831 = vadd.xlane.f32.xlu0 %v3830_v15  ;;  %v3835_v19 = vpop.xlane.xlu1 %3834 }
0x200b   : > { %v3837_v20 = vmul.f32 0.03125, %v3835_v19 }
0x200d   : > { %v3839_v21 = vadd.f32 1e-05, %v3837_v20 }
0x200e   : > { %v10509_v45 = vpop.permute.xlu1 %4743 }
0x200f   : > { %9519 = vrsqrt.f32 %v3839_v21 }
0x201c   : > { %v9520_v28 = vpop.eup %9519 }
0x201d   : > { %v3843_v29 = vmul.f32 %v9520_v28, %v3827_v0 }
0x201f   : > { %v3851_v42 = vmul.f32 %v8358_v2, %v3843_v29 }
0x2021   : > { %v3859_v35 = vadd.f32 %v8359_v31, %v3851_v42 }
0x2023   : > { %v10499_v37 = vmul.f32 %v3859_v35, %v10146_v10 }
0x208f   : > { %v4716_v22 = vpop.xlane.xlu0 %4715 }
0x2090   : > { %v4717_v23 = vmul.f32 0.03125, %v4716_v22 }
0x2092   : > { %v4718_v24 = vsub.f32 %v4713_v7, %v4717_v23 }
0x2093   : > { %v3832_v25 = vpop.xlane.xlu0 %3831 }
0x2094   : > { %v3836_v26 = vmul.f32 0.03125, %v3832_v25  ;;  %v4719_v27 = vmul.f32 %v4718_v24, %v4718_v24 }
0x2096   : > { %v3838_v43 = vadd.f32 1e-05, %v3836_v26  ;;  %v4720_v3 = vsel %vm1259_vm0, %v4719_v27, 0.0 }
0x2097   : > { %4721 = vadd.xlane.f32.xlu0 %v4720_v3 }
0x2098   : > { %9521 = vrsqrt.f32 %v3838_v43 }
0x20a5   : > { %v9522_v30 = vpop.eup %9521 }
0x20a6   : > { %v3842_v33 = vmul.f32 %v9522_v30, %v3826_v60 }
0x20a8   : > { %v3850_v34 = vmul.f32 %v8358_v2, %v3842_v33 }
0x20aa   : > { %v3858_v36 = vadd.f32 %v8359_v31, %v3850_v34 }
0x20ac   : > { %v10496_v8 = vmul.f32 %v3858_v36, %v10143_v1  ;;  %v8377_v1 = vld [vmem:[%s11179_s19] ss:$0 sm:$0xff] }
0x20ae   : > { %9055 = vmatprep.mubr.msk.f32.mxu0 %vm1259_vm0, %v10496_v8 }
0x20af   : > { %9056 = vmatmul.mubr.msk.f32.vlgmr.msra.gmra.mxu0 %vm1259_vm0, %v10499_v37 }
0x20b0   : > { %9069 = vmatprep.mubr.msk.f32.mxu0 %vm9703_vm8, %v9702_v41 }
0x2120   : > { %v4722_v5 = vpop.xlane.xlu0 %4721 }
0x2121   : > { %v4723_v58 = vmul.f32 0.03125, %v4722_v5 }
0x2123   : > { %v4724_v38 = vadd.f32 1e-05, %v4723_v58 }
0x2125   : > { %9523 = vrsqrt.f32 %v4724_v38 }
0x2132   : > { %v9524_v39 = vpop.eup %9523 }
0x2133   : > { %v4726_v40 = vmul.f32 %v9524_v39, %v4718_v24 }
0x2135   : > { %v4733_v10 = vmul.f32 %v8377_v1, %v4726_v40 }
0x2137   : > { %v4740_v44 = vadd.f32 %v8378_v4, %v4733_v10 }
0x2139   : > { %v10512_v46 = vmul.f32 %v10509_v45, %v4740_v44 }
0x213b   : > { %9045 = vmatmul.mubr.msk.f32.vlgmr.msra.gmra.mxu1 %vm1259_vm0, %v10512_v46 }
0x213c   : > { %9062 = vmatprep.mubr.msk.f32.mxu1 %vm9703_vm8, %v9702_v41 }
0x216f   : > { %v9057_v48 = vpop.f32.mrf.mxu0 }
0x2170   : > { %v10519_v49 = vadd.f32 %v9057_v48, %v8379_v47 }
0x2171   : > { %v4910_v50 = vpop.f32.mrf.mxu0 }
0x2172   : > { %v10521_v32 = vadd.f32 %v8379_v47, %v4910_v50  ;;  %4923 = vrot.lane.b32.xlu0 %v10519_v49, %s11156_s23 }
0x2174   : > { %4921 = vrot.lane.b32.xlu1 %v10521_v32, %s11156_s23 }
0x2176   : > { %5095 = vrot.lane.b32.xlu0 %v10521_v32, %s11157_s1 }
0x2178   : > { %5097 = vrot.lane.b32.xlu1 %v10519_v49, %s11157_s1 }
0x21e4   : > { %v4924_v61 = vpop.permute.xlu0 %4923 }
0x21e5   : > { %9059 = vmatpush3.xpose.msk.msra.mxu1 %vm1353_vm1, %v4924_v61 }
0x21e6   : > { %9060 = vmatprep.subr.mxu1 %v9702_v41  ;;  %v4922_v51 = vpop.permute.xlu1 %4921 }
0x21e8   : > { %v5096_v53 = vpop.permute.xlu0 %5095 }
0x21e9   : > { %9061 = vmatpush3.xpose.msk.msra.mxu1 %vm1353_vm1, %v4922_v51 }
0x21ea   : > { %9072 = vmatprep.subr.mxu1 %v9702_v41  ;;  %v5098_v52 = vpop.permute.xlu1 %5097 }
0x21fb   : > { %v4834_v14 = vpop.f32.mrf.mxu1 }
0x21fc   : > { %v10535_v62 = vadd.f32 %v8379_v47, %v4834_v14 }
0x21fd   : > { %v9046_v0 = vpop.f32.mrf.mxu1 }
0x21fe   : > { %5093 = vrot.lane.b32.xlu1 %v10535_v62, %s11158_s3  ;;  %9063 = vmatmul.mubr.msk.f32.vlgmr.msra.gmra.mxu1 %vm1353_vm1, %v10535_v62 }
0x21ff   : > { %9073 = vmatpush3.xpose.msk.msra.mxu1 %vm1353_vm1, %v5098_v52  ;;  %9076 = vmatprep.mubr.msk.f32.mxu1 %vm9703_vm8, %v9702_v41 }
0x2200   : > { %9074 = vmatprep.subr.mxu1 %v9702_v41 }
0x2203   : > { %9075 = vmatpush3.xpose.msk.msra.mxu1 %vm1353_vm1, %v5096_v53 }
0x2204   : > { %9093 = vmatprep.subr.mxu1 %v9702_v41 }
0x2270   : > { %v5094_v54 = vpop.permute.xlu1 %5093 }
0x2271   : > { %9077 = vmatmul.mubr.msk.f32.vlgmr.msra.gmra.mxu1 %vm1353_vm1, %v5094_v54 }
0x2272   : > { %9097 = vmatprep.mubr.msk.f32.mxu1 %vm9703_vm8, %v9702_v41 }
0x22be   : > { %v4998_v55 = vpop.f32.mrf.mxu1 }
0x22bf   : > { %v4999_v56 = vadd.f32 %v10257_v11, %v4998_v55 }
0x22c0   : > { %v9064_v57 = vpop.f32.mrf.mxu1 }
0x22c1   : > { %v5002_v59 = vsel %vm1437_vm2, %v4999_v56, -inf }
0x22c2   : > { %5003 = vmax.xlane.f32.xlu0 %v5002_v59 }
0x22d8   : > { %5013 = vrot.lane.b32.xlu0 %v10521_v32, %s11159_s13 }
0x2331   : > { %v5171_v60 = vpop.f32.mrf.mxu1 }
0x2332   : > { %v5172_v6 = vadd.f32 %v10555_v63, %v5171_v60 }
0x2333   : > { %v9078_v7 = vpop.f32.mrf.mxu1 }
0x2334   : > { %v5175_v9 = vsel %vm1437_vm2, %v5172_v6, -inf }
0x2335   : > { %5176 = vmax.xlane.f32.xlu1 %v5175_v9 }
0x2346   : > { %5015 = vrot.lane.b32.xlu1 %v10519_v49, %s11159_s13 }
0x234a   : > { %5188 = vrot.lane.b32.xlu1 %v10519_v49, %s11160_s21 }
0x234b   : > { %v5004_v11 = vpop.xlane.xlu0 %5003 }
0x234c   : > { %v5005_v12 = vsub.f32 %v4999_v56, %v5004_v11 }
0x234e   : > { %v5006_v15 = vmul.f32 1.442695, %v5005_v12  ;;  %5186 = vrot.lane.b32.xlu1 %v10521_v32, %s11160_s21 }
0x234f   : > { %v5014_v21 = vpop.permute.xlu0 %5013 }
0x2350   : > { %9525 = vpow2.f32 %v5006_v15 }
0x2352   : > { %5268 = vrot.lane.b32.xlu1 %v10521_v32, %s11161_s29 }
0x235d   : > { %v9526_v16 = vpop.eup %9525 }
0x235e   : > { %v5008_v17 = vsel %vm1437_vm2, %v9526_v16, 0.0 }
0x235f   : > { %5009 = vadd.xlane.f32.xlu0 %v5008_v17  ;;  %v4754_v17 = vld [vmem:[%s11182_s11 + $0x10] sm:$0xff] }
0x23be   : > { %v5177_v18 = vpop.xlane.xlu1 %5176 }
0x23bf   : > { %v5178_v13 = vsub.f32 %v5172_v6, %v5177_v18  ;;  %v4752_v18 = vld [vmem:[%s11182_s11] sm:$0xff] }
0x23c1   : > { %v5179_v19 = vmul.f32 1.442695, %v5178_v13 }
0x23c2   : > { %v5016_v20 = vpop.permute.xlu1 %5015 }
0x23c3   : > { %9527 = vpow2.f32 %v5179_v19  ;;  %9066 = vmatpush3.msk.msra.mxu0 %vm1472_vm4, %v5016_v20 }
0x23c4   : > { %9067 = vmatprep.subr.mxu0 %v9702_v41 }
0x23c5   : > { %9068 = vmatpush3.msra.mxu0 %v5014_v21 }
0x23c6   : > { %9079 = vmatprep.subr.mxu0 %v9702_v41  ;;  %v5189_v25 = vpop.permute.xlu1 %5188 }
0x23ca   : > { %v5187_v43 = vpop.permute.xlu1 %5186 }
0x23ce   : > { %v5269_v30 = vpop.permute.xlu1 %5268 }
0x23d0   : > { %v9528_v22 = vpop.eup %9527 }
0x23d1   : > { %v5181_v23 = vsel %vm1437_vm2, %v9528_v22, 0.0 }
0x23d2   : > { %5182 = vadd.xlane.f32.xlu0 %v5181_v23 }
0x23e8   : > { %5270 = vrot.lane.b32.xlu0 %v10519_v49, %s11161_s29  ;;  %v5010_v24 = vpop.xlane.xlu0 %5009 }
0x23e9   : > { %9529 = vrcp.f32 %v5010_v24 }
0x23ec   : > { %5266 = vrot.lane.b32.xlu0 %v10535_v62, %s11162_s2 }
0x23f6   : > { %v9530_v26 = vpop.eup %9529 }
0x23f7   : > { %v5012_v27 = vmul.f32 %v9530_v26, %v9526_v16  ;;  %v4755_v16 = vld [vmem:[%s11182_s11 + $0x18] sm:$0xff]  ;;  %v8403_v26 = vld [vmem:[%s11183_s5] ss:$0 sm:$0xff]  ;;  %s11187_s5 = sld [smem:[#allocation34_spill]] }
0x23f9   : > { %9070 = vmatmul.mubr.msk.f32.vlgmr.msra.gmra.mxu0 %vm1437_vm2, %v5012_v27 }
0x23fa   : > { %9080 = vmatpush3.msk.msra.mxu0 %vm1472_vm4, %v5189_v25  ;;  %9083 = vmatprep.mubr.msk.f32.mxu0 %vm9703_vm8, %v9702_v41 }
0x23fb   : > { %9081 = vmatprep.subr.mxu0 %v9702_v41 }
0x23fc   : > { %9082 = vmatpush3.msra.mxu0 %v5187_v43 }
0x23fd   : > { %9086 = vmatprep.subr.mxu0 %v9702_v41 }
0x245b   : > { %v5183_v3 = vpop.xlane.xlu0 %5182 }
0x245c   : > { %9531 = vrcp.f32 %v5183_v3 }
0x245f   : > { %v5271_v2 = vpop.permute.xlu0 %5270 }
0x2463   : > { %v5267_v42 = vpop.permute.xlu0 %5266 }
0x2469   : > { %v9532_v28 = vpop.eup %9531 }
0x246a   : > { %v5185_v29 = vmul.f32 %v9532_v28, %v9528_v22 }
0x246c   : > { %9084 = vmatmul.mubr.msk.f32.vlgmr.msra.gmra.mxu0 %vm1437_vm2, %v5185_v29 }
0x246d   : > { %9087 = vmatpush3.xpose.msk.msra.mxu0 %vm1353_vm1, %v5271_v2  ;;  %9090 = vmatprep.mubr.msk.f32.mxu0 %vm9703_vm8, %v9702_v41 }
0x246e   : > { %9088 = vmatprep.subr.mxu0 %v9702_v41 }
0x2471   : > { %9089 = vmatpush3.xpose.msk.msra.mxu0 %vm1353_vm1, %v5269_v30 }
0x2472   : > { %9107 = vmatprep.subr.mxu0 %v9702_v41 }
0x2474   : > { %9091 = vmatmul.mubr.msk.f32.vlgmr.msra.gmra.mxu0 %vm1353_vm1, %v5267_v42 }
0x2475   : > { %9111 = vmatprep.mubr.msk.f32.mxu0 %vm9703_vm8, %v9702_v41 }
0x24b9   : > { %v10592_v31 = vpop.f32.mrf.mxu0 }
0x24bb   : > { %v9071_v33 = vpop.f32.mrf.mxu0 }
0x252c   : > { %v5262_v34 = vpop.f32.mrf.mxu0 }
0x252e   : > { %v9085_v35 = vpop.f32.mrf.mxu0 }
0x252f   : > { %v5737_v35 = vld [vmem:[%s11184_s27 + $0x10] sm:$0xff] }
0x2534   : > { %v5344_v36 = vpop.f32.mrf.mxu0 }
0x2535   : > { %v5345_v5 = vadd.f32 %v10555_v63, %v5344_v36  ;;  %v5735_v36 = vld [vmem:[%s11184_s27] sm:$0xff] }
0x2536   : > { %v9092_v58 = vpop.f32.mrf.mxu0 }
0x2537   : > { %v5348_v38 = vsel %vm1437_vm2, %v5345_v5, -inf  ;;  %v5742_v58 = vld [vmem:[%s11185_s4 + $0x10] sm:$0xff] }
0x2538   : > { %5349 = vmax.xlane.f32.xlu1 %v5348_v38  ;;  %v5741_v38 = vld [vmem:[%s11185_s4 + $0x8] sm:$0xff] }
0x2549   : > { %5359 = vrot.lane.b32.xlu1 %v10521_v32, %s11163_s18 }
0x254d   : > { %5443 = vrot.lane.b32.xlu1 %v10519_v49, %s11164_s26 }
0x2551   : > { %5439 = vrot.lane.b32.xlu1 %v10535_v62, %s11165_s10 }
0x25c1   : > { %v5350_v39 = vpop.xlane.xlu1 %5349 }
0x25c2   : > { %v5351_v1 = vsub.f32 %v5345_v5, %v5350_v39  ;;  %v5743_v5 = vld [vmem:[%s11185_s4 + $0x18] sm:$0xff] }
0x25c4   : > { %v5352_v40 = vmul.f32 1.442695, %v5351_v1 }
0x25c5   : > { %v5360_v48 = vpop.permute.xlu1 %5359 }
0x25c6   : > { %9533 = vpow2.f32 %v5352_v40 }
0x25c9   : > { %v5444_v51 = vpop.permute.xlu1 %5443 }
0x25cd   : > { %v5440_v62 = vpop.permute.xlu1 %5439 }
0x25d3   : > { %v9534_v4 = vpop.eup %9533 }
0x25d4   : > { %v5354_v10 = vsel %vm1437_vm2, %v9534_v4, 0.0 }
0x25d5   : > { %5355 = vadd.xlane.f32.xlu0 %v5354_v10  ;;  %v8405_v10 = vld [vmem:[%s11186_s16] ss:$0 sm:$0xff]  ;;  %s11190_s16 = sld [smem:[#allocation39_spill]] }
0x25eb   : > { %5361 = vrot.lane.b32.xlu0 %v10519_v49, %s11163_s18 }
0x25ef   : > { %5441 = vrot.lane.b32.xlu0 %v10521_v32, %s11164_s26 }
0x265e   : > { %v5356_v44 = vpop.xlane.xlu0 %5355 }
0x265f   : > { %9535 = vrcp.f32 %v5356_v44 }
0x2662   : > { %v5362_v47 = vpop.permute.xlu0 %5361 }
0x2663   : > { %9094 = vmatpush3.msk.msra.mxu1 %vm1472_vm4, %v5362_v47  ;;  %v8406_v47 = vld [vmem:[%s11187_s5] ss:$0 sm:$0xff] }
0x2664   : > { %9095 = vmatprep.subr.mxu1 %v9702_v41 }
0x2665   : > { %9096 = vmatpush3.msra.mxu1 %v5360_v48 }
0x2666   : > { %9100 = vmatprep.subr.mxu1 %v9702_v41  ;;  %v5442_v14 = vpop.permute.xlu0 %5441 }
0x266c   : > { %v9536_v50 = vpop.eup %9535 }
0x266d   : > { %v5358_v61 = vmul.f32 %v9536_v50, %v9534_v4 }
0x266f   : > { %9098 = vmatmul.mubr.msk.f32.vlgmr.msra.gmra.mxu1 %vm1437_vm2, %v5358_v61 }
0x2670   : > { %9101 = vmatpush3.xpose.msk.msra.mxu1 %vm1353_vm1, %v5444_v51  ;;  %9104 = vmatprep.mubr.msk.f32.mxu1 %vm9703_vm8, %v9702_v41  ;;  %v5740_v51 = vld [vmem:[%s11185_s4] sm:$0xff] }
0x2671   : > { %9102 = vmatprep.subr.mxu1 %v9702_v41 }
0x2674   : > { %9103 = vmatpush3.xpose.msk.msra.mxu1 %vm1353_vm1, %v5442_v14 }
0x2675   : > { %9125 = vmatprep.subr.mxu1 %v9702_v41 }
0x2677   : > { %9105 = vmatmul.mubr.msk.f32.vlgmr.msra.gmra.mxu1 %vm1353_vm1, %v5440_v62 }
0x2678   : > { %9133 = vmatprep.mubr.msk.f32.mxu1 %vm9703_vm8, %v9702_v41 }
0x272f   : > { %v5435_v0 = vpop.f32.mrf.mxu1 }
0x2731   : > { %v9099_v52 = vpop.f32.mrf.mxu1 }
0x2737   : > { %v5517_v53 = vpop.f32.mrf.mxu1 }
0x2738   : > { %v5518_v54 = vadd.f32 %v10555_v63, %v5517_v53 }
0x2739   : > { %v9106_v55 = vpop.f32.mrf.mxu1 }
0x273a   : > { %v5521_v56 = vsel %vm1437_vm2, %v5518_v54, -inf }
0x273b   : > { %5522 = vmax.xlane.f32.xlu0 %v5521_v56 }
0x2751   : > { %5534 = vrot.lane.b32.xlu0 %v10519_v49, %s11166_s15 }
0x2755   : > { %5613 = vrot.lane.b32.xlu0 %v5262_v34, %s11167_s22  ;;  %v5738_v34 = vld [vmem:[%s11184_s27 + $0x18] sm:$0xff] }
0x2756   : > { %9126 = vmatpush3.msra.mxu1 %v5738_v34 }
0x2757   : > { %9127 = vmatprep.subr.mxu1 %v9702_v41 }
0x2758   : > { %9128 = vmatpush3.msra.mxu1 %v5737_v35  ;;  %v9585_v35 = vld [vmem:[%s10417_s24] ss:$0 sm:$0xff] }
0x2759   : > { %9129 = vmatprep.subr.mxu1 %v9702_v41 }
0x27c4   : > { %v5523_v57 = vpop.xlane.xlu0 %5522 }
0x27c5   : > { %v5524_v59 = vsub.f32 %v5518_v54, %v5523_v57  ;;  %v8409_v54 = vld [vmem:[%s11189_s9] ss:$0 sm:$0xff] }
0x27c7   : > { %v5525_v60 = vmul.f32 1.442695, %v5524_v59 }
0x27c8   : > { %v5535_v6 = vpop.permute.xlu0 %5534 }
0x27c9   : > { %9537 = vpow2.f32 %v5525_v60  ;;  %9108 = vmatpush3.msk.msra.mxu0 %vm1472_vm4, %v5535_v6 }
0x27ca   : > { %9109 = vmatprep.subr.mxu0 %v9702_v41 }
0x27cc   : > { %v5614_v20 = vpop.permute.xlu0 %5613 }
0x27cd   : > { %v5624_v22 = vsel %vm1353_vm1, %v10592_v31, %v5614_v20  ;;  %v8410_v20 = vld [vmem:[%s11190_s16] ss:$0 sm:$0xff] }
0x27d6   : > { %v9538_v7 = vpop.eup %9537 }
0x27d7   : > { %v5527_v9 = vsel %vm1437_vm2, %v9538_v7, 0.0 }
0x27d8   : > { %5528 = vadd.xlane.f32.xlu1 %v5527_v9 }
0x27e9   : > { %5532 = vrot.lane.b32.xlu1 %v10521_v32, %s11166_s15  ;;  %v4753_v32 = vld [vmem:[%s11182_s11 + $0x8] sm:$0xff] }
0x27ed   : > { %5617 = vrot.lane.b32.xlu1 %v5435_v0, %s11168_s7 }
0x2861   : > { %v5529_v49 = vpop.xlane.xlu1 %5528 }
0x2862   : > { %9539 = vrcp.f32 %v5529_v49 }
0x2865   : > { %v5533_v11 = vpop.permute.xlu1 %5532 }
0x2866   : > { %9110 = vmatpush3.msra.mxu0 %v5533_v11 }
0x2867   : > { %9114 = vmatprep.subr.mxu0 %v9702_v41 }
0x2869   : > { %v5618_v21 = vpop.permute.xlu1 %5617 }
0x286a   : > { %v5625_v23 = vsel %vm2179_vm5, %v5624_v22, %v5618_v21  ;;  %v8411_v22 = vld [vmem:[%s9888_s17] ss:$0 sm:$0xff] }
0x286f   : > { %v9540_v12 = vpop.eup %9539 }
0x2870   : > { %v5531_v15 = vmul.f32 %v9540_v12, %v9538_v7  ;;  %v8415_v12 = vld [vmem:[%s11170_s8 + $0x38] sm:$0xff] }
0x2872   : > { %9112 = vmatmul.mubr.msk.f32.vlgmr.msra.gmra.mxu0 %vm1437_vm2, %v5531_v15  ;;  %v8414_v15 = vld [vmem:[%s11170_s8 + $0x30] sm:$0xff] }
0x2873   : > { %9122 = vmatprep.mubr.msk.f32.mxu0 %vm9703_vm8, %v9702_v41  ;;  %9115 = vmatpush3.msra.mxu0 %v4755_v16  ;;  %v8413_v16 = vld [vmem:[%s11170_s8 + $0x28] sm:$0xff] }
0x2874   : > { %9116 = vmatprep.subr.mxu0 %v9702_v41 }
0x2875   : > { %9117 = vmatpush3.msra.mxu0 %v4754_v17  ;;  %v8412_v17 = vld [vmem:[%s11170_s8 + $0x20] sm:$0xff] }
0x2876   : > { %9118 = vmatprep.subr.mxu0 %v9702_v41 }
0x2877   : > { %9119 = vmatpush3.msra.mxu0 %v4753_v32 }
0x2878   : > { %9120 = vmatprep.subr.mxu0 %v9702_v41 }
0x2879   : > { %9121 = vmatpush3.msra.mxu0 %v4752_v18 }
0x287a   : > { %9136 = vmatprep.subr.mxu0 %v9702_v41 }
0x2932   : > { %v5608_v13 = vpop.f32.mrf.mxu0 }
0x2933   : > { %5621 = vrot.lane.b32.xlu0 %v5608_v13, %s11169_s25 }
0x2934   : > { %v9113_v19 = vpop.f32.mrf.mxu0 }
0x29a5   : > { %v5622_v24 = vpop.permute.xlu0 %5621 }
0x29a6   : > { %v5626_v25 = vsel %vm2182_vm6, %v5625_v23, %v5622_v24 }
0x29a7   : > { %9123 = vmatmul.mubr.msk.f32.vlgmr.msra.gmra.mxu0 %vm1259_vm0, %v5626_v25 }
0x29a8   : > { %9144 = vmatprep.mubr.msk.f32.mxu0 %vm9703_vm8, %v9702_v41  ;;  %9137 = vmatpush3.xpose.msra.mxu0 %v5743_v5 }
0x29a9   : > { %9138 = vmatprep.subr.mxu0 %v9702_v41 }
0x29ac   : > { %9139 = vmatpush3.xpose.msra.mxu0 %v5742_v58 }
0x29ad   : > { %9140 = vmatprep.subr.mxu0 %v9702_v41 }
0x29b0   : > { %9141 = vmatpush3.xpose.msra.mxu0 %v5741_v38 }
0x29b1   : > { %9142 = vmatprep.subr.mxu0 %v9702_v41 }
0x29b4   : > { %9143 = vmatpush3.xpose.msra.mxu0 %v5740_v51 }
0x29b5   : > { %9168 = vmatprep.subr.mxu0 %v9702_v41 }
0x2a67   : > { %v5702_v27 = vpop.f32.mrf.mxu0 }
0x2a68   : > { %v5703_v43 = vadd.f32 %v8403_v26, %v5702_v27  ;;  %v8424_v26 = vld [vmem:[%s11172_s30 + $0x1] ss:$0 sm:$0xff] }
0x2a69   : > { %v9124_v3 = vpop.f32.mrf.mxu0 }
0x2a6a   : > { %v5706_v28 = vadd.f32 %v5703_v43, %v10512_v46  ;;  %v5736_v46 = vld [vmem:[%s11184_s27 + $0x8] sm:$0xff]  ;;  %s11188_s27 = sld [smem:[#allocation36_spill]] }
0x2a6b   : > { %9130 = vmatpush3.msra.mxu1 %v5736_v46 }
0x2a6c   : > { %v5707_v29 = vsel %vm1259_vm0, %v5706_v28, 0.0  ;;  %9131 = vmatprep.subr.mxu1 %v9702_v41 }
0x2a6d   : > { %5708 = vadd.xlane.f32.xlu1 %v5707_v29  ;;  %9132 = vmatpush3.msra.mxu1 %v5735_v36 }
0x2a6e   : > { %9147 = vmatprep.subr.mxu1 %v9702_v41 }
0x2a70   : > { %v8407_v14 = vld [vmem:[%s11188_s27] ss:$0 sm:$0xff]  ;;  %s11191_s27 = smov %s11190_s16 }
0x2af6   : > { %v5709_v2 = vpop.xlane.xlu1 %5708 }
0x2af7   : > { %v5710_v30 = vmul.f32 0.03125, %v5709_v2 }
0x2af9   : > { %v5711_v42 = vsub.f32 %v5706_v28, %v5710_v30 }
0x2afb   : > { %v5712_v31 = vmul.f32 %v5711_v42, %v5711_v42 }
0x2afd   : > { %v5713_v33 = vsel %vm1259_vm0, %v5712_v31, 0.0 }
0x2afe   : > { %5714 = vadd.xlane.f32.xlu0 %v5713_v33 }
0x2b87   : > { %v5715_v39 = vpop.xlane.xlu0 %5714 }
0x2b88   : > { %v5716_v1 = vmul.f32 0.03125, %v5715_v39 }
0x2b8a   : > { %v5717_v40 = vadd.f32 1e-05, %v5716_v1 }
0x2b8c   : > { %9541 = vrsqrt.f32 %v5717_v40 }
0x2b99   : > { %v9542_v4 = vpop.eup %9541 }
0x2b9a   : > { %v5719_v44 = vmul.f32 %v9542_v4, %v5711_v42 }
0x2b9c   : > { %v5726_v48 = vmul.f32 %v8405_v10, %v5719_v44 }
0x2b9e   : > { %v5733_v50 = vadd.f32 %v8406_v47, %v5726_v48 }
0x2ba0   : > { %v5734_v61 = vmul.f32 %v5733_v50, %v10509_v45 }
0x2ba2   : > { %9134 = vmatmul.mubr.msk.f32.vlgmr.msra.gmra.mxu1 %vm1259_vm0, %v5734_v61 }
0x2ba3   : > { %9155 = vmatprep.mubr.msk.f32.mxu1 %vm9703_vm8, %v9702_v41  ;;  %9148 = vmatpush3.msra.mxu1 %v8415_v12 }
0x2ba4   : > { %9149 = vmatprep.subr.mxu1 %v9702_v41 }
0x2ba5   : > { %9150 = vmatpush3.msra.mxu1 %v8414_v15 }
0x2ba6   : > { %9151 = vmatprep.subr.mxu1 %v9702_v41 }
0x2ba7   : > { %9152 = vmatpush3.msra.mxu1 %v8413_v16 }
0x2ba8   : > { %9153 = vmatprep.subr.mxu1 %v9702_v41 }
0x2ba9   : > { %9154 = vmatpush3.msra.mxu1 %v8412_v17 }
0x2baa   : > { %9158 = vmatprep.subr.mxu1 %v9702_v41 }
0x2c62   : > { %v5822_v62 = vpop.f32.mrf.mxu1 }
0x2c63   : > { %v5823_v0 = vadd.f32 %v8407_v14, %v5822_v62 }
0x2c64   : > { %v9135_v52 = vpop.f32.mrf.mxu1 }
0x2c65   : > { %v5826_v53 = vmax.f32 %v5823_v0, 0.0 }
0x2c67   : > { %9145 = vmatmul.mubr.f32.vlgmr.msra.gmra.mxu0 %v5826_v53 }
0x2c68   : > { %9170 = vmatprep.mubr.msk.f32.mxu0 %vm9703_vm8, %v9702_v41 }
0x2d27   : > { %v5899_v55 = vpop.f32.mrf.mxu0 }
0x2d28   : > { %v5900_v56 = vadd.f32 %v8409_v54, %v5899_v55 }
0x2d29   : > { %v9146_v57 = vpop.f32.mrf.mxu0 }
0x2d2a   : > { %v5903_v59 = vadd.f32 %v5900_v56, %v5734_v61 }
0x2d2c   : > { %v5904_v60 = vsel %vm1259_vm0, %v5903_v59, 0.0 }
0x2d2d   : > { %5905 = vadd.xlane.f32.xlu0 %v5904_v60 }
0x2db6   : > { %v5906_v6 = vpop.xlane.xlu0 %5905 }
0x2db7   : > { %v5907_v7 = vmul.f32 0.03125, %v5906_v6 }
0x2db9   : > { %v5908_v9 = vsub.f32 %v5903_v59, %v5907_v7 }
0x2dbb   : > { %v5909_v49 = vmul.f32 %v5908_v9, %v5908_v9 }
0x2dbd   : > { %v5910_v11 = vsel %vm1259_vm0, %v5909_v49, 0.0 }
0x2dbe   : > { %5911 = vadd.xlane.f32.xlu1 %v5910_v11 }
0x2e47   : > { %v5912_v32 = vpop.xlane.xlu1 %5911 }
0x2e48   : > { %v5913_v18 = vmul.f32 0.03125, %v5912_v32 }
0x2e4a   : > { %v5914_v13 = vadd.f32 1e-05, %v5913_v18 }
0x2e4c   : > { %9543 = vrsqrt.f32 %v5914_v13 }
0x2e59   : > { %v9544_v19 = vpop.eup %9543 }
0x2e5a   : > { %v5916_v21 = vmul.f32 %v9544_v19, %v5908_v9 }
0x2e5c   : > { %v5923_v23 = vmul.f32 %v8410_v20, %v5916_v21 }
0x2e5e   : > { %v5930_v24 = vadd.f32 %v8411_v22, %v5923_v23 }
0x2e60   : > { %v10694_v25 = vmul.f32 %v5930_v24, %v10509_v45 }
0x2e62   : > { %9156 = vmatmul.mubr.msk.f32.vlgmr.msra.gmra.mxu1 %vm1259_vm0, %v10694_v25 }
0x2e63   : > { %9160 = vmatprep.mubr.msk.f32.mxu1 %vm9703_vm8, %v9702_v41 }
0x2f22   : > { %v6025_v27 = vpop.f32.mrf.mxu1 }
0x2f23   : > { %v10701_v43 = vadd.f32 %v8424_v26, %v6025_v27 }
0x2f24   : > { %v9157_v3 = vpop.f32.mrf.mxu1 }
0x2f25   : > { %6195 = vrot.lane.b32.xlu1 %v10701_v43, %s11157_s1  ;;  %6030 = vrot.lane.b32.xlu0 %v10701_v43, %s11156_s23 }
0x2f29   : > { %6193 = vrot.lane.b32.xlu1 %v10701_v43, %s11158_s3  ;;  %6360 = vrot.lane.b32.xlu0 %v10701_v43, %s11161_s29 }
0x2f2d   : > { %6358 = vrot.lane.b32.xlu1 %v10701_v43, %s11162_s2  ;;  %6525 = vrot.lane.b32.xlu0 %v10701_v43, %s11164_s26 }
0x2f31   : > { %6523 = vrot.lane.b32.xlu1 %v10701_v43, %s11165_s10 }
0x2f97   : > { %v6196_v28 = vpop.permute.xlu1 %6195  ;;  %v6031_v29 = vpop.permute.xlu0 %6030 }
0x2f98   : > { %9159 = vmatpush3.xpose.msk.msra.mxu1 %vm1353_vm1, %v6031_v29  ;;  %9169 = vmatpush3.xpose.msk.msra.mxu0 %vm1353_vm1, %v6196_v28 }
0x2f99   : > { %9178 = vmatprep.subr.mxu0 %v9702_v41  ;;  %9163 = vmatprep.subr.mxu1 %v9702_v41 }
0x2f9b   : > { %v6194_v2 = vpop.permute.xlu1 %6193  ;;  %9161 = vmatmul.mubr.msk.f32.vlgmr.msra.gmra.mxu1 %vm1353_vm1, %v10701_v43  ;;  %v6361_v30 = vpop.permute.xlu0 %6360 }
0x2f9c   : > { %9171 = vmatmul.mubr.msk.f32.vlgmr.msra.gmra.mxu0 %vm1353_vm1, %v6194_v2  ;;  %9165 = vmatprep.mubr.msk.f32.mxu1 %vm9703_vm8, %v9702_v41  ;;  %v8420_v2 = vld [vmem:[%s11174_s14 + $0x38] sm:$0xff] }
0x2f9d   : > { %9179 = vmatpush3.xpose.msk.msra.mxu0 %vm1353_vm1, %v6361_v30  ;;  %9180 = vmatprep.mubr.msk.f32.mxu0 %vm9703_vm8, %v9702_v41  ;;  %v8419_v30 = vld [vmem:[%s11174_s14 + $0x30] sm:$0xff] }
0x2f9e   : > { %9188 = vmatprep.subr.mxu0 %v9702_v41 }
0x2f9f   : > { %v6359_v42 = vpop.permute.xlu1 %6358  ;;  %v6526_v31 = vpop.permute.xlu0 %6525 }
0x2fa0   : > { %9181 = vmatmul.mubr.msk.f32.vlgmr.msra.gmra.mxu0 %vm1353_vm1, %v6359_v42  ;;  %v8418_v42 = vld [vmem:[%s11174_s14 + $0x28] sm:$0xff] }
0x2fa1   : > { %9189 = vmatpush3.xpose.msk.msra.mxu0 %vm1353_vm1, %v6526_v31  ;;  %9190 = vmatprep.mubr.msk.f32.mxu0 %vm9703_vm8, %v9702_v41  ;;  %v8417_v31 = vld [vmem:[%s11174_s14 + $0x20] sm:$0xff] }
0x2fa2   : > { %9198 = vmatprep.subr.mxu0 %v9702_v41 }
0x2fa3   : > { %v6524_v33 = vpop.permute.xlu1 %6523 }
0x2fa4   : > { %9191 = vmatmul.mubr.msk.f32.vlgmr.msra.gmra.mxu0 %vm1353_vm1, %v6524_v33 }
0x2fa5   : > { %9206 = vmatprep.mubr.msk.f32.mxu0 %vm9703_vm8, %v9702_v41  ;;  %9199 = vmatpush3.msra.mxu0 %v8420_v2 }
0x2fa6   : > { %9200 = vmatprep.subr.mxu0 %v9702_v41 }
0x2fa7   : > { %9201 = vmatpush3.msra.mxu0 %v8419_v30 }
0x2fa8   : > { %9202 = vmatprep.subr.mxu0 %v9702_v41 }
0x2fa9   : > { %9203 = vmatpush3.msra.mxu0 %v8418_v42 }
0x2faa   : > { %9204 = vmatprep.subr.mxu0 %v9702_v41 }
0x2fab   : > { %9205 = vmatpush3.msra.mxu0 %v8417_v31 }
0x305b   : > { %v6102_v34 = vpop.f32.mrf.mxu1 }
0x305c   : > { %v6103_v46 = vadd.f32 %v9585_v35, %v6102_v34  ;;  %v6267_v36 = vpop.f32.mrf.mxu0  ;;  %v8445_v34 = vld [vmem:[%s11178_s0 + $0x38] sm:$0xff] }
0x305d   : > { %v6268_v5 = vadd.f32 %v9585_v35, %v6267_v36  ;;  %v9162_v58 = vpop.f32.mrf.mxu1  ;;  %9220 = vmatprep.subr.mxu0 %v8445_v34 }
0x305e   : > { %v9172_v38 = vpop.f32.mrf.mxu0  ;;  %v6106_v39 = vsel %vm1353_vm1, %v6103_v46, -inf }
0x305f   : > { %6107 = vmax.xlane.f32.xlu0 %v6106_v39  ;;  %v6271_v1 = vsel %vm1353_vm1, %v6268_v5, -inf  ;;  %v8442_v38 = vld [vmem:[%s11178_s0 + $0x20] sm:$0xff] }
0x3060   : > { %6272 = vmax.xlane.f32.xlu1 %v6271_v1  ;;  %v6432_v40 = vpop.f32.mrf.mxu0 }
0x3061   : > { %v6433_v4 = vadd.f32 %v9585_v35, %v6432_v40 }
0x3062   : > { %v9182_v10 = vpop.f32.mrf.mxu0 }
0x3063   : > { %v6436_v44 = vsel %vm1353_vm1, %v6433_v4, -inf }
0x3064   : > { %6437 = vmax.xlane.f32.xlu0 %v6436_v44  ;;  %v6597_v47 = vpop.f32.mrf.mxu0 }
0x3065   : > { %v6598_v48 = vadd.f32 %v9585_v35, %v6597_v47 }
0x3066   : > { %v9192_v50 = vpop.f32.mrf.mxu0 }
0x3067   : > { %v6601_v61 = vsel %vm1353_vm1, %v6598_v48, -inf }
0x3068   : > { %6602 = vmax.xlane.f32.xlu0 %v6601_v61 }
0x3071   : > { %6117 = vrot.lane.b32.xlu1 %v10701_v43, %s11159_s13 }
0x30e8   : > { %v6108_v51 = vpop.xlane.xlu0 %6107 }
0x30e9   : > { %v6109_v14 = vsub.f32 %v6103_v46, %v6108_v51  ;;  %v6273_v62 = vpop.xlane.xlu1 %6272  ;;  %v8444_v46 = vld [vmem:[%s11178_s0 + $0x30] sm:$0xff]  ;;  %v8438_v51 = vld [vmem:[%s11176_s6 + $0x1] ss:$0 sm:$0xff] }
0x30ea   : > { %v6274_v0 = vsub.f32 %v6268_v5, %v6273_v62  ;;  %v8443_v5 = vld [vmem:[%s11178_s0 + $0x28] sm:$0xff] }
0x30eb   : > { %v6110_v52 = vmul.f32 1.442695, %v6109_v14 }
0x30ec   : > { %v6275_v53 = vmul.f32 1.442695, %v6274_v0 }
0x30ed   : > { %9545 = vpow2.f32 %v6110_v52  ;;  %v6118_v54 = vpop.permute.xlu1 %6117  ;;  %v6438_v55 = vpop.xlane.xlu0 %6437 }
0x30ee   : > { %9547 = vpow2.f32 %v6275_v53  ;;  %v6439_v56 = vsub.f32 %v6433_v4, %v6438_v55  ;;  %9164 = vmatpush3.msra.mxu1 %v6118_v54  ;;  %v8454_v55 = vld [vmem:[%s11181_s20 + $0x1] ss:$0 sm:$0xff] }
0x30ef   : > { %9173 = vmatprep.subr.mxu1 %v9702_v41 }
0x30f0   : > { %v6440_v57 = vmul.f32 1.442695, %v6439_v56 }
0x30f1   : > { %v6603_v59 = vpop.xlane.xlu0 %6602 }
0x30f2   : > { %9549 = vpow2.f32 %v6440_v57  ;;  %v6604_v60 = vsub.f32 %v6598_v48, %v6603_v59 }
0x30f4   : > { %v6605_v6 = vmul.f32 1.442695, %v6604_v60 }
0x30f6   : > { %9551 = vpow2.f32 %v6605_v6 }
0x30fa   : > { %v9546_v7 = vpop.eup %9545 }
0x30fb   : > { %v9548_v9 = vpop.eup %9547  ;;  %v6112_v49 = vsel %vm1353_vm1, %v9546_v7, 0.0 }
0x30fc   : > { %6113 = vadd.xlane.f32.xlu1 %v6112_v49  ;;  %v6277_v11 = vsel %vm1353_vm1, %v9548_v9, 0.0 }
0x30fd   : > { %6278 = vadd.xlane.f32.xlu0 %v6277_v11 }
0x30ff   : > { %v9550_v12 = vpop.eup %9549 }
0x3100   : > { %v6442_v15 = vsel %vm1353_vm1, %v9550_v12, 0.0 }
0x3101   : > { %6443 = vadd.xlane.f32.xlu1 %v6442_v15 }
0x3103   : > { %v9552_v16 = vpop.eup %9551 }
0x3104   : > { %v6607_v17 = vsel %vm1353_vm1, %v9552_v16, 0.0 }
0x3105   : > { %6608 = vadd.xlane.f32.xlu0 %v6607_v17 }
0x3112   : > { %6447 = vrot.lane.b32.xlu1 %v10701_v43, %s11163_s18 }
0x3116   : > { %6612 = vrot.lane.b32.xlu1 %v10701_v43, %s11166_s15 }
0x311b   : > { %6282 = vrot.lane.b32.xlu0 %v10701_v43, %s11160_s21 }
0x3185   : > { %v6114_v32 = vpop.xlane.xlu1 %6113 }
0x3186   : > { %9553 = vrcp.f32 %v6114_v32  ;;  %v6279_v18 = vpop.xlane.xlu0 %6278 }
0x3187   : > { %9555 = vrcp.f32 %v6279_v18 }
0x318a   : > { %v6444_v13 = vpop.xlane.xlu1 %6443 }
0x318b   : > { %9557 = vrcp.f32 %v6444_v13 }
0x318e   : > { %v6609_v19 = vpop.xlane.xlu0 %6608  ;;  %v6448_v24 = vpop.permute.xlu1 %6447 }
0x318f   : > { %9559 = vrcp.f32 %v6609_v19 }
0x3192   : > { %v6283_v23 = vpop.permute.xlu0 %6282  ;;  %v6613_v28 = vpop.permute.xlu1 %6612 }
0x3193   : > { %v9554_v20 = vpop.eup %9553 }
0x3194   : > { %v6116_v21 = vmul.f32 %v9554_v20, %v9546_v7  ;;  %v9556_v22 = vpop.eup %9555 }
0x3195   : > { %v6281_v26 = vmul.f32 %v9556_v22, %v9548_v9 }
0x3196   : > { %9166 = vmatmul.mubr.msk.f32.vlgmr.msra.gmra.mxu1 %vm1353_vm1, %v6116_v21 }
0x3197   : > { %9174 = vmatpush3.msra.mxu1 %v6283_v23  ;;  %9175 = vmatprep.mubr.msk.f32.mxu1 %vm9703_vm8, %v9702_v41 }
0x3198   : > { %9183 = vmatprep.subr.mxu1 %v9702_v41  ;;  %v9558_v27 = vpop.eup %9557 }
0x3199   : > { %v6446_v43 = vmul.f32 %v9558_v27, %v9550_v12  ;;  %v8440_v12 = vld [vmem:[%s11179_s19 + $0x1] ss:$0 sm:$0xff] }
0x319a   : > { %9176 = vmatmul.mubr.msk.f32.vlgmr.msra.gmra.mxu1 %vm1353_vm1, %v6281_v26 }
0x319b   : > { %9184 = vmatpush3.msra.mxu1 %v6448_v24  ;;  %9185 = vmatprep.mubr.msk.f32.mxu1 %vm9703_vm8, %v9702_v41 }
0x319c   : > { %9193 = vmatprep.subr.mxu1 %v9702_v41  ;;  %v9560_v3 = vpop.eup %9559 }
0x319d   : > { %v6611_v29 = vmul.f32 %v9560_v3, %v9552_v16  ;;  %v8441_v16 = vld [vmem:[%s11180_s12 + $0x1] ss:$0 sm:$0xff] }
0x319e   : > { %9186 = vmatmul.mubr.msk.f32.vlgmr.msra.gmra.mxu1 %vm1353_vm1, %v6446_v43 }
0x319f   : > { %9194 = vmatpush3.msra.mxu1 %v6613_v28  ;;  %9195 = vmatprep.mubr.msk.f32.mxu1 %vm9703_vm8, %v9702_v41 }
0x31a0   : > { %9209 = vmatprep.subr.mxu1 %v9702_v41 }
0x31a2   : > { %9196 = vmatmul.mubr.msk.f32.vlgmr.msra.gmra.mxu1 %vm1353_vm1, %v6611_v29 }
0x31a3   : > { %9217 = vmatprep.mubr.msk.f32.mxu1 %vm9703_vm8, %v9702_v41  ;;  %9210 = vmatpush3.msra.mxu1 %v8445_v34 }
0x31a4   : > { %9211 = vmatprep.subr.mxu1 %v9702_v41 }
0x31a5   : > { %9212 = vmatpush3.msra.mxu1 %v8444_v46 }
0x31a6   : > { %9213 = vmatprep.subr.mxu1 %v9702_v41 }
0x31a7   : > { %9214 = vmatpush3.msra.mxu1 %v8443_v5 }
0x31a8   : > { %9215 = vmatprep.subr.mxu1 %v9702_v41 }
0x31a9   : > { %9216 = vmatpush3.msra.mxu1 %v8442_v38 }
0x31aa   : > { %9231 = vmatprep.subr.mxu1 %v9702_v41 }
0x3256   : > { %v6189_v33 = vpop.f32.mrf.mxu1 }
0x3258   : > { %v9167_v35 = vpop.f32.mrf.mxu1 }
0x325a   : > { %v6354_v36 = vpop.f32.mrf.mxu1 }
0x325b   : > { %6689 = vrot.lane.b32.xlu0 %v6354_v36, %s11167_s22 }
0x325c   : > { %v9177_v58 = vpop.f32.mrf.mxu1 }
0x325e   : > { %v6519_v39 = vpop.f32.mrf.mxu1 }
0x325f   : > { %6693 = vrot.lane.b32.xlu1 %v6519_v39, %s11168_s7 }
0x3260   : > { %v9187_v1 = vpop.f32.mrf.mxu1 }
0x3262   : > { %v6684_v40 = vpop.f32.mrf.mxu1 }
0x3263   : > { %6697 = vrot.lane.b32.xlu0 %v6684_v40, %s11169_s25 }
0x3264   : > { %v9197_v4 = vpop.f32.mrf.mxu1 }
0x32cd   : > { %v6690_v10 = vpop.permute.xlu0 %6689 }
0x32ce   : > { %v6700_v47 = vsel %vm1353_vm1, %v6189_v33, %v6690_v10 }
0x32d1   : > { %v6694_v44 = vpop.permute.xlu1 %6693 }
0x32d2   : > { %v6701_v48 = vsel %vm2179_vm5, %v6700_v47, %v6694_v44 }
0x32d5   : > { %v6698_v50 = vpop.permute.xlu0 %6697 }
0x32d6   : > { %v6702_v61 = vsel %vm2182_vm6, %v6701_v48, %v6698_v50 }
0x32d7   : > { %9207 = vmatmul.mubr.msk.f32.vlgmr.msra.gmra.mxu0 %vm1259_vm0, %v6702_v61 }
0x32d8   : > { %9221 = vmatpush3.msra.mxu0 %v8445_v34  ;;  %9228 = vmatprep.mubr.msk.f32.mxu0 %vm1259_vm0, %v10496_v8 }
0x32d9   : > { %9222 = vmatprep.subr.mxu0 %v8444_v46 }
0x32da   : > { %9223 = vmatpush3.msra.mxu0 %v8444_v46 }
0x32db   : > { %9224 = vmatprep.subr.mxu0 %v8443_v5 }
0x32dc   : > { %9225 = vmatpush3.msra.mxu0 %v8443_v5 }
0x32dd   : > { %9226 = vmatprep.subr.mxu0 %v8442_v38 }
0x32de   : > { %9227 = vmatpush3.msra.mxu0 %v8442_v38 }
0x32df   : > { %9229 = vmatmul.mubr.msk.f32.vlgmr.msra.gmra.mxu0 %vm1259_vm0, %v10499_v37  ;;  %9238 = vmatprep.subr.mxu0 %v9702_v41 }
0x32e0   : > { %9242 = vmatprep.mubr.msk.f32.mxu0 %vm9703_vm8, %v9702_v41 }
0x3397   : > { %v6778_v14 = vpop.f32.mrf.mxu0 }
0x3398   : > { %v6779_v62 = vadd.f32 %v8438_v51, %v6778_v14 }
0x3399   : > { %v9208_v0 = vpop.f32.mrf.mxu0 }
0x339a   : > { %v6782_v8 = vadd.f32 %v6779_v62, %v10694_v25 }
0x339c   : > { %v6783_v52 = vsel %vm1259_vm0, %v6782_v8, 0.0 }
0x339d   : > { %6784 = vadd.xlane.f32.xlu1 %v6783_v52 }
0x339f   : > { %v9230_v53 = vpop.f32.mrf.mxu0 }
0x33a0   : > { %v10808_v37 = vadd.f32 %v9230_v53, %v8454_v55 }
0x33a1   : > { %v6974_v54 = vpop.f32.mrf.mxu0 }
0x33a2   : > { %v10804_v56 = vadd.f32 %v8454_v55, %v6974_v54 }
0x33ae   : > { %6985 = vrot.lane.b32.xlu1 %v10804_v56, %s11156_s23 }
0x33b2   : > { %7161 = vrot.lane.b32.xlu1 %v10808_v37, %s11157_s1 }
0x3426   : > { %v6785_v57 = vpop.xlane.xlu1 %6784 }
0x3427   : > { %v6786_v25 = vmul.f32 0.03125, %v6785_v57 }
0x3429   : > { %v6787_v59 = vsub.f32 %v6782_v8, %v6786_v25 }
0x342a   : > { %v6986_v19 = vpop.permute.xlu1 %6985 }
0x342b   : > { %v6788_v60 = vmul.f32 %v6787_v59, %v6787_v59 }
0x342d   : > { %v6789_v6 = vsel %vm1259_vm0, %v6788_v60, 0.0 }
0x342e   : > { %6790 = vadd.xlane.f32.xlu0 %v6789_v6  ;;  %v7162_v23 = vpop.permute.xlu1 %7161 }
0x3444   : > { %6987 = vrot.lane.b32.xlu0 %v10808_v37, %s11156_s23 }
0x3448   : > { %7159 = vrot.lane.b32.xlu0 %v10804_v56, %s11157_s1 }
0x34b7   : > { %v6791_v7 = vpop.xlane.xlu0 %6790 }
0x34b8   : > { %v6792_v9 = vmul.f32 0.03125, %v6791_v7 }
0x34ba   : > { %v6793_v49 = vadd.f32 1e-05, %v6792_v9 }
0x34bb   : > { %v6988_v13 = vpop.permute.xlu0 %6987 }
0x34bc   : > { %9561 = vrsqrt.f32 %v6793_v49 }
0x34bf   : > { %v7160_v24 = vpop.permute.xlu0 %7159 }
0x34c9   : > { %v9562_v11 = vpop.eup %9561 }
0x34ca   : > { %v6795_v15 = vmul.f32 %v9562_v11, %v6787_v59 }
0x34cc   : > { %v6802_v17 = vmul.f32 %v8440_v12, %v6795_v15 }
0x34ce   : > { %v6809_v32 = vadd.f32 %v8441_v16, %v6802_v17 }
0x34d0   : > { %v10820_v18 = vmul.f32 %v6809_v32, %v10509_v45 }
0x34d2   : > { %9218 = vmatmul.mubr.msk.f32.vlgmr.msra.gmra.mxu1 %vm1259_vm0, %v10820_v18 }
0x34d3   : > { %9232 = vmatpush3.xpose.msk.msra.mxu1 %vm1353_vm1, %v6988_v13  ;;  %9235 = vmatprep.mubr.msk.f32.mxu1 %vm9703_vm8, %v9702_v41 }
0x34d4   : > { %9233 = vmatprep.subr.mxu1 %v9702_v41 }
0x34d7   : > { %9234 = vmatpush3.xpose.msk.msra.mxu1 %vm1353_vm1, %v6986_v19 }
0x34d8   : > { %9245 = vmatprep.subr.mxu1 %v9702_v41 }
0x3592   : > { %v6904_v20 = vpop.f32.mrf.mxu1 }
0x3593   : > { %v10830_v21 = vadd.f32 %v8454_v55, %v6904_v20  ;;  %v9586_v55 = vld [vmem:[%s9992_s28] ss:$0 sm:$0xff] }
0x3594   : > { %v9219_v22 = vpop.f32.mrf.mxu1 }
0x3595   : > { %7157 = vrot.lane.b32.xlu1 %v10830_v21, %s11158_s3  ;;  %9236 = vmatmul.mubr.msk.f32.vlgmr.msra.gmra.mxu1 %vm1353_vm1, %v10830_v21  ;;  %s11196_s3 = sld [smem:[#allocation40_spill]] }
0x3596   : > { %9246 = vmatpush3.xpose.msk.msra.mxu1 %vm1353_vm1, %v7162_v23  ;;  %9249 = vmatprep.mubr.msk.f32.mxu1 %vm9703_vm8, %v9702_v41 }
0x3597   : > { %9247 = vmatprep.subr.mxu1 %v9702_v41 }
0x359a   : > { %9248 = vmatpush3.xpose.msk.msra.mxu1 %vm1353_vm1, %v7160_v24 }
0x359b   : > { %9266 = vmatprep.subr.mxu1 %v9702_v41 }
0x3607   : > { %v7158_v26 = vpop.permute.xlu1 %7157 }
0x3608   : > { %9250 = vmatmul.mubr.msk.f32.vlgmr.msra.gmra.mxu1 %vm1353_vm1, %v7158_v26 }
0x3609   : > { %9270 = vmatprep.mubr.msk.f32.mxu1 %vm9703_vm8, %v9702_v41 }
0x3655   : > { %v7062_v27 = vpop.f32.mrf.mxu1 }
0x3656   : > { %v7063_v43 = vadd.f32 %v10555_v63, %v7062_v27 }
0x3657   : > { %v9237_v3 = vpop.f32.mrf.mxu1 }
0x3658   : > { %v7066_v28 = vsel %vm1437_vm2, %v7063_v43, -inf }
0x3659   : > { %7067 = vmax.xlane.f32.xlu0 %v7066_v28 }
0x366f   : > { %7077 = vrot.lane.b32.xlu0 %v10804_v56, %s11159_s13 }
0x36c8   : > { %v7235_v29 = vpop.f32.mrf.mxu1 }
0x36c9   : > { %v7236_v2 = vadd.f32 %v10555_v63, %v7235_v29 }
0x36ca   : > { %v9251_v30 = vpop.f32.mrf.mxu1 }
0x36cb   : > { %v7239_v42 = vsel %vm1437_vm2, %v7236_v2, -inf }
0x36cc   : > { %7240 = vmax.xlane.f32.xlu1 %v7239_v42 }
0x36dd   : > { %7079 = vrot.lane.b32.xlu1 %v10808_v37, %s11159_s13  ;;  %s11192_s13 = sld [smem:[#allocation32_spill]] }
0x36e1   : > { %7252 = vrot.lane.b32.xlu1 %v10808_v37, %s11160_s21 }
0x36e2   : > { %v7068_v31 = vpop.xlane.xlu0 %7067 }
0x36e3   : > { %v7069_v33 = vsub.f32 %v7063_v43, %v7068_v31 }
0x36e5   : > { %v7070_v34 = vmul.f32 1.442695, %v7069_v33  ;;  %7250 = vrot.lane.b32.xlu1 %v10804_v56, %s11160_s21  ;;  %v8450_v33 = vld [vmem:[%s11182_s11 + $0x38] sm:$0xff]  ;;  %s11193_s21 = sld [smem:[#allocation35_spill]] }
0x36e6   : > { %v7078_v38 = vpop.permute.xlu0 %7077 }
0x36e7   : > { %9563 = vpow2.f32 %v7070_v34  ;;  %v8449_v34 = vld [vmem:[%s11182_s11 + $0x30] sm:$0xff] }
0x36e9   : > { %7332 = vrot.lane.b32.xlu1 %v10804_v56, %s11161_s29 }
0x36f4   : > { %v9564_v63 = vpop.eup %9563 }
0x36f5   : > { %v7072_v35 = vsel %vm1437_vm2, %v9564_v63, 0.0 }
0x36f6   : > { %7073 = vadd.xlane.f32.xlu0 %v7072_v35 }
0x3755   : > { %v7241_v46 = vpop.xlane.xlu1 %7240 }
0x3756   : > { %v7242_v36 = vsub.f32 %v7236_v2, %v7241_v46 }
0x3758   : > { %v7243_v5 = vmul.f32 1.442695, %v7242_v36 }
0x3759   : > { %v7080_v58 = vpop.permute.xlu1 %7079 }
0x375a   : > { %9565 = vpow2.f32 %v7243_v5  ;;  %9239 = vmatpush3.msk.msra.mxu0 %vm1472_vm4, %v7080_v58 }
0x375b   : > { %9240 = vmatprep.subr.mxu0 %v9702_v41 }
0x375c   : > { %9241 = vmatpush3.msra.mxu0 %v7078_v38 }
0x375d   : > { %9252 = vmatprep.subr.mxu0 %v9702_v41  ;;  %v7253_v4 = vpop.permute.xlu1 %7252 }
0x3761   : > { %v7251_v47 = vpop.permute.xlu1 %7250 }
0x3765   : > { %v7333_v14 = vpop.permute.xlu1 %7332 }
0x3767   : > { %v9566_v39 = vpop.eup %9565 }
0x3768   : > { %v7245_v1 = vsel %vm1437_vm2, %v9566_v39, 0.0 }
0x3769   : > { %7246 = vadd.xlane.f32.xlu0 %v7245_v1 }
0x377f   : > { %v7074_v40 = vpop.xlane.xlu0 %7073  ;;  %7334 = vrot.lane.b32.xlu0 %v10808_v37, %s11161_s29  ;;  %s11195_s29 = sld [smem:[#allocation36_spill]] }
0x3780   : > { %9567 = vrcp.f32 %v7074_v40  ;;  %v8478_v40 = vld [vmem:[%s11192_s13 + $0x1] ss:$0 sm:$0xff]  ;;  %s9704_s13 = smov [#allocation2]  }
0x3783   : > { %7330 = vrot.lane.b32.xlu0 %v10830_v21, %s11162_s2 }
0x378d   : > { %v9568_v10 = vpop.eup %9567 }
0x378e   : > { %v7076_v44 = vmul.f32 %v9568_v10, %v9564_v63  ;;  %v8447_v63 = vld [vmem:[%s11182_s11 + $0x20] sm:$0xff] }
0x3790   : > { %9243 = vmatmul.mubr.msk.f32.vlgmr.msra.gmra.mxu0 %vm1437_vm2, %v7076_v44 }
0x3791   : > { %9253 = vmatpush3.msk.msra.mxu0 %vm1472_vm4, %v7253_v4  ;;  %9256 = vmatprep.mubr.msk.f32.mxu0 %vm9703_vm8, %v9702_v41 }
0x3792   : > { %9254 = vmatprep.subr.mxu0 %v9702_v41 }
0x3793   : > { %9255 = vmatpush3.msra.mxu0 %v7251_v47 }
0x3794   : > { %9259 = vmatprep.subr.mxu0 %v9702_v41 }
0x37f2   : > { %v7247_v48 = vpop.xlane.xlu0 %7246 }
0x37f3   : > { %9569 = vrcp.f32 %v7247_v48 }
0x37f6   : > { %v7335_v51 = vpop.permute.xlu0 %7334 }
0x37fa   : > { %v7331_v62 = vpop.permute.xlu0 %7330 }
0x3800   : > { %v9570_v50 = vpop.eup %9569 }
0x3801   : > { %v7249_v61 = vmul.f32 %v9570_v50, %v9566_v39 }
0x3803   : > { %9257 = vmatmul.mubr.msk.f32.vlgmr.msra.gmra.mxu0 %vm1437_vm2, %v7249_v61 }
0x3804   : > { %9260 = vmatpush3.xpose.msk.msra.mxu0 %vm1353_vm1, %v7335_v51  ;;  %9263 = vmatprep.mubr.msk.f32.mxu0 %vm9703_vm8, %v9702_v41 }
0x3805   : > { %9261 = vmatprep.subr.mxu0 %v9702_v41 }
0x3808   : > { %9262 = vmatpush3.xpose.msk.msra.mxu0 %vm1353_vm1, %v7333_v14 }
0x3809   : > { %9280 = vmatprep.subr.mxu0 %v9702_v41 }
0x380b   : > { %9264 = vmatmul.mubr.msk.f32.vlgmr.msra.gmra.mxu0 %vm1353_vm1, %v7331_v62 }
0x380c   : > { %9284 = vmatprep.mubr.msk.f32.mxu0 %vm9703_vm8, %v9702_v41 }
0x3850   : > { %v10884_v0 = vpop.f32.mrf.mxu0 }
0x3852   : > { %v9244_v8 = vpop.f32.mrf.mxu0 }
0x3853   : > { %v8484_v8 = vld [vmem:[%s11193_s21 + $0x30] sm:$0xff] }
0x38c3   : > { %v7326_v52 = vpop.f32.mrf.mxu0 }
0x38c5   : > { %v9258_v53 = vpop.f32.mrf.mxu0 }
0x38c6   : > { %v8490_v53 = vld [vmem:[%s11185_s4 + $0x38] sm:$0xff] }
0x38cb   : > { %v7408_v54 = vpop.f32.mrf.mxu0 }
0x38cc   : > { %v7409_v57 = vadd.f32 %v9586_v55, %v7408_v54  ;;  %v8489_v54 = vld [vmem:[%s11185_s4 + $0x30] sm:$0xff] }
0x38cd   : > { %v9265_v25 = vpop.f32.mrf.mxu0 }
0x38ce   : > { %v7412_v59 = vsel %vm1437_vm2, %v7409_v57, -inf }
0x38cf   : > { %7413 = vmax.xlane.f32.xlu1 %v7412_v59 }
0x38e0   : > { %7423 = vrot.lane.b32.xlu1 %v10804_v56, %s11163_s18 }
0x38e4   : > { %7507 = vrot.lane.b32.xlu1 %v10808_v37, %s11164_s26 }
0x38e8   : > { %7503 = vrot.lane.b32.xlu1 %v10830_v21, %s11165_s10 }
0x3958   : > { %v7414_v60 = vpop.xlane.xlu1 %7413 }
0x3959   : > { %v7415_v6 = vsub.f32 %v7409_v57, %v7414_v60 }
0x395b   : > { %v7416_v7 = vmul.f32 1.442695, %v7415_v6 }
0x395c   : > { %v7424_v15 = vpop.permute.xlu1 %7423 }
0x395d   : > { %9571 = vpow2.f32 %v7416_v7 }
0x3960   : > { %v7508_v32 = vpop.permute.xlu1 %7507 }
0x3964   : > { %v7504_v19 = vpop.permute.xlu1 %7503 }
0x396a   : > { %v9572_v9 = vpop.eup %9571 }
0x396b   : > { %v7418_v49 = vsel %vm1437_vm2, %v9572_v9, 0.0 }
0x396c   : > { %7419 = vadd.xlane.f32.xlu0 %v7418_v49 }
0x3982   : > { %7425 = vrot.lane.b32.xlu0 %v10808_v37, %s11163_s18  ;;  %s11198_s18 = sld [smem:[#allocation41_spill]] }
0x3986   : > { %7505 = vrot.lane.b32.xlu0 %v10804_v56, %s11164_s26  ;;  %s11200_s26 = sld [smem:[#allocation42_spill]] }
0x39f5   : > { %v7420_v11 = vpop.xlane.xlu0 %7419 }
0x39f6   : > { %9573 = vrcp.f32 %v7420_v11 }
0x39f9   : > { %v7426_v12 = vpop.permute.xlu0 %7425 }
0x39fa   : > { %9267 = vmatpush3.msk.msra.mxu1 %vm1472_vm4, %v7426_v12 }
0x39fb   : > { %9268 = vmatprep.subr.mxu1 %v9702_v41 }
0x39fc   : > { %9269 = vmatpush3.msra.mxu1 %v7424_v15  ;;  %v8487_v15 = vld [vmem:[%s11185_s4 + $0x20] sm:$0xff] }
0x39fd   : > { %9273 = vmatprep.subr.mxu1 %v9702_v41  ;;  %v7506_v13 = vpop.permute.xlu0 %7505 }
0x3a03   : > { %v9574_v16 = vpop.eup %9573 }
0x3a04   : > { %v7422_v17 = vmul.f32 %v9574_v16, %v9572_v9  ;;  %v8481_v9 = vld [vmem:[%s11187_s5 + $0x1] ss:$0 sm:$0xff] }
0x3a05   : > { %v8494_v16 = vld [vmem:[%s11195_s29 + $0x1] ss:$0 sm:$0xff] }
0x3a06   : > { %9271 = vmatmul.mubr.msk.f32.vlgmr.msra.gmra.mxu1 %vm1437_vm2, %v7422_v17 }
0x3a07   : > { %9274 = vmatpush3.xpose.msk.msra.mxu1 %vm1353_vm1, %v7508_v32  ;;  %9277 = vmatprep.mubr.msk.f32.mxu1 %vm9703_vm8, %v9702_v41 }
0x3a08   : > { %9275 = vmatprep.subr.mxu1 %v9702_v41 }
0x3a0b   : > { %9276 = vmatpush3.xpose.msk.msra.mxu1 %vm1353_vm1, %v7506_v13 }
0x3a0c   : > { %9298 = vmatprep.subr.mxu1 %v9702_v41 }
0x3a0e   : > { %9278 = vmatmul.mubr.msk.f32.vlgmr.msra.gmra.mxu1 %vm1353_vm1, %v7504_v19 }
0x3a0f   : > { %9306 = vmatprep.mubr.msk.f32.mxu1 %vm9703_vm8, %v9702_v41 }
0x3ac6   : > { %v7499_v20 = vpop.f32.mrf.mxu1 }
0x3ac8   : > { %v9272_v21 = vpop.f32.mrf.mxu1 }
0x3ace   : > { %v7581_v22 = vpop.f32.mrf.mxu1 }
0x3acf   : > { %v7582_v23 = vadd.f32 %v9586_v55, %v7581_v22  ;;  %v8488_v55 = vld [vmem:[%s11185_s4 + $0x28] sm:$0xff] }
0x3ad0   : > { %v9279_v24 = vpop.f32.mrf.mxu1 }
0x3ad1   : > { %v7585_v26 = vsel %vm1437_vm2, %v7582_v23, -inf }
0x3ad2   : > { %7586 = vmax.xlane.f32.xlu0 %v7585_v26 }
0x3ae8   : > { %7598 = vrot.lane.b32.xlu0 %v10808_v37, %s11166_s15 }
0x3aec   : > { %7677 = vrot.lane.b32.xlu0 %v7326_v52, %s11167_s22  ;;  %v8482_v52 = vld [vmem:[%s11193_s21 + $0x20] sm:$0xff]  ;;  %s11199_s22 = sld [smem:[#allocation47_spill]] }
0x3af2   : > { %s8500_s10 = sshll.u32 %s11199_s22, 4 }
0x3af3   : > { %s10986_s23 = scalar_lea.hbm %s11200_s26, %s8500_s10 }
0x3b5b   : > { %v7587_v27 = vpop.xlane.xlu0 %7586 }
0x3b5c   : > { %v7588_v43 = vsub.f32 %v7582_v23, %v7587_v27 }
0x3b5e   : > { %v7589_v3 = vmul.f32 1.442695, %v7588_v43 }
0x3b5f   : > { %v7599_v28 = vpop.permute.xlu0 %7598 }
0x3b60   : > { %9575 = vpow2.f32 %v7589_v3  ;;  %9281 = vmatpush3.msk.msra.mxu0 %vm1472_vm4, %v7599_v28 }
0x3b61   : > { %9282 = vmatprep.subr.mxu0 %v9702_v41 }
0x3b63   : > { %v7678_v36 = vpop.permute.xlu0 %7677 }
0x3b64   : > { %v7688_v58 = vsel %vm1353_vm1, %v10884_v0, %v7678_v36  ;;  %v8485_v0 = vld [vmem:[%s11193_s21 + $0x38] sm:$0xff] }
0x3b65   : > { %9299 = vmatpush3.msra.mxu1 %v8485_v0 }
0x3b66   : > { %9300 = vmatprep.subr.mxu1 %v9702_v41 }
0x3b67   : > { %9301 = vmatpush3.msra.mxu1 %v8484_v8 }
0x3b68   : > { %9302 = vmatprep.subr.mxu1 %v9702_v41 }
0x3b6d   : > { %v9576_v29 = vpop.eup %9575 }
0x3b6e   : > { %v7591_v2 = vsel %vm1437_vm2, %v9576_v29, 0.0 }
0x3b6f   : > { %7592 = vadd.xlane.f32.xlu1 %v7591_v2  ;;  %v8005_v2 = vld [vmem:[%s11196_s3 + $0x18] sm:$0xff] }
0x3b80   : > { %7596 = vrot.lane.b32.xlu1 %v10804_v56, %s11166_s15  ;;  %v8448_v56 = vld [vmem:[%s11182_s11 + $0x28] sm:$0xff]  ;;  %s11197_s15 = sld [smem:[#allocation44_spill]] }
0x3b84   : > { %7681 = vrot.lane.b32.xlu1 %v7499_v20, %s11168_s7  ;;  %v8496_v20 = vld [vmem:[%s11189_s9 + $0x1] ss:$0 sm:$0xff] }
0x3b86   : > { %s1208_s7 = sand.u32 1, %s11197_s15  }
0x3b87   : > { %s1209_s1 = scalar_lea.vmem [#allocation2], %s1208_s7  ;;  %s8082_s24 = scalar_lea.sflag [#allocation3], %s1208_s7 }
0x3b88   : > { %s8094_s28 = sshll.u32 %s1209_s1, 4  ;;  %s8095_s28 = int_to_ptr.vmem [resolvable:$true] %s8094_s28 }
0x3b89   : > { %s9587_s16 = scalar_lea.vmem %s8095_s28, 16 }
0x3b8a   : > { %p9588_p11 = scmp.ne.s32.totalorder %s8095_s28, %s9587_s16 }
0x3b8c   : > { %p9589_p12 = pnand %p9588_p11, %p9943_p5 }
0x3b8e   : > { %p9590_p13 = pneg %p9589_p12 }
0x3bf8   : > { %v7593_v37 = vpop.xlane.xlu1 %7592 }
0x3bf9   : > { %9577 = vrcp.f32 %v7593_v37  ;;  %v8004_v37 = vld [vmem:[%s11196_s3 + $0x10] sm:$0xff] }
0x3bfc   : > { %v7597_v30 = vpop.permute.xlu1 %7596 }
0x3bfd   : > { %9283 = vmatpush3.msra.mxu0 %v7597_v30  ;;  %v8003_v30 = vld [vmem:[%s11196_s3 + $0x8] sm:$0xff] }
0x3bfe   : > { %9287 = vmatprep.subr.mxu0 %v9702_v41 }
0x3c00   : > { %v7682_v5 = vpop.permute.xlu1 %7681 }
0x3c01   : > { %v7689_v38 = vsel %vm2179_vm5, %v7688_v58, %v7682_v5 }
0x3c06   : > { %v9578_v42 = vpop.eup %9577 }
0x3c07   : > { %v7595_v31 = vmul.f32 %v9578_v42, %v9576_v29  ;;  %v8002_v42 = vld [vmem:[%s11196_s3] sm:$0xff] }
0x3c09   : > { %9285 = vmatmul.mubr.msk.f32.vlgmr.msra.gmra.mxu0 %vm1437_vm2, %v7595_v31 }
0x3c0a   : > { %9295 = vmatprep.mubr.msk.f32.mxu0 %vm9703_vm8, %v9702_v41  ;;  %9288 = vmatpush3.msra.mxu0 %v8450_v33 }
0x3c0b   : > { %9289 = vmatprep.subr.mxu0 %v9702_v41 }
0x3c0c   : > { %9290 = vmatpush3.msra.mxu0 %v8449_v34 }
0x3c0d   : > { %9291 = vmatprep.subr.mxu0 %v9702_v41 }
0x3c0e   : > { %9292 = vmatpush3.msra.mxu0 %v8448_v56 }
0x3c0f   : > { %9293 = vmatprep.subr.mxu0 %v9702_v41 }
0x3c10   : > { %9294 = vmatpush3.msra.mxu0 %v8447_v63  ;;  %v8497_v63 = vld [vmem:[%s11191_s27 + $0x1] ss:$0 sm:$0xff] }
0x3c11   : > { %9309 = vmatprep.subr.mxu0 %v9702_v41 }
0x3cc9   : > { %v7672_v35 = vpop.f32.mrf.mxu0 }
0x3cca   : > { %7685 = vrot.lane.b32.xlu0 %v7672_v35, %s11169_s25  ;;  %s11194_s25 = sld [smem:[#allocation33_spill]] }
0x3ccb   : > { %v9286_v46 = vpop.f32.mrf.mxu0 }
0x3ccc   : > { %v8498_v46 = vld [vmem:[%s9888_s17 + $0x1] ss:$0 sm:$0xff] }
0x3cd0   : > { %v8480_v6 = vld [vmem:[%s11194_s25 + $0x1] ss:$0 sm:$0xff]  ;;  %s9591_s25 = sshll.u32 %s9704_s13, 4  ;;  %s9592_s25 = int_to_ptr.vmem [resolvable:$false] %s9591_s25 }
0x3cd1   : > { %s9593_s29 = scalar_lea.vmem %s9592_s25, 32  ;;  %p9594_p0 = scmp.lt.s32.totalorder %s8095_s28, %s9592_s25 }
0x3cd2   : > { %p9595_p1 = scmp.lt.s32.totalorder %s9593_s29, %s9587_s16 }
0x3cd4   : > { %p9596_p2 = por %p9595_p1, %p9594_p0 }
0x3cd6   : > { %p9597_p3 = pnand %p9596_p2, %p9590_p13 }
0x3d3c   : > { %v7686_v39 = vpop.permute.xlu0 %7685 }
0x3d3d   : > { %v7690_v1 = vsel %vm2182_vm6, %v7689_v38, %v7686_v39 }
0x3d3e   : > { %9296 = vmatmul.mubr.msk.f32.vlgmr.msra.gmra.mxu0 %vm1259_vm0, %v7690_v1 }
0x3d3f   : > { %9317 = vmatprep.mubr.msk.f32.mxu0 %vm9703_vm8, %v9702_v41  ;;  %9310 = vmatpush3.xpose.msra.mxu0 %v8490_v53 }
0x3d40   : > { %9311 = vmatprep.subr.mxu0 %v9702_v41 }
0x3d43   : > { %9312 = vmatpush3.xpose.msra.mxu0 %v8489_v54 }
0x3d44   : > { %9313 = vmatprep.subr.mxu0 %v9702_v41 }
0x3d47   : > { %9314 = vmatpush3.xpose.msra.mxu0 %v8488_v55 }
0x3d48   : > { %9315 = vmatprep.subr.mxu0 %v9702_v41 }
0x3d4b   : > { %9316 = vmatpush3.xpose.msra.mxu0 %v8487_v15 }
0x3dfe   : > { %v7766_v4 = vpop.f32.mrf.mxu0 }
0x3dff   : > { %v7767_v10 = vadd.f32 %v8478_v40, %v7766_v4 }
0x3e00   : > { %v9297_v44 = vpop.f32.mrf.mxu0 }
0x3e01   : > { %v7770_v47 = vadd.f32 %v7767_v10, %v10820_v18  ;;  %v8483_v18 = vld [vmem:[%s11193_s21 + $0x28] sm:$0xff] }
0x3e02   : > { %9303 = vmatpush3.msra.mxu1 %v8483_v18 }
0x3e03   : > { %v7771_v48 = vsel %vm1259_vm0, %v7770_v47, 0.0  ;;  %9304 = vmatprep.subr.mxu1 %v9702_v41 }
0x3e04   : > { %7772 = vadd.xlane.f32.xlu1 %v7771_v48  ;;  %9305 = vmatpush3.msra.mxu1 %v8482_v52 }
0x3e05   : > { %9320 = vmatprep.subr.mxu1 %v9702_v41 }
0x3e8d   : > { %v7773_v50 = vpop.xlane.xlu1 %7772 }
0x3e8e   : > { %v7774_v61 = vmul.f32 0.03125, %v7773_v50 }
0x3e90   : > { %v7775_v51 = vsub.f32 %v7770_v47, %v7774_v61 }
0x3e92   : > { %v7776_v14 = vmul.f32 %v7775_v51, %v7775_v51 }
0x3e94   : > { %v7777_v62 = vsel %vm1259_vm0, %v7776_v14, 0.0 }
0x3e95   : > { %7778 = vadd.xlane.f32.xlu0 %v7777_v62 }
0x3f1e   : > { %v7779_v57 = vpop.xlane.xlu0 %7778 }
0x3f1f   : > { %v7780_v25 = vmul.f32 0.03125, %v7779_v57 }
0x3f21   : > { %v7781_v59 = vadd.f32 1e-05, %v7780_v25 }
0x3f23   : > { %9579 = vrsqrt.f32 %v7781_v59 }
0x3f30   : > { %v9580_v60 = vpop.eup %9579 }
0x3f31   : > { %v7783_v7 = vmul.f32 %v9580_v60, %v7775_v51 }
0x3f33   : > { %v7790_v49 = vmul.f32 %v8480_v6, %v7783_v7 }
0x3f35   : > { %v7797_v11 = vadd.f32 %v8481_v9, %v7790_v49 }
0x3f37   : > { %v7798_v12 = vmul.f32 %v7797_v11, %v10509_v45 }
0x3f39   : > { %9307 = vmatmul.mubr.msk.f32.vlgmr.msra.gmra.mxu1 %vm1259_vm0, %v7798_v12 }
0x3f3a   : > { %9328 = vmatprep.mubr.msk.f32.mxu1 %vm9703_vm8, %v9702_v41  ;;  %9321 = vmatpush3.msra.mxu1 %v8005_v2 }
0x3f3b   : > { %9322 = vmatprep.subr.mxu1 %v9702_v41 }
0x3f3c   : > { %9323 = vmatpush3.msra.mxu1 %v8004_v37 }
0x3f3d   : > { %9324 = vmatprep.subr.mxu1 %v9702_v41 }
0x3f3e   : > { %9325 = vmatpush3.msra.mxu1 %v8003_v30 }
0x3f3f   : > { %9326 = vmatprep.subr.mxu1 %v9702_v41  ;;  %v8006_v41 = vld [vmem:[%s11198_s18] sm:$0x1] }
0x3f40   : > { %9327 = vmatpush3.msra.mxu1 %v8002_v42 }
0x3ff9   : > { %v7892_v17 = vpop.f32.mrf.mxu1 }
0x3ffa   : > { %v7893_v32 = vadd.f32 %v8494_v16, %v7892_v17 }
0x3ffb   : > { %v9308_v13 = vpop.f32.mrf.mxu1 }
0x3ffc   : > { %v7896_v19 = vmax.f32 %v7893_v32, 0.0 }
0x3ffe   : > { %9318 = vmatmul.mubr.f32.vlgmr.msra.gmra.mxu0 %v7896_v19 }
0x40be   : > { %v7969_v21 = vpop.f32.mrf.mxu0 }
0x40bf   : > { %v7970_v22 = vadd.f32 %v8496_v20, %v7969_v21 }
0x40c0   : > { %v9319_v23 = vpop.f32.mrf.mxu0 }
0x40c1   : > { %v7973_v24 = vadd.f32 %v7970_v22, %v7798_v12 }
0x40c3   : > { %v7974_v26 = vsel %vm1259_vm0, %v7973_v24, 0.0 }
0x40c4   : > { %7975 = vadd.xlane.f32.xlu0 %v7974_v26 }
0x414d   : > { %v7976_v27 = vpop.xlane.xlu0 %7975 }
0x414e   : > { %v7977_v43 = vmul.f32 0.03125, %v7976_v27 }
0x4150   : > { %v7978_v3 = vsub.f32 %v7973_v24, %v7977_v43 }
0x4152   : > { %v7979_v28 = vmul.f32 %v7978_v3, %v7978_v3 }
0x4154   : > { %v7980_v29 = vsel %vm1259_vm0, %v7979_v28, 0.0 }
0x4155   : > { %7981 = vadd.xlane.f32.xlu1 %v7980_v29 }
0x41de   : > { %v7982_v31 = vpop.xlane.xlu1 %7981 }
0x41df   : > { %v7983_v33 = vmul.f32 0.03125, %v7982_v31 }
0x41e1   : > { %v7984_v34 = vadd.f32 1e-05, %v7983_v33 }
0x41e3   : > { %9581 = vrsqrt.f32 %v7984_v34 }
0x41f0   : > { %v9582_v56 = vpop.eup %9581 }
0x41f1   : > { %v7986_v35 = vmul.f32 %v9582_v56, %v7978_v3 }
0x41f3   : > { %v7993_v36 = vmul.f32 %v8497_v63, %v7986_v35 }
0x41f5   : > { %v8000_v5 = vadd.f32 %v8498_v46, %v7993_v36 }
0x41f7   : > { %v8001_v58 = vmul.f32 %v8000_v5, %v10509_v45 }
0x41f9   : > { %9329 = vmatmul.mubr.msk.f32.vlgmr.msra.gmra.mxu1 %vm1259_vm0, %v8001_v58 }
0x42b9   : > { %v8076_v38 = vpop.f32.mrf.mxu1 }
0x42ba   : > { %v8077_v39 = vadd.f32 %v8076_v38, %v8006_v41 }
0x42bb   : > { %v9330_v1 = vpop.f32.mrf.mxu1 }
0x42bc   : > { %8080 = vst [vmem:[%s1209_s1] sm:$0x1] %v8077_v39 }
0x42bd   : > { %9600 = shalt.err (!%p9597_p3)
}
0x42be   : > { %s9601_s15 = scalar_lea.hbm %s10986_s23, 16  ;;  %s9605_s18 = scalar_lea.hbm %s11200_s26, 32 }
0x42bf   : > { %p9602_p4 = scmp.ne.s32.totalorder %s10986_s23, %s9601_s15  ;;  %p9606_p9 = scmp.lt.s32.totalorder %s10986_s23, %s11200_s26 }
0x42c0   : > { %p9607_p10 = scmp.lt.s32.totalorder %s9605_s18, %s9601_s15 }
0x42c1   : > { %p9603_p7 = pnand %p9602_p4, %p9943_p5 }
0x42c2   : > { %p9608_p11 = por %p9607_p10, %p9606_p9 }
0x42c3   : > { %p9604_p8 = pneg %p9603_p7 }
0x42c5   : > { %p9609_p12 = pnand %p9608_p11, %p9604_p8 }
0x42c7   : > { %9612 = shalt.err (!%p9609_p12)
}
0x42c8   : > { %9331 = dma.vmem_to_hbm [thread:$0]  (%p9943_p5), %s8095_s28, 16, %s10986_s23, %s8082_s24  }
0x42c9 PF: > { %s11202_s22 = sld [smem:[#allocation46_spill]] }
0x42ca   : > { %s11203_s7 = sld [smem:[#allocation43_spill]] }
0x42cf   : > { %p9337_p13 = scmp.ge.s32.totalorder %s11202_s22, 2 }
0x42d0   : > { %s8106_s1 = sand.u32 1, %s11203_s7  }
0x42d1   : > { %p9334_p0 = pnand %p9337_p13, %p9947_p6  ;;  %s8107_s16 = scalar_lea.sflag [#allocation3], %s8106_s1 }
0x42d3   : > { %p9335_p1 = pneg %p9334_p0 }
0x42d5   : > { %9630 = dma.done.wait (%p9335_p1), %s8107_s16, 16  }
0x42d6   : > { %9632 = vsyncadd (%p9335_p1), %s8107_s16, 4294967280  ;;  %s11205_s22 = sld [smem:[#allocation48_spill]] }
0x42d7   : > { %s11206_s15 = sld [smem:[#allocation44_spill]] }
0x42d8   : > { %s11207_s16 = sld [smem:[#allocation45_spill]] }
0x42d9   : > { %s11208_s18 = sld [smem:[#allocation49_spill]] }
0x42dc   : > { %p87_p2 = scmp.ge.s32.totalorder %s11205_s22, 4  }
0x42de   :  { %89 = sbr.rel (!%p87_p2) target bundleno = 94 (0x5e), region = 290 }
0x42e3   :  { %8111 = vsyncpa [#allocation3], 1 }
0x42e4   :  { %8113 = vsyncpa [#allocation3 + $0x1], 1 }

</bundles_post_ra>
